<compile_context>
chip_gen: v7x
topology: tpu7x:2x2x1
jax: 0.10.0
libtpu: 0.0.40
codegen_flags: <defaults>
</compile_context>

<pallas_src>
import functools

import jax
import jax.numpy as jnp
from jax.experimental import pallas as pl
from jax.experimental.pallas import tpu as pltpu


# ----------------------------------------------------------------------------
# Gaussian kernel parameters (same as the PyTorch module's kernel_mus/sigmas)
# ----------------------------------------------------------------------------
def kernel_mus(n_kernels: int):
    l_mu = [1.0]
    if n_kernels == 1:
        return l_mu
    bin_size = 2.0 / (n_kernels - 1)
    l_mu.append(1 - bin_size / 2)
    for i in range(1, n_kernels - 1):
        l_mu.append(l_mu[i] - bin_size)
    return l_mu


def kernel_sigmas(n_kernels: int):
    bin_size = 2.0 / (n_kernels - 1)
    l_sigma = [0.001]
    if n_kernels == 1:
        return l_sigma
    l_sigma += [0.5 * bin_size] * (n_kernels - 1)
    return l_sigma


def _round_up(x: int, m: int) -> int:
    return ((x + m - 1) // m) * m


# ----------------------------------------------------------------------------
# Kernel 1: all G n-gram Conv1d's (+bias +ReLU +L2 row-normalize).
# One g_max-tap unfold; grid = (row-tile, g); per-g weights zero-padded rows.
# ----------------------------------------------------------------------------
def _conv_kernel(x_ref, w_ref, b_ref, o_ref):
    # x_ref: (TM, gmax*E) bf16, w_ref: (1, gmax*E, C) bf16,
    # b_ref: (1, 1, C) f32,     o_ref: (1, TM, C) bf16
    acc = jnp.dot(x_ref[...], w_ref[0], preferred_element_type=jnp.float32)
    act = jnp.maximum(acc + b_ref[0], 0.0)                      # bias + ReLU (f32)
    # hoisted L2 normalization (cosine = qn @ dn^T later), one EUP rsqrt
    inv = jax.lax.rsqrt(jnp.sum(act * act, axis=1, keepdims=True) + 1e-12)
    o_ref[0] = (act * inv).astype(o_ref.dtype)


def _pick_tile(m: int, cap: int = 1024) -> int:
    # m is always a multiple of 8 by construction (Lq padded to 8, Ld to 128),
    # so a proper divisor is always found and no row padding is ever needed.
    assert m % 8 == 0, m
    if m <= cap:
        return m
    for tm in (1024, 512, 256, 128, 64, 32, 16, 8):
        if m % tm == 0:
            return tm
    return 8


def ngram_conv_norm(emb, w_stk, b_stk, gmax):
    """emb: (B, Lp, E) f32; w_stk: (G, gmax*E, C) bf16; b_stk: (G, 1, C) f32.

    Returns (G, B*Lp, C) bf16 with L2-normalized rows (ready for cosine matmul).
    Row order within each g is batch-major then position, so the pooling
    BlockSpec can index one batch tile directly.
    """
    B, Lp, E = emb.shape
    G, _, C = w_stk.shape

    # right zero-pad ('same' length, ConstantPad1d((0, gmax-1), 0)) then stack taps
    x_pad = jnp.pad(emb, ((0, 0), (0, gmax - 1), (0, 0)))
    taps = [x_pad[:, k:k + Lp, :] for k in range(gmax)]
    x_unf = jnp.concatenate(taps, axis=-1).reshape(B * Lp, gmax * E)
    x_unf = x_unf.astype(jnp.bfloat16)                          # bf16 MXU operands

    M = B * Lp
    TM = _pick_tile(M)
    return pl.pallas_call(
        _conv_kernel,
        out_shape=jax.ShapeDtypeStruct((G, M, C), jnp.bfloat16),
        grid=(M // TM, G),
        in_specs=[
            pl.BlockSpec((TM, gmax * E), lambda m, g: (m, 0)),   # reused across g
            pl.BlockSpec((1, gmax * E, C), lambda m, g: (g, 0, 0)),
            pl.BlockSpec((1, 1, C), lambda m, g: (g, 0, 0)),
        ],
        out_specs=pl.BlockSpec((1, TM, C), lambda m, g: (g, m, 0)),
        compiler_params=pltpu.CompilerParams(
            dimension_semantics=("parallel", "arbitrary")),
    )(x_unf, w_stk, b_stk)


# ----------------------------------------------------------------------------
# Kernel 2: fused cosine matmul + Gaussian kernel pooling.
# One MXU matmul gives all G*G cosine blocks; the K gaussians are a static
# loop over dense (rows, Ldp) tiles with the doc axis on lanes.
# ----------------------------------------------------------------------------
def _pool_kernel(q_ref, d_ref, qm_ref, dm_ref, o_ref, *,
                 G, Lqp, Ldp, C, K, TB, mu, inv2s2):
    # q_ref: (G, TB*Lqp, C) bf16 unit rows, d_ref: (G, TB*Ldp, C) bf16 unit rows
    # qm_ref: (TB, Lqp, 1) f32, dm_ref: (TB, 1, Ldp) f32
    # o_ref: (TB, 1, G*G*K) f32;  mu / inv2s2 are compile-time float tuples
    for bi in range(TB):                                     # TB small, static
        qf = q_ref[:, bi * Lqp:(bi + 1) * Lqp, :].reshape(G * Lqp, C)
        df = d_ref[:, bi * Ldp:(bi + 1) * Ldp, :].reshape(G * Ldp, C)
        # one fused MXU matmul = all G*G n-gram-pair cosine matrices
        cos = jax.lax.dot_general(qf, df, (((1,), (1,)), ((), ())),
                                  preferred_element_type=jnp.float32)  # (G*Lqp, G*Ldp)
        qm = qm_ref[bi]                                      # (Lqp, 1)
        dm = dm_ref[bi]                                      # (1, Ldp)

        feats = [[None] * G for _ in range(G)]
        for dg in range(G):
            # lane-aligned column block (Ldp is a multiple of 128)
            blk = cos[:, dg * Ldp:(dg + 1) * Ldp] * dm       # (G*Lqp, Ldp) doc-masked
            cols = []
            for k in range(K):                               # K gaussians, Ld dense on lanes
                diff = blk - mu[k]
                rk = jnp.exp(diff * diff * (-inv2s2[k])) * dm
                cols.append(jnp.sum(rk, axis=1, keepdims=True))   # (G*Lqp, 1) lane reduce
            pk = jnp.concatenate(cols, axis=1)               # (G*Lqp, K)
            logpk = jnp.log(jnp.maximum(pk, 1e-10)) * 0.01
            for qg in range(G):
                rows = logpk[qg * Lqp:(qg + 1) * Lqp, :] * qm     # (Lqp, K) query-masked
                feats[qg][dg] = jnp.sum(rows, axis=0, keepdims=True)   # (1, K)

        # one store per batch element; feature order = qg outer, dg, k innermost
        feat = jnp.concatenate(
            [feats[qg][dg] for qg in range(G) for dg in range(G)], axis=1)  # (1, G*G*K)
        o_ref[pl.ds(bi, 1)] = feat.reshape(1, 1, G * G * K)


def fused_kernel_pooling(q_all, d_all, q_mask, d_mask, mu, sigma, G, Lqp, Ldp, TB):
    """q_all: (G, B*Lqp, C), d_all: (G, B*Ldp, C) bf16 unit rows -> (B, G*G*K) f32."""
    C = q_all.shape[-1]
    B = q_mask.shape[0]
    K = len(mu)
    GGK = G * G * K

    qm = q_mask.reshape(B, Lqp, 1).astype(jnp.float32)
    dm = d_mask.reshape(B, 1, Ldp).astype(jnp.float32)

    kern = functools.partial(
        _pool_kernel, G=G, Lqp=Lqp, Ldp=Ldp, C=C, K=K, TB=TB,
        mu=tuple(float(m) for m in mu),
        inv2s2=tuple(1.0 / (2.0 * float(s) * float(s)) for s in sigma))

    out = pl.pallas_call(
        kern,
        out_shape=jax.ShapeDtypeStruct((B, 1, GGK), jnp.float32),
        grid=(B // TB,),
        in_specs=[
            pl.BlockSpec((G, TB * Lqp, C), lambda b: (0, b, 0)),
            pl.BlockSpec((G, TB * Ldp, C), lambda b: (0, b, 0)),
            pl.BlockSpec((TB, Lqp, 1), lambda b: (b, 0, 0)),
            pl.BlockSpec((TB, 1, Ldp), lambda b: (b, 0, 0)),
        ],
        out_specs=pl.BlockSpec((TB, 1, GGK), lambda b: (b, 0, 0)),
        compiler_params=pltpu.CompilerParams(dimension_semantics=("parallel",)),
    )(q_all, d_all, qm, dm)
    return out.reshape(B, GGK)


# ----------------------------------------------------------------------------
# Parameters (deterministic, synthetic) and full forward pass
# ----------------------------------------------------------------------------
def init_params(key, vocab, emb_dim, n_grams, n_kernels, conv_out_dim):
    keys = jax.random.split(key, 2 * n_grams + 2)
    emb = 0.1 * jax.random.normal(keys[0], (vocab, emb_dim), jnp.float32)
    emb = emb.at[0].set(0.0)  # token id 0 is padding
    convs = []
    for g in range(1, n_grams + 1):
        fan_in = float(g * emb_dim)
        w = jax.random.normal(keys[2 * g - 1], (g, emb_dim, conv_out_dim),
                              jnp.float32) / jnp.sqrt(fan_in)
        b = 0.01 * jax.random.normal(keys[2 * g], (1, conv_out_dim), jnp.float32)
        convs.append((w, b))
    dense_w = jax.random.uniform(keys[-1], (n_kernels * n_grams * n_grams,),
                                 minval=-0.014, maxval=0.014, dtype=jnp.float32)
    return {"emb": emb, "convs": convs, "dense_w": dense_w}


def conv_knrm_forward(params, query_tokens, doc_tokens, mu, sigma):
    B, Lq = query_tokens.shape
    Ld = doc_tokens.shape[1]
    convs = params["convs"]
    G = len(convs)
    gmax = G
    E = params["emb"].shape[1]
    C = convs[0][0].shape[-1]

    # pad sequences so every pooling slice stays (8, 128)-tile aligned;
    # padded positions use token id 0 -> zero embedding + zero mask, matching
    # the original ConstantPad1d zero-padding semantics.
    Lqp = _round_up(Lq, 8)
    Ldp = _round_up(Ld, 128)
    q_tok = jnp.pad(query_tokens, ((0, 0), (0, Lqp - Lq)))
    d_tok = jnp.pad(doc_tokens, ((0, 0), (0, Ldp - Ld)))

    q_mask = (q_tok > 0).astype(jnp.float32)                 # (B, Lqp)
    d_mask = (d_tok > 0).astype(jnp.float32)                 # (B, Ldp)

    q_emb = params["emb"][q_tok]                             # (B, Lqp, E) glue: gather
    d_emb = params["emb"][d_tok]                             # (B, Ldp, E)

    # stack per-g conv weights: rows for taps >= g are zero, so one gmax-tap
    # unfold serves every n-gram size; biases stacked alongside.
    w_stk = jnp.zeros((G, gmax * E, C), jnp.float32)
    b_stk = jnp.zeros((G, 1, C), jnp.float32)
    for gi, (w, b) in enumerate(convs):
        g = gi + 1
        w_stk = w_stk.at[gi, :g * E, :].set(w.reshape(g * E, C))
        b_stk = b_stk.at[gi].set(b)
    w_stk = w_stk.astype(jnp.bfloat16)

    # all G n-gram convolutions in one pallas_call per slab (shared weights)
    q_all = ngram_conv_norm(q_emb, w_stk, b_stk, gmax)       # (G, B*Lqp, C) bf16
    d_all = ngram_conv_norm(d_emb, w_stk, b_stk, gmax)       # (G, B*Ldp, C) bf16

    # small batch tile per pooling grid step (amortize per-step overhead)
    TB = next(t for t in (4, 2, 1) if B % t == 0)
    kernel_results = fused_kernel_pooling(q_all, d_all, q_mask, d_mask,
                                          mu, sigma, G, Lqp, Ldp, TB)   # (B, G*G*K)

    # dense scoring layer (nn.Linear(K*G*G, 1, bias=False)) + squeeze
    return kernel_results @ params["dense_w"]                # (B,)


# ----------------------------------------------------------------------------
# Pure-JAX reference (mirrors the kernel's bf16 cast points) for a parity check
# ----------------------------------------------------------------------------
def _reference_forward(params, q_tokens, d_tokens, mu, sigma):
    G = len(params["convs"])
    K = len(mu)
    qm = (q_tokens > 0).astype(jnp.float32)
    dm = (d_tokens > 0).astype(jnp.float32)
    q_emb = params["emb"][q_tokens]
    d_emb = params["emb"][d_tokens]
    mu_a = jnp.asarray(mu, jnp.float32).reshape(1, 1, 1, K)
    sg_a = jnp.asarray(sigma, jnp.float32).reshape(1, 1, 1, K)

    def conv(x, w, b, g):
        _, L, E = x.shape
        xp = jnp.pad(x, ((0, 0), (0, g - 1), (0, 0)))
        taps = jnp.concatenate([xp[:, k:k + L, :] for k in range(g)], axis=-1)
        taps = taps.astype(jnp.bfloat16).astype(jnp.float32)
        wf = w.reshape(g * E, -1).astype(jnp.bfloat16).astype(jnp.float32)
        act = jnp.maximum(jnp.einsum("ble,ec->blc", taps, wf) + b, 0.0)
        act = act * jax.lax.rsqrt(jnp.sum(act * act, axis=-1, keepdims=True) + 1e-12)
        return act.astype(jnp.bfloat16).astype(jnp.float32)

    qcs = [conv(q_emb, w, b, gi + 1) for gi, (w, b) in enumerate(params["convs"])]
    dcs = [conv(d_emb, w, b, gi + 1) for gi, (w, b) in enumerate(params["convs"])]

    mask = qm[:, :, None] * dm[:, None, :]
    feats = []
    for qg in range(G):
        for dg in range(G):
            cos = jnp.einsum("bqc,bkc->bqk", qcs[qg], dcs[dg])
            cm = (cos * mask)[..., None]
            rk = jnp.exp(-((cm - mu_a) ** 2) / (2.0 * sg_a ** 2)) * mask[..., None]
            pkq = jnp.sum(rk, axis=2)
            lg = jnp.log(jnp.maximum(pkq, 1e-10)) * 0.01 * qm[:, :, None]
            feats.append(jnp.sum(lg, axis=1))                # (B, K)
    kr = jnp.concatenate(feats, axis=1)                      # (B, G*G*K)
    return kr @ params["dense_w"]


if __name__ == "__main__":
    B, Lq, Ld = 2, 8, 16
    vocab, emb_dim = 50, 32
    n_grams, n_kernels, conv_out_dim = 2, 11, 32

    key = jax.random.PRNGKey(0)
    k1, k2, k3 = jax.random.split(key, 3)

    q_tokens = jax.random.randint(k1, (B, Lq), 1, vocab, dtype=jnp.int32)
    d_tokens = jax.random.randint(k2, (B, Ld), 1, vocab, dtype=jnp.int32)
    # introduce some padding (token id 0)
    q_tokens = q_tokens.at[0, 6:].set(0)
    d_tokens = d_tokens.at[0, 12:].set(0)

    params = init_params(k3, vocab, emb_dim, n_grams, n_kernels, conv_out_dim)
    mu = tuple(kernel_mus(n_kernels))
    sigma = tuple(kernel_sigmas(n_kernels))

    fwd = jax.jit(functools.partial(conv_knrm_forward, mu=mu, sigma=sigma))
    score = jax.block_until_ready(fwd(params, q_tokens, d_tokens))
    assert score.shape == (B,)
    assert bool(jnp.all(jnp.isfinite(score)))

    ref_score = _reference_forward(params, q_tokens, d_tokens, mu, sigma)
    assert bool(jnp.allclose(score, ref_score, atol=1e-2, rtol=1e-2)), (score, ref_score)

    print("KERNEL_OK")
</pallas_src>

<mosaic_0001>
module attributes {stable_mosaic.version = 11 : i64} {
  func.func @_conv_kernel(%arg0: i32, %arg1: i32, %arg2: memref<16x64xbf16, #tpu.memory_space<vmem>>, %arg3: memref<1x64x32xbf16, #tpu.memory_space<vmem>>, %arg4: memref<1x1x32xf32, #tpu.memory_space<vmem>>, %arg5: memref<1x16x32xbf16, #tpu.memory_space<vmem>>) attributes {dimension_semantics = [#tpu.dimension_semantics<parallel>, #tpu.dimension_semantics<arbitrary>], iteration_bounds = array<i64: 1, 2>, scalar_prefetch = 0 : i64, scratch_operands = 0 : i64, tpu.core_type = #tpu.core_type<tc>, window_params = [{transform_indices = @transform_0, window_bounds = array<i64: 16, 64>}, {transform_indices = @transform_1, window_bounds = array<i64: 1, 64, 32>}, {transform_indices = @transform_2, window_bounds = array<i64: 1, 1, 32>}, {transform_indices = @transform_3, window_bounds = array<i64: 1, 16, 32>}]} {
    %c0 = arith.constant 0 : index
    %c0_0 = arith.constant 0 : index
    %0 = vector.load %arg2[%c0, %c0_0] : memref<16x64xbf16, #tpu.memory_space<vmem>>, vector<16x64xbf16>
    %c0_1 = arith.constant 0 : index
    %c0_2 = arith.constant 0 : index
    %c0_3 = arith.constant 0 : index
    %1 = vector.load %arg3[%c0_1, %c0_2, %c0_3] : memref<1x64x32xbf16, #tpu.memory_space<vmem>>, vector<1x64x32xbf16>
    %2 = vector.shape_cast %1 : vector<1x64x32xbf16> to vector<64x32xbf16>
    %cst = arith.constant dense<0.000000e+00> : vector<16x32xf32>
    %3 = tpu.matmul %0, %2, %cst {dimension_numbers = #tpu.dot_dimension_numbers<[1], [0], [0], [1], [0, 0, 1, 1], [], []>} : vector<16x64xbf16>, vector<64x32xbf16>, vector<16x32xf32> -> vector<16x32xf32>
    %c0_4 = arith.constant 0 : index
    %c0_5 = arith.constant 0 : index
    %c0_6 = arith.constant 0 : index
    %4 = vector.load %arg4[%c0_4, %c0_5, %c0_6] : memref<1x1x32xf32, #tpu.memory_space<vmem>>, vector<1x1x32xf32>
    %5 = vector.shape_cast %4 : vector<1x1x32xf32> to vector<1x32xf32>
    %6 = vector.broadcast %5 : vector<1x32xf32> to vector<16x32xf32>
    %7 = arith.addf %3, %6 : vector<16x32xf32>
    %cst_7 = arith.constant 0.000000e+00 : f32
    %8 = vector.broadcast %cst_7 : f32 to vector<16x32xf32>
    %9 = arith.maximumf %7, %8 : vector<16x32xf32>
    %10 = arith.mulf %9, %9 : vector<16x32xf32>
    %cst_8 = arith.constant dense<0.000000e+00> : vector<16xf32>
    %11 = vector.multi_reduction <add>, %10, %cst_8 [1] : vector<16x32xf32> to vector<16xf32>
    %12 = vector.shape_cast %11 : vector<16xf32> to vector<16x1xf32>
    %cst_9 = arith.constant 9.99999996E-13 : f32
    %13 = vector.broadcast %cst_9 : f32 to vector<16x1xf32>
    %14 = arith.addf %12, %13 : vector<16x1xf32>
    %15 = math.rsqrt %14 : vector<16x1xf32>
    %16 = vector.broadcast %15 : vector<16x1xf32> to vector<16x32xf32>
    %17 = arith.mulf %9, %16 : vector<16x32xf32>
    %18 = arith.truncf %17 : vector<16x32xf32> to vector<16x32xbf16>
    %c0_10 = arith.constant 0 : index
    %c0_11 = arith.constant 0 : index
    %c0_12 = arith.constant 0 : index
    %19 = vector.load %arg5[%c0_10, %c0_11, %c0_12] : memref<1x16x32xbf16, #tpu.memory_space<vmem>>, vector<1x16x32xbf16>
    %20 = vector.shape_cast %19 : vector<1x16x32xbf16> to vector<16x32xbf16>
    %21 = vector.shape_cast %18 : vector<16x32xbf16> to vector<1x16x32xbf16>
    tpu.vector_store %arg5[%c0_10, %c0_11, %c0_12], %21 {strides = array<i32>} : memref<1x16x32xbf16, #tpu.memory_space<vmem>>, vector<1x16x32xbf16>,
    return
  }
  func.func @transform_0(%arg0: i32, %arg1: i32) -> (i32, i32) {
    %c0_i32 = arith.constant 0 : i32
    %c0_i32_0 = arith.constant 0 : i32
    return %arg0, %c0_i32 : i32, i32
  }
  func.func @transform_1(%arg0: i32, %arg1: i32) -> (i32, i32, i32) {
    %c0_i32 = arith.constant 0 : i32
    %c0_i32_0 = arith.constant 0 : i32
    %c0_i32_1 = arith.constant 0 : i32
    return %arg1, %c0_i32, %c0_i32_0 : i32, i32, i32
  }
  func.func @transform_2(%arg0: i32, %arg1: i32) -> (i32, i32, i32) {
    %c0_i32 = arith.constant 0 : i32
    %c0_i32_0 = arith.constant 0 : i32
    %c0_i32_1 = arith.constant 0 : i32
    return %arg1, %c0_i32, %c0_i32_0 : i32, i32, i32
  }
  func.func @transform_3(%arg0: i32, %arg1: i32) -> (i32, i32, i32) {
    %c0_i32 = arith.constant 0 : i32
    %c0_i32_0 = arith.constant 0 : i32
    return %arg1, %arg0, %c0_i32 : i32, i32, i32
  }
}

module attributes {stable_mosaic.version = 11 : i64} {
  func.func @_conv_kernel(%arg0: i32, %arg1: i32, %arg2: memref<256x64xbf16, #tpu.memory_space<vmem>>, %arg3: memref<1x64x32xbf16, #tpu.memory_space<vmem>>, %arg4: memref<1x1x32xf32, #tpu.memory_space<vmem>>, %arg5: memref<1x256x32xbf16, #tpu.memory_space<vmem>>) attributes {dimension_semantics = [#tpu.dimension_semantics<parallel>, #tpu.dimension_semantics<arbitrary>], iteration_bounds = array<i64: 1, 2>, scalar_prefetch = 0 : i64, scratch_operands = 0 : i64, tpu.core_type = #tpu.core_type<tc>, window_params = [{transform_indices = @transform_0, window_bounds = array<i64: 256, 64>}, {transform_indices = @transform_1, window_bounds = array<i64: 1, 64, 32>}, {transform_indices = @transform_2, window_bounds = array<i64: 1, 1, 32>}, {transform_indices = @transform_3, window_bounds = array<i64: 1, 256, 32>}]} {
    %c0 = arith.constant 0 : index
    %c0_0 = arith.constant 0 : index
    %0 = vector.load %arg2[%c0, %c0_0] : memref<256x64xbf16, #tpu.memory_space<vmem>>, vector<256x64xbf16>
    %c0_1 = arith.constant 0 : index
    %c0_2 = arith.constant 0 : index
    %c0_3 = arith.constant 0 : index
    %1 = vector.load %arg3[%c0_1, %c0_2, %c0_3] : memref<1x64x32xbf16, #tpu.memory_space<vmem>>, vector<1x64x32xbf16>
    %2 = vector.shape_cast %1 : vector<1x64x32xbf16> to vector<64x32xbf16>
    %cst = arith.constant dense<0.000000e+00> : vector<256x32xf32>
    %3 = tpu.matmul %0, %2, %cst {dimension_numbers = #tpu.dot_dimension_numbers<[1], [0], [0], [1], [0, 0, 1, 1], [], []>} : vector<256x64xbf16>, vector<64x32xbf16>, vector<256x32xf32> -> vector<256x32xf32>
    %c0_4 = arith.constant 0 : index
    %c0_5 = arith.constant 0 : index
    %c0_6 = arith.constant 0 : index
    %4 = vector.load %arg4[%c0_4, %c0_5, %c0_6] : memref<1x1x32xf32, #tpu.memory_space<vmem>>, vector<1x1x32xf32>
    %5 = vector.shape_cast %4 : vector<1x1x32xf32> to vector<1x32xf32>
    %6 = vector.broadcast %5 : vector<1x32xf32> to vector<256x32xf32>
    %7 = arith.addf %3, %6 : vector<256x32xf32>
    %cst_7 = arith.constant 0.000000e+00 : f32
    %8 = vector.broadcast %cst_7 : f32 to vector<256x32xf32>
    %9 = arith.maximumf %7, %8 : vector<256x32xf32>
    %10 = arith.mulf %9, %9 : vector<256x32xf32>
    %cst_8 = arith.constant dense<0.000000e+00> : vector<256xf32>
    %11 = vector.multi_reduction <add>, %10, %cst_8 [1] : vector<256x32xf32> to vector<256xf32>
    %12 = vector.shape_cast %11 : vector<256xf32> to vector<256x1xf32>
    %cst_9 = arith.constant 9.99999996E-13 : f32
    %13 = vector.broadcast %cst_9 : f32 to vector<256x1xf32>
    %14 = arith.addf %12, %13 : vector<256x1xf32>
    %15 = math.rsqrt %14 : vector<256x1xf32>
    %16 = vector.broadcast %15 : vector<256x1xf32> to vector<256x32xf32>
    %17 = arith.mulf %9, %16 : vector<256x32xf32>
    %18 = arith.truncf %17 : vector<256x32xf32> to vector<256x32xbf16>
    %c0_10 = arith.constant 0 : index
    %c0_11 = arith.constant 0 : index
    %c0_12 = arith.constant 0 : index
    %19 = vector.load %arg5[%c0_10, %c0_11, %c0_12] : memref<1x256x32xbf16, #tpu.memory_space<vmem>>, vector<1x256x32xbf16>
    %20 = vector.shape_cast %19 : vector<1x256x32xbf16> to vector<256x32xbf16>
    %21 = vector.shape_cast %18 : vector<256x32xbf16> to vector<1x256x32xbf16>
    tpu.vector_store %arg5[%c0_10, %c0_11, %c0_12], %21 {strides = array<i32>} : memref<1x256x32xbf16, #tpu.memory_space<vmem>>, vector<1x256x32xbf16>,
    return
  }
  func.func @transform_0(%arg0: i32, %arg1: i32) -> (i32, i32) {
    %c0_i32 = arith.constant 0 : i32
    %c0_i32_0 = arith.constant 0 : i32
    return %arg0, %c0_i32 : i32, i32
  }
  func.func @transform_1(%arg0: i32, %arg1: i32) -> (i32, i32, i32) {
    %c0_i32 = arith.constant 0 : i32
    %c0_i32_0 = arith.constant 0 : i32
    %c0_i32_1 = arith.constant 0 : i32
    return %arg1, %c0_i32, %c0_i32_0 : i32, i32, i32
  }
  func.func @transform_2(%arg0: i32, %arg1: i32) -> (i32, i32, i32) {
    %c0_i32 = arith.constant 0 : i32
    %c0_i32_0 = arith.constant 0 : i32
    %c0_i32_1 = arith.constant 0 : i32
    return %arg1, %c0_i32, %c0_i32_0 : i32, i32, i32
  }
  func.func @transform_3(%arg0: i32, %arg1: i32) -> (i32, i32, i32) {
    %c0_i32 = arith.constant 0 : i32
    %c0_i32_0 = arith.constant 0 : i32
    return %arg1, %arg0, %c0_i32 : i32, i32, i32
  }
}

module attributes {stable_mosaic.version = 11 : i64} {
  func.func @_pool_kernel(%arg0: i32, %arg1: memref<2x16x32xbf16, #tpu.memory_space<vmem>>, %arg2: memref<2x256x32xbf16, #tpu.memory_space<vmem>>, %arg3: memref<2x8x1xf32, #tpu.memory_space<vmem>>, %arg4: memref<2x1x128xf32, #tpu.memory_space<vmem>>, %arg5: memref<2x1x44xf32, #tpu.memory_space<vmem>>) attributes {dimension_semantics = [#tpu.dimension_semantics<parallel>], iteration_bounds = array<i64: 1>, scalar_prefetch = 0 : i64, scratch_operands = 0 : i64, tpu.core_type = #tpu.core_type<tc>, window_params = [{transform_indices = @transform_0, window_bounds = array<i64: 2, 16, 32>}, {transform_indices = @transform_1, window_bounds = array<i64: 2, 256, 32>}, {transform_indices = @transform_2, window_bounds = array<i64: 2, 8, 1>}, {transform_indices = @transform_3, window_bounds = array<i64: 2, 1, 128>}, {transform_indices = @transform_4, window_bounds = array<i64: 2, 1, 44>}]} {
    %c0 = arith.constant 0 : index
    %c0_0 = arith.constant 0 : index
    %c0_1 = arith.constant 0 : index
    %0 = vector.load %arg1[%c0, %c0_0, %c0_1] : memref<2x16x32xbf16, #tpu.memory_space<vmem>>, vector<2x8x32xbf16>
    %1 = vector.shape_cast %0 : vector<2x8x32xbf16> to vector<16x32xbf16>
    %c0_2 = arith.constant 0 : index
    %c0_3 = arith.constant 0 : index
    %c0_4 = arith.constant 0 : index
    %2 = vector.load %arg2[%c0_2, %c0_3, %c0_4] : memref<2x256x32xbf16, #tpu.memory_space<vmem>>, vector<2x128x32xbf16>
    %3 = vector.shape_cast %2 : vector<2x128x32xbf16> to vector<256x32xbf16>
    %cst = arith.constant dense<0.000000e+00> : vector<16x256xf32>
    %4 = tpu.matmul %1, %3, %cst {dimension_numbers = #tpu.dot_dimension_numbers<[1], [1], [0], [0], [0, 0, 1, 0], [], []>} : vector<16x32xbf16>, vector<256x32xbf16>, vector<16x256xf32> -> vector<16x256xf32>
    %c0_5 = arith.constant 0 : index
    %c0_6 = arith.constant 0 : index
    %c0_7 = arith.constant 0 : index
    %5 = vector.load %arg3[%c0_5, %c0_6, %c0_7] : memref<2x8x1xf32, #tpu.memory_space<vmem>>, vector<1x8x1xf32>
    %6 = vector.shape_cast %5 : vector<1x8x1xf32> to vector<8x1xf32>
    %c0_8 = arith.constant 0 : index
    %c0_9 = arith.constant 0 : index
    %c0_10 = arith.constant 0 : index
    %7 = vector.load %arg4[%c0_8, %c0_9, %c0_10] : memref<2x1x128xf32, #tpu.memory_space<vmem>>, vector<1x1x128xf32>
    %8 = vector.shape_cast %7 : vector<1x1x128xf32> to vector<1x128xf32>
    %9 = vector.extract_strided_slice %4 {offsets = [0, 0], sizes = [16, 128], strides = [1, 1]} : vector<16x256xf32> to vector<16x128xf32>
    %10 = vector.broadcast %8 : vector<1x128xf32> to vector<16x128xf32>
    %11 = arith.mulf %9, %10 : vector<16x128xf32>
    %cst_11 = arith.constant 1.000000e+00 : f32
    %12 = vector.broadcast %cst_11 : f32 to vector<16x128xf32>
    %13 = arith.subf %11, %12 : vector<16x128xf32>
    %14 = arith.mulf %13, %13 : vector<16x128xf32>
    %cst_12 = arith.constant -5.000000e+05 : f32
    %15 = vector.broadcast %cst_12 : f32 to vector<16x128xf32>
    %16 = arith.mulf %14, %15 : vector<16x128xf32>
    %17 = math.exp %16 : vector<16x128xf32>
    %18 = vector.broadcast %8 : vector<1x128xf32> to vector<16x128xf32>
    %19 = arith.mulf %17, %18 : vector<16x128xf32>
    %cst_13 = arith.constant dense<0.000000e+00> : vector<16xf32>
    %20 = vector.multi_reduction <add>, %19, %cst_13 [1] : vector<16x128xf32> to vector<16xf32>
    %21 = vector.shape_cast %20 : vector<16xf32> to vector<16x1xf32>
    %cst_14 = arith.constant 0.899999976 : f32
    %22 = vector.broadcast %cst_14 : f32 to vector<16x128xf32>
    %23 = arith.subf %11, %22 : vector<16x128xf32>
    %24 = arith.mulf %23, %23 : vector<16x128xf32>
    %cst_15 = arith.constant -5.000000e+01 : f32
    %25 = vector.broadcast %cst_15 : f32 to vector<16x128xf32>
    %26 = arith.mulf %24, %25 : vector<16x128xf32>
    %27 = math.exp %26 : vector<16x128xf32>
    %28 = vector.broadcast %8 : vector<1x128xf32> to vector<16x128xf32>
    %29 = arith.mulf %27, %28 : vector<16x128xf32>
    %cst_16 = arith.constant dense<0.000000e+00> : vector<16xf32>
    %30 = vector.multi_reduction <add>, %29, %cst_16 [1] : vector<16x128xf32> to vector<16xf32>
    %31 = vector.shape_cast %30 : vector<16xf32> to vector<16x1xf32>
    %cst_17 = arith.constant 0.699999988 : f32
    %32 = vector.broadcast %cst_17 : f32 to vector<16x128xf32>
    %33 = arith.subf %11, %32 : vector<16x128xf32>
    %34 = arith.mulf %33, %33 : vector<16x128xf32>
    %cst_18 = arith.constant -5.000000e+01 : f32
    %35 = vector.broadcast %cst_18 : f32 to vector<16x128xf32>
    %36 = arith.mulf %34, %35 : vector<16x128xf32>
    %37 = math.exp %36 : vector<16x128xf32>
    %38 = vector.broadcast %8 : vector<1x128xf32> to vector<16x128xf32>
    %39 = arith.mulf %37, %38 : vector<16x128xf32>
    %cst_19 = arith.constant dense<0.000000e+00> : vector<16xf32>
    %40 = vector.multi_reduction <add>, %39, %cst_19 [1] : vector<16x128xf32> to vector<16xf32>
    %41 = vector.shape_cast %40 : vector<16xf32> to vector<16x1xf32>
    %cst_20 = arith.constant 5.000000e-01 : f32
    %42 = vector.broadcast %cst_20 : f32 to vector<16x128xf32>
    %43 = arith.subf %11, %42 : vector<16x128xf32>
    %44 = arith.mulf %43, %43 : vector<16x128xf32>
    %cst_21 = arith.constant -5.000000e+01 : f32
    %45 = vector.broadcast %cst_21 : f32 to vector<16x128xf32>
    %46 = arith.mulf %44, %45 : vector<16x128xf32>
    %47 = math.exp %46 : vector<16x128xf32>
    %48 = vector.broadcast %8 : vector<1x128xf32> to vector<16x128xf32>
    %49 = arith.mulf %47, %48 : vector<16x128xf32>
    %cst_22 = arith.constant dense<0.000000e+00> : vector<16xf32>
    %50 = vector.multi_reduction <add>, %49, %cst_22 [1] : vector<16x128xf32> to vector<16xf32>
    %51 = vector.shape_cast %50 : vector<16xf32> to vector<16x1xf32>
    %cst_23 = arith.constant 3.000000e-01 : f32
    %52 = vector.broadcast %cst_23 : f32 to vector<16x128xf32>
    %53 = arith.subf %11, %52 : vector<16x128xf32>
    %54 = arith.mulf %53, %53 : vector<16x128xf32>
    %cst_24 = arith.constant -5.000000e+01 : f32
    %55 = vector.broadcast %cst_24 : f32 to vector<16x128xf32>
    %56 = arith.mulf %54, %55 : vector<16x128xf32>
    %57 = math.exp %56 : vector<16x128xf32>
    %58 = vector.broadcast %8 : vector<1x128xf32> to vector<16x128xf32>
    %59 = arith.mulf %57, %58 : vector<16x128xf32>
    %cst_25 = arith.constant dense<0.000000e+00> : vector<16xf32>
    %60 = vector.multi_reduction <add>, %59, %cst_25 [1] : vector<16x128xf32> to vector<16xf32>
    %61 = vector.shape_cast %60 : vector<16xf32> to vector<16x1xf32>
    %cst_26 = arith.constant 1.000000e-01 : f32
    %62 = vector.broadcast %cst_26 : f32 to vector<16x128xf32>
    %63 = arith.subf %11, %62 : vector<16x128xf32>
    %64 = arith.mulf %63, %63 : vector<16x128xf32>
    %cst_27 = arith.constant -5.000000e+01 : f32
    %65 = vector.broadcast %cst_27 : f32 to vector<16x128xf32>
    %66 = arith.mulf %64, %65 : vector<16x128xf32>
    %67 = math.exp %66 : vector<16x128xf32>
    %68 = vector.broadcast %8 : vector<1x128xf32> to vector<16x128xf32>
    %69 = arith.mulf %67, %68 : vector<16x128xf32>
    %cst_28 = arith.constant dense<0.000000e+00> : vector<16xf32>
    %70 = vector.multi_reduction <add>, %69, %cst_28 [1] : vector<16x128xf32> to vector<16xf32>
    %71 = vector.shape_cast %70 : vector<16xf32> to vector<16x1xf32>
    %cst_29 = arith.constant -1.000000e-01 : f32
    %72 = vector.broadcast %cst_29 : f32 to vector<16x128xf32>
    %73 = arith.subf %11, %72 : vector<16x128xf32>
    %74 = arith.mulf %73, %73 : vector<16x128xf32>
    %cst_30 = arith.constant -5.000000e+01 : f32
    %75 = vector.broadcast %cst_30 : f32 to vector<16x128xf32>
    %76 = arith.mulf %74, %75 : vector<16x128xf32>
    %77 = math.exp %76 : vector<16x128xf32>
    %78 = vector.broadcast %8 : vector<1x128xf32> to vector<16x128xf32>
    %79 = arith.mulf %77, %78 : vector<16x128xf32>
    %cst_31 = arith.constant dense<0.000000e+00> : vector<16xf32>
    %80 = vector.multi_reduction <add>, %79, %cst_31 [1] : vector<16x128xf32> to vector<16xf32>
    %81 = vector.shape_cast %80 : vector<16xf32> to vector<16x1xf32>
    %cst_32 = arith.constant -3.000000e-01 : f32
    %82 = vector.broadcast %cst_32 : f32 to vector<16x128xf32>
    %83 = arith.subf %11, %82 : vector<16x128xf32>
    %84 = arith.mulf %83, %83 : vector<16x128xf32>
    %cst_33 = arith.constant -5.000000e+01 : f32
    %85 = vector.broadcast %cst_33 : f32 to vector<16x128xf32>
    %86 = arith.mulf %84, %85 : vector<16x128xf32>
    %87 = math.exp %86 : vector<16x128xf32>
    %88 = vector.broadcast %8 : vector<1x128xf32> to vector<16x128xf32>
    %89 = arith.mulf %87, %88 : vector<16x128xf32>
    %cst_34 = arith.constant dense<0.000000e+00> : vector<16xf32>
    %90 = vector.multi_reduction <add>, %89, %cst_34 [1] : vector<16x128xf32> to vector<16xf32>
    %91 = vector.shape_cast %90 : vector<16xf32> to vector<16x1xf32>
    %cst_35 = arith.constant -5.000000e-01 : f32
    %92 = vector.broadcast %cst_35 : f32 to vector<16x128xf32>
    %93 = arith.subf %11, %92 : vector<16x128xf32>
    %94 = arith.mulf %93, %93 : vector<16x128xf32>
    %cst_36 = arith.constant -5.000000e+01 : f32
    %95 = vector.broadcast %cst_36 : f32 to vector<16x128xf32>
    %96 = arith.mulf %94, %95 : vector<16x128xf32>
    %97 = math.exp %96 : vector<16x128xf32>
    %98 = vector.broadcast %8 : vector<1x128xf32> to vector<16x128xf32>
    %99 = arith.mulf %97, %98 : vector<16x128xf32>
    %cst_37 = arith.constant dense<0.000000e+00> : vector<16xf32>
    %100 = vector.multi_reduction <add>, %99, %cst_37 [1] : vector<16x128xf32> to vector<16xf32>
    %101 = vector.shape_cast %100 : vector<16xf32> to vector<16x1xf32>
    %cst_38 = arith.constant -0.699999988 : f32
    %102 = vector.broadcast %cst_38 : f32 to vector<16x128xf32>
    %103 = arith.subf %11, %102 : vector<16x128xf32>
    %104 = arith.mulf %103, %103 : vector<16x128xf32>
    %cst_39 = arith.constant -5.000000e+01 : f32
    %105 = vector.broadcast %cst_39 : f32 to vector<16x128xf32>
    %106 = arith.mulf %104, %105 : vector<16x128xf32>
    %107 = math.exp %106 : vector<16x128xf32>
    %108 = vector.broadcast %8 : vector<1x128xf32> to vector<16x128xf32>
    %109 = arith.mulf %107, %108 : vector<16x128xf32>
    %cst_40 = arith.constant dense<0.000000e+00> : vector<16xf32>
    %110 = vector.multi_reduction <add>, %109, %cst_40 [1] : vector<16x128xf32> to vector<16xf32>
    %111 = vector.shape_cast %110 : vector<16xf32> to vector<16x1xf32>
    %cst_41 = arith.constant -0.899999976 : f32
    %112 = vector.broadcast %cst_41 : f32 to vector<16x128xf32>
    %113 = arith.subf %11, %112 : vector<16x128xf32>
    %114 = arith.mulf %113, %113 : vector<16x128xf32>
    %cst_42 = arith.constant -5.000000e+01 : f32
    %115 = vector.broadcast %cst_42 : f32 to vector<16x128xf32>
    %116 = arith.mulf %114, %115 : vector<16x128xf32>
    %117 = math.exp %116 : vector<16x128xf32>
    %118 = vector.broadcast %8 : vector<1x128xf32> to vector<16x128xf32>
    %119 = arith.mulf %117, %118 : vector<16x128xf32>
    %cst_43 = arith.constant dense<0.000000e+00> : vector<16xf32>
    %120 = vector.multi_reduction <add>, %119, %cst_43 [1] : vector<16x128xf32> to vector<16xf32>
    %121 = vector.shape_cast %120 : vector<16xf32> to vector<16x1xf32>
    %122 = tpu.concatenate %21, %31, %41, %51, %61, %71, %81, %91, %101, %111, %121 in 1 : vector<16x1xf32>, vector<16x1xf32>, vector<16x1xf32>, vector<16x1xf32>, vector<16x1xf32>, vector<16x1xf32>, vector<16x1xf32>, vector<16x1xf32>, vector<16x1xf32>, vector<16x1xf32>, vector<16x1xf32> -> vector<16x11xf32>
    %cst_44 = arith.constant 1.000000e-10 : f32
    %123 = vector.broadcast %cst_44 : f32 to vector<16x11xf32>
    %124 = arith.maximumf %122, %123 : vector<16x11xf32>
    %125 = math.log %124 : vector<16x11xf32>
    %cst_45 = arith.constant 0.00999999977 : f32
    %126 = vector.broadcast %cst_45 : f32 to vector<16x11xf32>
    %127 = arith.mulf %125, %126 : vector<16x11xf32>
    %128 = vector.extract_strided_slice %127 {offsets = [0, 0], sizes = [8, 11], strides = [1, 1]} : vector<16x11xf32> to vector<8x11xf32>
    %129 = vector.broadcast %6 : vector<8x1xf32> to vector<8x11xf32>
    %130 = arith.mulf %128, %129 : vector<8x11xf32>
    %cst_46 = arith.constant dense<0.000000e+00> : vector<11xf32>
    %131 = vector.multi_reduction <add>, %130, %cst_46 [0] : vector<8x11xf32> to vector<11xf32>
    %132 = vector.shape_cast %131 : vector<11xf32> to vector<1x11xf32>
    %133 = vector.extract_strided_slice %127 {offsets = [8, 0], sizes = [8, 11], strides = [1, 1]} : vector<16x11xf32> to vector<8x11xf32>
    %134 = vector.broadcast %6 : vector<8x1xf32> to vector<8x11xf32>
    %135 = arith.mulf %133, %134 : vector<8x11xf32>
    %cst_47 = arith.constant dense<0.000000e+00> : vector<11xf32>
    %136 = vector.multi_reduction <add>, %135, %cst_47 [0] : vector<8x11xf32> to vector<11xf32>
    %137 = vector.shape_cast %136 : vector<11xf32> to vector<1x11xf32>
    %138 = vector.extract_strided_slice %4 {offsets = [0, 128], sizes = [16, 128], strides = [1, 1]} : vector<16x256xf32> to vector<16x128xf32>
    %139 = vector.broadcast %8 : vector<1x128xf32> to vector<16x128xf32>
    %140 = arith.mulf %138, %139 : vector<16x128xf32>
    %cst_48 = arith.constant 1.000000e+00 : f32
    %141 = vector.broadcast %cst_48 : f32 to vector<16x128xf32>
    %142 = arith.subf %140, %141 : vector<16x128xf32>
    %143 = arith.mulf %142, %142 : vector<16x128xf32>
    %cst_49 = arith.constant -5.000000e+05 : f32
    %144 = vector.broadcast %cst_49 : f32 to vector<16x128xf32>
    %145 = arith.mulf %143, %144 : vector<16x128xf32>
    %146 = math.exp %145 : vector<16x128xf32>
    %147 = vector.broadcast %8 : vector<1x128xf32> to vector<16x128xf32>
    %148 = arith.mulf %146, %147 : vector<16x128xf32>
    %cst_50 = arith.constant dense<0.000000e+00> : vector<16xf32>
    %149 = vector.multi_reduction <add>, %148, %cst_50 [1] : vector<16x128xf32> to vector<16xf32>
    %150 = vector.shape_cast %149 : vector<16xf32> to vector<16x1xf32>
    %cst_51 = arith.constant 0.899999976 : f32
    %151 = vector.broadcast %cst_51 : f32 to vector<16x128xf32>
    %152 = arith.subf %140, %151 : vector<16x128xf32>
    %153 = arith.mulf %152, %152 : vector<16x128xf32>
    %cst_52 = arith.constant -5.000000e+01 : f32
    %154 = vector.broadcast %cst_52 : f32 to vector<16x128xf32>
    %155 = arith.mulf %153, %154 : vector<16x128xf32>
    %156 = math.exp %155 : vector<16x128xf32>
    %157 = vector.broadcast %8 : vector<1x128xf32> to vector<16x128xf32>
    %158 = arith.mulf %156, %157 : vector<16x128xf32>
    %cst_53 = arith.constant dense<0.000000e+00> : vector<16xf32>
    %159 = vector.multi_reduction <add>, %158, %cst_53 [1] : vector<16x128xf32> to vector<16xf32>
    %160 = vector.shape_cast %159 : vector<16xf32> to vector<16x1xf32>
    %cst_54 = arith.constant 0.699999988 : f32
    %161 = vector.broadcast %cst_54 : f32 to vector<16x128xf32>
    %162 = arith.subf %140, %161 : vector<16x128xf32>
    %163 = arith.mulf %162, %162 : vector<16x128xf32>
    %cst_55 = arith.constant -5.000000e+01 : f32
    %164 = vector.broadcast %cst_55 : f32 to vector<16x128xf32>
    %165 = arith.mulf %163, %164 : vector<16x128xf32>
    %166 = math.exp %165 : vector<16x128xf32>
    %167 = vector.broadcast %8 : vector<1x128xf32> to vector<16x128xf32>
    %168 = arith.mulf %166, %167 : vector<16x128xf32>
    %cst_56 = arith.constant dense<0.000000e+00> : vector<16xf32>
    %169 = vector.multi_reduction <add>, %168, %cst_56 [1] : vector<16x128xf32> to vector<16xf32>
    %170 = vector.shape_cast %169 : vector<16xf32> to vector<16x1xf32>
    %cst_57 = arith.constant 5.000000e-01 : f32
    %171 = vector.broadcast %cst_57 : f32 to vector<16x128xf32>
    %172 = arith.subf %140, %171 : vector<16x128xf32>
    %173 = arith.mulf %172, %172 : vector<16x128xf32>
    %cst_58 = arith.constant -5.000000e+01 : f32
    %174 = vector.broadcast %cst_58 : f32 to vector<16x128xf32>
    %175 = arith.mulf %173, %174 : vector<16x128xf32>
    %176 = math.exp %175 : vector<16x128xf32>
    %177 = vector.broadcast %8 : vector<1x128xf32> to vector<16x128xf32>
    %178 = arith.mulf %176, %177 : vector<16x128xf32>
    %cst_59 = arith.constant dense<0.000000e+00> : vector<16xf32>
    %179 = vector.multi_reduction <add>, %178, %cst_59 [1] : vector<16x128xf32> to vector<16xf32>
    %180 = vector.shape_cast %179 : vector<16xf32> to vector<16x1xf32>
    %cst_60 = arith.constant 3.000000e-01 : f32
    %181 = vector.broadcast %cst_60 : f32 to vector<16x128xf32>
    %182 = arith.subf %140, %181 : vector<16x128xf32>
    %183 = arith.mulf %182, %182 : vector<16x128xf32>
    %cst_61 = arith.constant -5.000000e+01 : f32
    %184 = vector.broadcast %cst_61 : f32 to vector<16x128xf32>
    %185 = arith.mulf %183, %184 : vector<16x128xf32>
    %186 = math.exp %185 : vector<16x128xf32>
    %187 = vector.broadcast %8 : vector<1x128xf32> to vector<16x128xf32>
    %188 = arith.mulf %186, %187 : vector<16x128xf32>
    %cst_62 = arith.constant dense<0.000000e+00> : vector<16xf32>
    %189 = vector.multi_reduction <add>, %188, %cst_62 [1] : vector<16x128xf32> to vector<16xf32>
    %190 = vector.shape_cast %189 : vector<16xf32> to vector<16x1xf32>
    %cst_63 = arith.constant 1.000000e-01 : f32
    %191 = vector.broadcast %cst_63 : f32 to vector<16x128xf32>
    %192 = arith.subf %140, %191 : vector<16x128xf32>
    %193 = arith.mulf %192, %192 : vector<16x128xf32>
    %cst_64 = arith.constant -5.000000e+01 : f32
    %194 = vector.broadcast %cst_64 : f32 to vector<16x128xf32>
    %195 = arith.mulf %193, %194 : vector<16x128xf32>
    %196 = math.exp %195 : vector<16x128xf32>
    %197 = vector.broadcast %8 : vector<1x128xf32> to vector<16x128xf32>
    %198 = arith.mulf %196, %197 : vector<16x128xf32>
    %cst_65 = arith.constant dense<0.000000e+00> : vector<16xf32>
    %199 = vector.multi_reduction <add>, %198, %cst_65 [1] : vector<16x128xf32> to vector<16xf32>
    %200 = vector.shape_cast %199 : vector<16xf32> to vector<16x1xf32>
    %cst_66 = arith.constant -1.000000e-01 : f32
    %201 = vector.broadcast %cst_66 : f32 to vector<16x128xf32>
    %202 = arith.subf %140, %201 : vector<16x128xf32>
    %203 = arith.mulf %202, %202 : vector<16x128xf32>
    %cst_67 = arith.constant -5.000000e+01 : f32
    %204 = vector.broadcast %cst_67 : f32 to vector<16x128xf32>
    %205 = arith.mulf %203, %204 : vector<16x128xf32>
    %206 = math.exp %205 : vector<16x128xf32>
    %207 = vector.broadcast %8 : vector<1x128xf32> to vector<16x128xf32>
    %208 = arith.mulf %206, %207 : vector<16x128xf32>
    %cst_68 = arith.constant dense<0.000000e+00> : vector<16xf32>
    %209 = vector.multi_reduction <add>, %208, %cst_68 [1] : vector<16x128xf32> to vector<16xf32>
    %210 = vector.shape_cast %209 : vector<16xf32> to vector<16x1xf32>
    %cst_69 = arith.constant -3.000000e-01 : f32
    %211 = vector.broadcast %cst_69 : f32 to vector<16x128xf32>
    %212 = arith.subf %140, %211 : vector<16x128xf32>
    %213 = arith.mulf %212, %212 : vector<16x128xf32>
    %cst_70 = arith.constant -5.000000e+01 : f32
    %214 = vector.broadcast %cst_70 : f32 to vector<16x128xf32>
    %215 = arith.mulf %213, %214 : vector<16x128xf32>
    %216 = math.exp %215 : vector<16x128xf32>
    %217 = vector.broadcast %8 : vector<1x128xf32> to vector<16x128xf32>
    %218 = arith.mulf %216, %217 : vector<16x128xf32>
    %cst_71 = arith.constant dense<0.000000e+00> : vector<16xf32>
    %219 = vector.multi_reduction <add>, %218, %cst_71 [1] : vector<16x128xf32> to vector<16xf32>
    %220 = vector.shape_cast %219 : vector<16xf32> to vector<16x1xf32>
    %cst_72 = arith.constant -5.000000e-01 : f32
    %221 = vector.broadcast %cst_72 : f32 to vector<16x128xf32>
    %222 = arith.subf %140, %221 : vector<16x128xf32>
    %223 = arith.mulf %222, %222 : vector<16x128xf32>
    %cst_73 = arith.constant -5.000000e+01 : f32
    %224 = vector.broadcast %cst_73 : f32 to vector<16x128xf32>
    %225 = arith.mulf %223, %224 : vector<16x128xf32>
    %226 = math.exp %225 : vector<16x128xf32>
    %227 = vector.broadcast %8 : vector<1x128xf32> to vector<16x128xf32>
    %228 = arith.mulf %226, %227 : vector<16x128xf32>
    %cst_74 = arith.constant dense<0.000000e+00> : vector<16xf32>
    %229 = vector.multi_reduction <add>, %228, %cst_74 [1] : vector<16x128xf32> to vector<16xf32>
    %230 = vector.shape_cast %229 : vector<16xf32> to vector<16x1xf32>
    %cst_75 = arith.constant -0.699999988 : f32
    %231 = vector.broadcast %cst_75 : f32 to vector<16x128xf32>
    %232 = arith.subf %140, %231 : vector<16x128xf32>
    %233 = arith.mulf %232, %232 : vector<16x128xf32>
    %cst_76 = arith.constant -5.000000e+01 : f32
    %234 = vector.broadcast %cst_76 : f32 to vector<16x128xf32>
    %235 = arith.mulf %233, %234 : vector<16x128xf32>
    %236 = math.exp %235 : vector<16x128xf32>
    %237 = vector.broadcast %8 : vector<1x128xf32> to vector<16x128xf32>
    %238 = arith.mulf %236, %237 : vector<16x128xf32>
    %cst_77 = arith.constant dense<0.000000e+00> : vector<16xf32>
    %239 = vector.multi_reduction <add>, %238, %cst_77 [1] : vector<16x128xf32> to vector<16xf32>
    %240 = vector.shape_cast %239 : vector<16xf32> to vector<16x1xf32>
    %cst_78 = arith.constant -0.899999976 : f32
    %241 = vector.broadcast %cst_78 : f32 to vector<16x128xf32>
    %242 = arith.subf %140, %241 : vector<16x128xf32>
    %243 = arith.mulf %242, %242 : vector<16x128xf32>
    %cst_79 = arith.constant -5.000000e+01 : f32
    %244 = vector.broadcast %cst_79 : f32 to vector<16x128xf32>
    %245 = arith.mulf %243, %244 : vector<16x128xf32>
    %246 = math.exp %245 : vector<16x128xf32>
    %247 = vector.broadcast %8 : vector<1x128xf32> to vector<16x128xf32>
    %248 = arith.mulf %246, %247 : vector<16x128xf32>
    %cst_80 = arith.constant dense<0.000000e+00> : vector<16xf32>
    %249 = vector.multi_reduction <add>, %248, %cst_80 [1] : vector<16x128xf32> to vector<16xf32>
    %250 = vector.shape_cast %249 : vector<16xf32> to vector<16x1xf32>
    %251 = tpu.concatenate %150, %160, %170, %180, %190, %200, %210, %220, %230, %240, %250 in 1 : vector<16x1xf32>, vector<16x1xf32>, vector<16x1xf32>, vector<16x1xf32>, vector<16x1xf32>, vector<16x1xf32>, vector<16x1xf32>, vector<16x1xf32>, vector<16x1xf32>, vector<16x1xf32>, vector<16x1xf32> -> vector<16x11xf32>
    %cst_81 = arith.constant 1.000000e-10 : f32
    %252 = vector.broadcast %cst_81 : f32 to vector<16x11xf32>
    %253 = arith.maximumf %251, %252 : vector<16x11xf32>
    %254 = math.log %253 : vector<16x11xf32>
    %cst_82 = arith.constant 0.00999999977 : f32
    %255 = vector.broadcast %cst_82 : f32 to vector<16x11xf32>
    %256 = arith.mulf %254, %255 : vector<16x11xf32>
    %257 = vector.extract_strided_slice %256 {offsets = [0, 0], sizes = [8, 11], strides = [1, 1]} : vector<16x11xf32> to vector<8x11xf32>
    %258 = vector.broadcast %6 : vector<8x1xf32> to vector<8x11xf32>
    %259 = arith.mulf %257, %258 : vector<8x11xf32>
    %cst_83 = arith.constant dense<0.000000e+00> : vector<11xf32>
    %260 = vector.multi_reduction <add>, %259, %cst_83 [0] : vector<8x11xf32> to vector<11xf32>
    %261 = vector.shape_cast %260 : vector<11xf32> to vector<1x11xf32>
    %262 = vector.extract_strided_slice %256 {offsets = [8, 0], sizes = [8, 11], strides = [1, 1]} : vector<16x11xf32> to vector<8x11xf32>
    %263 = vector.broadcast %6 : vector<8x1xf32> to vector<8x11xf32>
    %264 = arith.mulf %262, %263 : vector<8x11xf32>
    %cst_84 = arith.constant dense<0.000000e+00> : vector<11xf32>
    %265 = vector.multi_reduction <add>, %264, %cst_84 [0] : vector<8x11xf32> to vector<11xf32>
    %266 = vector.shape_cast %265 : vector<11xf32> to vector<1x11xf32>
    %267 = tpu.concatenate %132, %261, %137, %266 in 1 : vector<1x11xf32>, vector<1x11xf32>, vector<1x11xf32>, vector<1x11xf32> -> vector<1x44xf32>
    %268 = vector.shape_cast %267 : vector<1x44xf32> to vector<1x1x44xf32>
    %c0_85 = arith.constant 0 : index
    %c0_86 = arith.constant 0 : index
    %c0_87 = arith.constant 0 : index
    %269 = vector.load %arg5[%c0_85, %c0_86, %c0_87] : memref<2x1x44xf32, #tpu.memory_space<vmem>>, vector<1x1x44xf32>
    tpu.vector_store %arg5[%c0_85, %c0_86, %c0_87], %268 {strides = array<i32>} : memref<2x1x44xf32, #tpu.memory_space<vmem>>, vector<1x1x44xf32>,
    %c0_88 = arith.constant 0 : index
    %c8 = arith.constant 8 : index
    %c0_89 = arith.constant 0 : index
    %270 = vector.load %arg1[%c0_88, %c8, %c0_89] : memref<2x16x32xbf16, #tpu.memory_space<vmem>>, vector<2x8x32xbf16>
    %271 = vector.shape_cast %270 : vector<2x8x32xbf16> to vector<16x32xbf16>
    %c0_90 = arith.constant 0 : index
    %c128 = arith.constant 128 : index
    %c0_91 = arith.constant 0 : index
    %272 = vector.load %arg2[%c0_90, %c128, %c0_91] : memref<2x256x32xbf16, #tpu.memory_space<vmem>>, vector<2x128x32xbf16>
    %273 = vector.shape_cast %272 : vector<2x128x32xbf16> to vector<256x32xbf16>
    %cst_92 = arith.constant dense<0.000000e+00> : vector<16x256xf32>
    %274 = tpu.matmul %271, %273, %cst_92 {dimension_numbers = #tpu.dot_dimension_numbers<[1], [1], [0], [0], [0, 0, 1, 0], [], []>} : vector<16x32xbf16>, vector<256x32xbf16>, vector<16x256xf32> -> vector<16x256xf32>
    %c1 = arith.constant 1 : index
    %c0_93 = arith.constant 0 : index
    %c0_94 = arith.constant 0 : index
    %275 = vector.load %arg3[%c1, %c0_93, %c0_94] : memref<2x8x1xf32, #tpu.memory_space<vmem>>, vector<1x8x1xf32>
    %276 = vector.shape_cast %275 : vector<1x8x1xf32> to vector<8x1xf32>
    %c1_95 = arith.constant 1 : index
    %c0_96 = arith.constant 0 : index
    %c0_97 = arith.constant 0 : index
    %277 = vector.load %arg4[%c1_95, %c0_96, %c0_97] : memref<2x1x128xf32, #tpu.memory_space<vmem>>, vector<1x1x128xf32>
    %278 = vector.shape_cast %277 : vector<1x1x128xf32> to vector<1x128xf32>
    %279 = vector.extract_strided_slice %274 {offsets = [0, 0], sizes = [16, 128], strides = [1, 1]} : vector<16x256xf32> to vector<16x128xf32>
    %280 = vector.broadcast %278 : vector<1x128xf32> to vector<16x128xf32>
    %281 = arith.mulf %279, %280 : vector<16x128xf32>
    %cst_98 = arith.constant 1.000000e+00 : f32
    %282 = vector.broadcast %cst_98 : f32 to vector<16x128xf32>
    %283 = arith.subf %281, %282 : vector<16x128xf32>
    %284 = arith.mulf %283, %283 : vector<16x128xf32>
    %cst_99 = arith.constant -5.000000e+05 : f32
    %285 = vector.broadcast %cst_99 : f32 to vector<16x128xf32>
    %286 = arith.mulf %284, %285 : vector<16x128xf32>
    %287 = math.exp %286 : vector<16x128xf32>
    %288 = vector.broadcast %278 : vector<1x128xf32> to vector<16x128xf32>
    %289 = arith.mulf %287, %288 : vector<16x128xf32>
    %cst_100 = arith.constant dense<0.000000e+00> : vector<16xf32>
    %290 = vector.multi_reduction <add>, %289, %cst_100 [1] : vector<16x128xf32> to vector<16xf32>
    %291 = vector.shape_cast %290 : vector<16xf32> to vector<16x1xf32>
    %cst_101 = arith.constant 0.899999976 : f32
    %292 = vector.broadcast %cst_101 : f32 to vector<16x128xf32>
    %293 = arith.subf %281, %292 : vector<16x128xf32>
    %294 = arith.mulf %293, %293 : vector<16x128xf32>
    %cst_102 = arith.constant -5.000000e+01 : f32
    %295 = vector.broadcast %cst_102 : f32 to vector<16x128xf32>
    %296 = arith.mulf %294, %295 : vector<16x128xf32>
    %297 = math.exp %296 : vector<16x128xf32>
    %298 = vector.broadcast %278 : vector<1x128xf32> to vector<16x128xf32>
    %299 = arith.mulf %297, %298 : vector<16x128xf32>
    %cst_103 = arith.constant dense<0.000000e+00> : vector<16xf32>
    %300 = vector.multi_reduction <add>, %299, %cst_103 [1] : vector<16x128xf32> to vector<16xf32>
    %301 = vector.shape_cast %300 : vector<16xf32> to vector<16x1xf32>
    %cst_104 = arith.constant 0.699999988 : f32
    %302 = vector.broadcast %cst_104 : f32 to vector<16x128xf32>
    %303 = arith.subf %281, %302 : vector<16x128xf32>
    %304 = arith.mulf %303, %303 : vector<16x128xf32>
    %cst_105 = arith.constant -5.000000e+01 : f32
    %305 = vector.broadcast %cst_105 : f32 to vector<16x128xf32>
    %306 = arith.mulf %304, %305 : vector<16x128xf32>
    %307 = math.exp %306 : vector<16x128xf32>
    %308 = vector.broadcast %278 : vector<1x128xf32> to vector<16x128xf32>
    %309 = arith.mulf %307, %308 : vector<16x128xf32>
    %cst_106 = arith.constant dense<0.000000e+00> : vector<16xf32>
    %310 = vector.multi_reduction <add>, %309, %cst_106 [1] : vector<16x128xf32> to vector<16xf32>
    %311 = vector.shape_cast %310 : vector<16xf32> to vector<16x1xf32>
    %cst_107 = arith.constant 5.000000e-01 : f32
    %312 = vector.broadcast %cst_107 : f32 to vector<16x128xf32>
    %313 = arith.subf %281, %312 : vector<16x128xf32>
    %314 = arith.mulf %313, %313 : vector<16x128xf32>
    %cst_108 = arith.constant -5.000000e+01 : f32
    %315 = vector.broadcast %cst_108 : f32 to vector<16x128xf32>
    %316 = arith.mulf %314, %315 : vector<16x128xf32>
    %317 = math.exp %316 : vector<16x128xf32>
    %318 = vector.broadcast %278 : vector<1x128xf32> to vector<16x128xf32>
    %319 = arith.mulf %317, %318 : vector<16x128xf32>
    %cst_109 = arith.constant dense<0.000000e+00> : vector<16xf32>
    %320 = vector.multi_reduction <add>, %319, %cst_109 [1] : vector<16x128xf32> to vector<16xf32>
    %321 = vector.shape_cast %320 : vector<16xf32> to vector<16x1xf32>
    %cst_110 = arith.constant 3.000000e-01 : f32
    %322 = vector.broadcast %cst_110 : f32 to vector<16x128xf32>
    %323 = arith.subf %281, %322 : vector<16x128xf32>
    %324 = arith.mulf %323, %323 : vector<16x128xf32>
    %cst_111 = arith.constant -5.000000e+01 : f32
    %325 = vector.broadcast %cst_111 : f32 to vector<16x128xf32>
    %326 = arith.mulf %324, %325 : vector<16x128xf32>
    %327 = math.exp %326 : vector<16x128xf32>
    %328 = vector.broadcast %278 : vector<1x128xf32> to vector<16x128xf32>
    %329 = arith.mulf %327, %328 : vector<16x128xf32>
    %cst_112 = arith.constant dense<0.000000e+00> : vector<16xf32>
    %330 = vector.multi_reduction <add>, %329, %cst_112 [1] : vector<16x128xf32> to vector<16xf32>
    %331 = vector.shape_cast %330 : vector<16xf32> to vector<16x1xf32>
    %cst_113 = arith.constant 1.000000e-01 : f32
    %332 = vector.broadcast %cst_113 : f32 to vector<16x128xf32>
    %333 = arith.subf %281, %332 : vector<16x128xf32>
    %334 = arith.mulf %333, %333 : vector<16x128xf32>
    %cst_114 = arith.constant -5.000000e+01 : f32
    %335 = vector.broadcast %cst_114 : f32 to vector<16x128xf32>
    %336 = arith.mulf %334, %335 : vector<16x128xf32>
    %337 = math.exp %336 : vector<16x128xf32>
    %338 = vector.broadcast %278 : vector<1x128xf32> to vector<16x128xf32>
    %339 = arith.mulf %337, %338 : vector<16x128xf32>
    %cst_115 = arith.constant dense<0.000000e+00> : vector<16xf32>
    %340 = vector.multi_reduction <add>, %339, %cst_115 [1] : vector<16x128xf32> to vector<16xf32>
    %341 = vector.shape_cast %340 : vector<16xf32> to vector<16x1xf32>
    %cst_116 = arith.constant -1.000000e-01 : f32
    %342 = vector.broadcast %cst_116 : f32 to vector<16x128xf32>
    %343 = arith.subf %281, %342 : vector<16x128xf32>
    %344 = arith.mulf %343, %343 : vector<16x128xf32>
    %cst_117 = arith.constant -5.000000e+01 : f32
    %345 = vector.broadcast %cst_117 : f32 to vector<16x128xf32>
    %346 = arith.mulf %344, %345 : vector<16x128xf32>
    %347 = math.exp %346 : vector<16x128xf32>
    %348 = vector.broadcast %278 : vector<1x128xf32> to vector<16x128xf32>
    %349 = arith.mulf %347, %348 : vector<16x128xf32>
    %cst_118 = arith.constant dense<0.000000e+00> : vector<16xf32>
    %350 = vector.multi_reduction <add>, %349, %cst_118 [1] : vector<16x128xf32> to vector<16xf32>
    %351 = vector.shape_cast %350 : vector<16xf32> to vector<16x1xf32>
    %cst_119 = arith.constant -3.000000e-01 : f32
    %352 = vector.broadcast %cst_119 : f32 to vector<16x128xf32>
    %353 = arith.subf %281, %352 : vector<16x128xf32>
    %354 = arith.mulf %353, %353 : vector<16x128xf32>
    %cst_120 = arith.constant -5.000000e+01 : f32
    %355 = vector.broadcast %cst_120 : f32 to vector<16x128xf32>
    %356 = arith.mulf %354, %355 : vector<16x128xf32>
    %357 = math.exp %356 : vector<16x128xf32>
    %358 = vector.broadcast %278 : vector<1x128xf32> to vector<16x128xf32>
    %359 = arith.mulf %357, %358 : vector<16x128xf32>
    %cst_121 = arith.constant dense<0.000000e+00> : vector<16xf32>
    %360 = vector.multi_reduction <add>, %359, %cst_121 [1] : vector<16x128xf32> to vector<16xf32>
    %361 = vector.shape_cast %360 : vector<16xf32> to vector<16x1xf32>
    %cst_122 = arith.constant -5.000000e-01 : f32
    %362 = vector.broadcast %cst_122 : f32 to vector<16x128xf32>
    %363 = arith.subf %281, %362 : vector<16x128xf32>
    %364 = arith.mulf %363, %363 : vector<16x128xf32>
    %cst_123 = arith.constant -5.000000e+01 : f32
    %365 = vector.broadcast %cst_123 : f32 to vector<16x128xf32>
    %366 = arith.mulf %364, %365 : vector<16x128xf32>
    %367 = math.exp %366 : vector<16x128xf32>
    %368 = vector.broadcast %278 : vector<1x128xf32> to vector<16x128xf32>
    %369 = arith.mulf %367, %368 : vector<16x128xf32>
    %cst_124 = arith.constant dense<0.000000e+00> : vector<16xf32>
    %370 = vector.multi_reduction <add>, %369, %cst_124 [1] : vector<16x128xf32> to vector<16xf32>
    %371 = vector.shape_cast %370 : vector<16xf32> to vector<16x1xf32>
    %cst_125 = arith.constant -0.699999988 : f32
    %372 = vector.broadcast %cst_125 : f32 to vector<16x128xf32>
    %373 = arith.subf %281, %372 : vector<16x128xf32>
    %374 = arith.mulf %373, %373 : vector<16x128xf32>
    %cst_126 = arith.constant -5.000000e+01 : f32
    %375 = vector.broadcast %cst_126 : f32 to vector<16x128xf32>
    %376 = arith.mulf %374, %375 : vector<16x128xf32>
    %377 = math.exp %376 : vector<16x128xf32>
    %378 = vector.broadcast %278 : vector<1x128xf32> to vector<16x128xf32>
    %379 = arith.mulf %377, %378 : vector<16x128xf32>
    %cst_127 = arith.constant dense<0.000000e+00> : vector<16xf32>
    %380 = vector.multi_reduction <add>, %379, %cst_127 [1] : vector<16x128xf32> to vector<16xf32>
    %381 = vector.shape_cast %380 : vector<16xf32> to vector<16x1xf32>
    %cst_128 = arith.constant -0.899999976 : f32
    %382 = vector.broadcast %cst_128 : f32 to vector<16x128xf32>
    %383 = arith.subf %281, %382 : vector<16x128xf32>
    %384 = arith.mulf %383, %383 : vector<16x128xf32>
    %cst_129 = arith.constant -5.000000e+01 : f32
    %385 = vector.broadcast %cst_129 : f32 to vector<16x128xf32>
    %386 = arith.mulf %384, %385 : vector<16x128xf32>
    %387 = math.exp %386 : vector<16x128xf32>
    %388 = vector.broadcast %278 : vector<1x128xf32> to vector<16x128xf32>
    %389 = arith.mulf %387, %388 : vector<16x128xf32>
    %cst_130 = arith.constant dense<0.000000e+00> : vector<16xf32>
    %390 = vector.multi_reduction <add>, %389, %cst_130 [1] : vector<16x128xf32> to vector<16xf32>
    %391 = vector.shape_cast %390 : vector<16xf32> to vector<16x1xf32>
    %392 = tpu.concatenate %291, %301, %311, %321, %331, %341, %351, %361, %371, %381, %391 in 1 : vector<16x1xf32>, vector<16x1xf32>, vector<16x1xf32>, vector<16x1xf32>, vector<16x1xf32>, vector<16x1xf32>, vector<16x1xf32>, vector<16x1xf32>, vector<16x1xf32>, vector<16x1xf32>, vector<16x1xf32> -> vector<16x11xf32>
    %cst_131 = arith.constant 1.000000e-10 : f32
    %393 = vector.broadcast %cst_131 : f32 to vector<16x11xf32>
    %394 = arith.maximumf %392, %393 : vector<16x11xf32>
    %395 = math.log %394 : vector<16x11xf32>
    %cst_132 = arith.constant 0.00999999977 : f32
    %396 = vector.broadcast %cst_132 : f32 to vector<16x11xf32>
    %397 = arith.mulf %395, %396 : vector<16x11xf32>
    %398 = vector.extract_strided_slice %397 {offsets = [0, 0], sizes = [8, 11], strides = [1, 1]} : vector<16x11xf32> to vector<8x11xf32>
    %399 = vector.broadcast %276 : vector<8x1xf32> to vector<8x11xf32>
    %400 = arith.mulf %398, %399 : vector<8x11xf32>
    %cst_133 = arith.constant dense<0.000000e+00> : vector<11xf32>
    %401 = vector.multi_reduction <add>, %400, %cst_133 [0] : vector<8x11xf32> to vector<11xf32>
    %402 = vector.shape_cast %401 : vector<11xf32> to vector<1x11xf32>
    %403 = vector.extract_strided_slice %397 {offsets = [8, 0], sizes = [8, 11], strides = [1, 1]} : vector<16x11xf32> to vector<8x11xf32>
    %404 = vector.broadcast %276 : vector<8x1xf32> to vector<8x11xf32>
    %405 = arith.mulf %403, %404 : vector<8x11xf32>
    %cst_134 = arith.constant dense<0.000000e+00> : vector<11xf32>
    %406 = vector.multi_reduction <add>, %405, %cst_134 [0] : vector<8x11xf32> to vector<11xf32>
    %407 = vector.shape_cast %406 : vector<11xf32> to vector<1x11xf32>
    %408 = vector.extract_strided_slice %274 {offsets = [0, 128], sizes = [16, 128], strides = [1, 1]} : vector<16x256xf32> to vector<16x128xf32>
    %409 = vector.broadcast %278 : vector<1x128xf32> to vector<16x128xf32>
    %410 = arith.mulf %408, %409 : vector<16x128xf32>
    %cst_135 = arith.constant 1.000000e+00 : f32
    %411 = vector.broadcast %cst_135 : f32 to vector<16x128xf32>
    %412 = arith.subf %410, %411 : vector<16x128xf32>
    %413 = arith.mulf %412, %412 : vector<16x128xf32>
    %cst_136 = arith.constant -5.000000e+05 : f32
    %414 = vector.broadcast %cst_136 : f32 to vector<16x128xf32>
    %415 = arith.mulf %413, %414 : vector<16x128xf32>
    %416 = math.exp %415 : vector<16x128xf32>
    %417 = vector.broadcast %278 : vector<1x128xf32> to vector<16x128xf32>
    %418 = arith.mulf %416, %417 : vector<16x128xf32>
    %cst_137 = arith.constant dense<0.000000e+00> : vector<16xf32>
    %419 = vector.multi_reduction <add>, %418, %cst_137 [1] : vector<16x128xf32> to vector<16xf32>
    %420 = vector.shape_cast %419 : vector<16xf32> to vector<16x1xf32>
    %cst_138 = arith.constant 0.899999976 : f32
    %421 = vector.broadcast %cst_138 : f32 to vector<16x128xf32>
    %422 = arith.subf %410, %421 : vector<16x128xf32>
    %423 = arith.mulf %422, %422 : vector<16x128xf32>
    %cst_139 = arith.constant -5.000000e+01 : f32
    %424 = vector.broadcast %cst_139 : f32 to vector<16x128xf32>
    %425 = arith.mulf %423, %424 : vector<16x128xf32>
    %426 = math.exp %425 : vector<16x128xf32>
    %427 = vector.broadcast %278 : vector<1x128xf32> to vector<16x128xf32>
    %428 = arith.mulf %426, %427 : vector<16x128xf32>
    %cst_140 = arith.constant dense<0.000000e+00> : vector<16xf32>
    %429 = vector.multi_reduction <add>, %428, %cst_140 [1] : vector<16x128xf32> to vector<16xf32>
    %430 = vector.shape_cast %429 : vector<16xf32> to vector<16x1xf32>
    %cst_141 = arith.constant 0.699999988 : f32
    %431 = vector.broadcast %cst_141 : f32 to vector<16x128xf32>
    %432 = arith.subf %410, %431 : vector<16x128xf32>
    %433 = arith.mulf %432, %432 : vector<16x128xf32>
    %cst_142 = arith.constant -5.000000e+01 : f32
    %434 = vector.broadcast %cst_142 : f32 to vector<16x128xf32>
    %435 = arith.mulf %433, %434 : vector<16x128xf32>
    %436 = math.exp %435 : vector<16x128xf32>
    %437 = vector.broadcast %278 : vector<1x128xf32> to vector<16x128xf32>
    %438 = arith.mulf %436, %437 : vector<16x128xf32>
    %cst_143 = arith.constant dense<0.000000e+00> : vector<16xf32>
    %439 = vector.multi_reduction <add>, %438, %cst_143 [1] : vector<16x128xf32> to vector<16xf32>
    %440 = vector.shape_cast %439 : vector<16xf32> to vector<16x1xf32>
    %cst_144 = arith.constant 5.000000e-01 : f32
    %441 = vector.broadcast %cst_144 : f32 to vector<16x128xf32>
    %442 = arith.subf %410, %441 : vector<16x128xf32>
    %443 = arith.mulf %442, %442 : vector<16x128xf32>
    %cst_145 = arith.constant -5.000000e+01 : f32
    %444 = vector.broadcast %cst_145 : f32 to vector<16x128xf32>
    %445 = arith.mulf %443, %444 : vector<16x128xf32>
    %446 = math.exp %445 : vector<16x128xf32>
    %447 = vector.broadcast %278 : vector<1x128xf32> to vector<16x128xf32>
    %448 = arith.mulf %446, %447 : vector<16x128xf32>
    %cst_146 = arith.constant dense<0.000000e+00> : vector<16xf32>
    %449 = vector.multi_reduction <add>, %448, %cst_146 [1] : vector<16x128xf32> to vector<16xf32>
    %450 = vector.shape_cast %449 : vector<16xf32> to vector<16x1xf32>
    %cst_147 = arith.constant 3.000000e-01 : f32
    %451 = vector.broadcast %cst_147 : f32 to vector<16x128xf32>
    %452 = arith.subf %410, %451 : vector<16x128xf32>
    %453 = arith.mulf %452, %452 : vector<16x128xf32>
    %cst_148 = arith.constant -5.000000e+01 : f32
    %454 = vector.broadcast %cst_148 : f32 to vector<16x128xf32>
    %455 = arith.mulf %453, %454 : vector<16x128xf32>
    %456 = math.exp %455 : vector<16x128xf32>
    %457 = vector.broadcast %278 : vector<1x128xf32> to vector<16x128xf32>
    %458 = arith.mulf %456, %457 : vector<16x128xf32>
    %cst_149 = arith.constant dense<0.000000e+00> : vector<16xf32>
    %459 = vector.multi_reduction <add>, %458, %cst_149 [1] : vector<16x128xf32> to vector<16xf32>
    %460 = vector.shape_cast %459 : vector<16xf32> to vector<16x1xf32>
    %cst_150 = arith.constant 1.000000e-01 : f32
    %461 = vector.broadcast %cst_150 : f32 to vector<16x128xf32>
    %462 = arith.subf %410, %461 : vector<16x128xf32>
    %463 = arith.mulf %462, %462 : vector<16x128xf32>
    %cst_151 = arith.constant -5.000000e+01 : f32
    %464 = vector.broadcast %cst_151 : f32 to vector<16x128xf32>
    %465 = arith.mulf %463, %464 : vector<16x128xf32>
    %466 = math.exp %465 : vector<16x128xf32>
    %467 = vector.broadcast %278 : vector<1x128xf32> to vector<16x128xf32>
    %468 = arith.mulf %466, %467 : vector<16x128xf32>
    %cst_152 = arith.constant dense<0.000000e+00> : vector<16xf32>
    %469 = vector.multi_reduction <add>, %468, %cst_152 [1] : vector<16x128xf32> to vector<16xf32>
    %470 = vector.shape_cast %469 : vector<16xf32> to vector<16x1xf32>
    %cst_153 = arith.constant -1.000000e-01 : f32
    %471 = vector.broadcast %cst_153 : f32 to vector<16x128xf32>
    %472 = arith.subf %410, %471 : vector<16x128xf32>
    %473 = arith.mulf %472, %472 : vector<16x128xf32>
    %cst_154 = arith.constant -5.000000e+01 : f32
    %474 = vector.broadcast %cst_154 : f32 to vector<16x128xf32>
    %475 = arith.mulf %473, %474 : vector<16x128xf32>
    %476 = math.exp %475 : vector<16x128xf32>
    %477 = vector.broadcast %278 : vector<1x128xf32> to vector<16x128xf32>
    %478 = arith.mulf %476, %477 : vector<16x128xf32>
    %cst_155 = arith.constant dense<0.000000e+00> : vector<16xf32>
    %479 = vector.multi_reduction <add>, %478, %cst_155 [1] : vector<16x128xf32> to vector<16xf32>
    %480 = vector.shape_cast %479 : vector<16xf32> to vector<16x1xf32>
    %cst_156 = arith.constant -3.000000e-01 : f32
    %481 = vector.broadcast %cst_156 : f32 to vector<16x128xf32>
    %482 = arith.subf %410, %481 : vector<16x128xf32>
    %483 = arith.mulf %482, %482 : vector<16x128xf32>
    %cst_157 = arith.constant -5.000000e+01 : f32
    %484 = vector.broadcast %cst_157 : f32 to vector<16x128xf32>
    %485 = arith.mulf %483, %484 : vector<16x128xf32>
    %486 = math.exp %485 : vector<16x128xf32>
    %487 = vector.broadcast %278 : vector<1x128xf32> to vector<16x128xf32>
    %488 = arith.mulf %486, %487 : vector<16x128xf32>
    %cst_158 = arith.constant dense<0.000000e+00> : vector<16xf32>
    %489 = vector.multi_reduction <add>, %488, %cst_158 [1] : vector<16x128xf32> to vector<16xf32>
    %490 = vector.shape_cast %489 : vector<16xf32> to vector<16x1xf32>
    %cst_159 = arith.constant -5.000000e-01 : f32
    %491 = vector.broadcast %cst_159 : f32 to vector<16x128xf32>
    %492 = arith.subf %410, %491 : vector<16x128xf32>
    %493 = arith.mulf %492, %492 : vector<16x128xf32>
    %cst_160 = arith.constant -5.000000e+01 : f32
    %494 = vector.broadcast %cst_160 : f32 to vector<16x128xf32>
    %495 = arith.mulf %493, %494 : vector<16x128xf32>
    %496 = math.exp %495 : vector<16x128xf32>
    %497 = vector.broadcast %278 : vector<1x128xf32> to vector<16x128xf32>
    %498 = arith.mulf %496, %497 : vector<16x128xf32>
    %cst_161 = arith.constant dense<0.000000e+00> : vector<16xf32>
    %499 = vector.multi_reduction <add>, %498, %cst_161 [1] : vector<16x128xf32> to vector<16xf32>
    %500 = vector.shape_cast %499 : vector<16xf32> to vector<16x1xf32>
    %cst_162 = arith.constant -0.699999988 : f32
    %501 = vector.broadcast %cst_162 : f32 to vector<16x128xf32>
    %502 = arith.subf %410, %501 : vector<16x128xf32>
    %503 = arith.mulf %502, %502 : vector<16x128xf32>
    %cst_163 = arith.constant -5.000000e+01 : f32
    %504 = vector.broadcast %cst_163 : f32 to vector<16x128xf32>
    %505 = arith.mulf %503, %504 : vector<16x128xf32>
    %506 = math.exp %505 : vector<16x128xf32>
    %507 = vector.broadcast %278 : vector<1x128xf32> to vector<16x128xf32>
    %508 = arith.mulf %506, %507 : vector<16x128xf32>
    %cst_164 = arith.constant dense<0.000000e+00> : vector<16xf32>
    %509 = vector.multi_reduction <add>, %508, %cst_164 [1] : vector<16x128xf32> to vector<16xf32>
    %510 = vector.shape_cast %509 : vector<16xf32> to vector<16x1xf32>
    %cst_165 = arith.constant -0.899999976 : f32
    %511 = vector.broadcast %cst_165 : f32 to vector<16x128xf32>
    %512 = arith.subf %410, %511 : vector<16x128xf32>
    %513 = arith.mulf %512, %512 : vector<16x128xf32>
    %cst_166 = arith.constant -5.000000e+01 : f32
    %514 = vector.broadcast %cst_166 : f32 to vector<16x128xf32>
    %515 = arith.mulf %513, %514 : vector<16x128xf32>
    %516 = math.exp %515 : vector<16x128xf32>
    %517 = vector.broadcast %278 : vector<1x128xf32> to vector<16x128xf32>
    %518 = arith.mulf %516, %517 : vector<16x128xf32>
    %cst_167 = arith.constant dense<0.000000e+00> : vector<16xf32>
    %519 = vector.multi_reduction <add>, %518, %cst_167 [1] : vector<16x128xf32> to vector<16xf32>
    %520 = vector.shape_cast %519 : vector<16xf32> to vector<16x1xf32>
    %521 = tpu.concatenate %420, %430, %440, %450, %460, %470, %480, %490, %500, %510, %520 in 1 : vector<16x1xf32>, vector<16x1xf32>, vector<16x1xf32>, vector<16x1xf32>, vector<16x1xf32>, vector<16x1xf32>, vector<16x1xf32>, vector<16x1xf32>, vector<16x1xf32>, vector<16x1xf32>, vector<16x1xf32> -> vector<16x11xf32>
    %cst_168 = arith.constant 1.000000e-10 : f32
    %522 = vector.broadcast %cst_168 : f32 to vector<16x11xf32>
    %523 = arith.maximumf %521, %522 : vector<16x11xf32>
    %524 = math.log %523 : vector<16x11xf32>
    %cst_169 = arith.constant 0.00999999977 : f32
    %525 = vector.broadcast %cst_169 : f32 to vector<16x11xf32>
    %526 = arith.mulf %524, %525 : vector<16x11xf32>
    %527 = vector.extract_strided_slice %526 {offsets = [0, 0], sizes = [8, 11], strides = [1, 1]} : vector<16x11xf32> to vector<8x11xf32>
    %528 = vector.broadcast %276 : vector<8x1xf32> to vector<8x11xf32>
    %529 = arith.mulf %527, %528 : vector<8x11xf32>
    %cst_170 = arith.constant dense<0.000000e+00> : vector<11xf32>
    %530 = vector.multi_reduction <add>, %529, %cst_170 [0] : vector<8x11xf32> to vector<11xf32>
    %531 = vector.shape_cast %530 : vector<11xf32> to vector<1x11xf32>
    %532 = vector.extract_strided_slice %526 {offsets = [8, 0], sizes = [8, 11], strides = [1, 1]} : vector<16x11xf32> to vector<8x11xf32>
    %533 = vector.broadcast %276 : vector<8x1xf32> to vector<8x11xf32>
    %534 = arith.mulf %532, %533 : vector<8x11xf32>
    %cst_171 = arith.constant dense<0.000000e+00> : vector<11xf32>
    %535 = vector.multi_reduction <add>, %534, %cst_171 [0] : vector<8x11xf32> to vector<11xf32>
    %536 = vector.shape_cast %535 : vector<11xf32> to vector<1x11xf32>
    %537 = tpu.concatenate %402, %531, %407, %536 in 1 : vector<1x11xf32>, vector<1x11xf32>, vector<1x11xf32>, vector<1x11xf32> -> vector<1x44xf32>
    %538 = vector.shape_cast %537 : vector<1x44xf32> to vector<1x1x44xf32>
    %c1_172 = arith.constant 1 : index
    %c0_173 = arith.constant 0 : index
    %c0_174 = arith.constant 0 : index
    %539 = vector.load %arg5[%c1_172, %c0_173, %c0_174] : memref<2x1x44xf32, #tpu.memory_space<vmem>>, vector<1x1x44xf32>
    tpu.vector_store %arg5[%c1_172, %c0_173, %c0_174], %538 {strides = array<i32>} : memref<2x1x44xf32, #tpu.memory_space<vmem>>, vector<1x1x44xf32>,
    return
  }
  func.func @transform_0(%arg0: i32) -> (i32, i32, i32) {
    %c0_i32 = arith.constant 0 : i32
    %c0_i32_0 = arith.constant 0 : i32
    %c0_i32_1 = arith.constant 0 : i32
    return %c0_i32, %arg0, %c0_i32_0 : i32, i32, i32
  }
  func.func @transform_1(%arg0: i32) -> (i32, i32, i32) {
    %c0_i32 = arith.constant 0 : i32
    %c0_i32_0 = arith.constant 0 : i32
    %c0_i32_1 = arith.constant 0 : i32
    return %c0_i32, %arg0, %c0_i32_0 : i32, i32, i32
  }
  func.func @transform_2(%arg0: i32) -> (i32, i32, i32) {
    %c0_i32 = arith.constant 0 : i32
    %c0_i32_0 = arith.constant 0 : i32
    %c0_i32_1 = arith.constant 0 : i32
    return %arg0, %c0_i32, %c0_i32_0 : i32, i32, i32
  }
  func.func @transform_3(%arg0: i32) -> (i32, i32, i32) {
    %c0_i32 = arith.constant 0 : i32
    %c0_i32_0 = arith.constant 0 : i32
    %c0_i32_1 = arith.constant 0 : i32
    return %arg0, %c0_i32, %c0_i32_0 : i32, i32, i32
  }
  func.func @transform_4(%arg0: i32) -> (i32, i32, i32) {
    %c0_i32 = arith.constant 0 : i32
    %c0_i32_0 = arith.constant 0 : i32
    %c0_i32_1 = arith.constant 0 : i32
    return %arg0, %c0_i32, %c0_i32_0 : i32, i32, i32
  }
}

</mosaic_0001>

<bundles_post_ra>
// kernel: conv_knrm_forward.3
= control target key start
LH: loop header
LB: loop body
LE: loop exit
PB: predicated region body
PF: predicated region fallthrough
CT: control target
= control target key end

     0   :  { %s578_s12 = smov 0   ;;  %s580_s13 = smov 0   ;;  %s622_s0 = inlined_call_operand.vmem [shape: bf16[16,64], index: 0, kind: input, shape index: {}]   ;;  %s623_s1 = inlined_call_operand.vmem [shape: bf16[2,64,32], index: 1, kind: input, shape index: {}]   ;;  %s624_s2 = inlined_call_operand.vmem [shape: f32[2,1,32], index: 2, kind: input, shape index: {}]   ;;  %s625_s3 = inlined_call_operand.vmem [shape: bf16[2,16,32], index: 3, kind: output, shape index: {}]  }
   0x1   :  { %s582_s14 = smov 0  }
   0x2 LB: > { %s22_s15 = sadd.s32 1, %s550_s13  ;;  %p460_p0 = scmp.ge.s32.totalorder %s554_s14, 1  ;;  %s554_s14 = sphi %s582_s14, %s13_s14   ;;  %s550_s13 = sphi %s580_s13, %s627_s13   ;;  %s546_s12 = sphi %s578_s12, %s626_s12  }
   0x3   : > { %p23_p1 = scmp.ge.s32.totalorder %s22_s15, 2  ;;  %p170_p2 = scmp.lt.s32.totalorder %s554_s14, 3 }
   0x5   : > { %s629_s15 = smov (%p23_p1, %s22_s15), 0  ;;  %p171_p3 = pnand %p460_p0, %p170_p2 }
   0x6   : > { %p212_p4 = scmp.lt.s32.totalorder (!%p171_p3), %s546_s12, 1  ;;  %v556_v0 = vmov (!%p171_p3), 0.0   ;;  %vm557_vm0 = vmmov (!%p171_p3), 0   ;;  %v527_v5 = vld [vmem:[%s622_s0] sm:$0xff] (!%p171_p3)   ;;  %vm277_vm1 = vcmask (!%p171_p3), 523264   ;;  %vm326_vm2 = vcmask (!%p171_p3), 261120  }
   0x7   : > { %174 = sbr.rel (%p171_p3) target bundleno = 416 (0x1a0), region = 32  ;;  %485 = vmatprep.subr.bf16.mxu0 (!%p171_p3), %v556_v0  ;;  %493 = vmatprep.mubr.msk.bf16.mxu0 (!%p171_p3), %vm557_vm0, %v556_v0  ;;  %vm347_vm3 = vcmask (!%p171_p3), 257024  }
   0xe   : > { %s631_s12 = smov (!%p212_p4, %s546_s12), 1 }
   0xf   : > { %s476_s16 = sshll.u32 %s631_s12, 5  ;;  %s219_s24 = scalar_lea.vmem %s624_s2, %s631_s12 }
  0x10   : > { %s216_s19 = scalar_lea.vmem %s623_s1, %s476_s16  ;;  %v465_v6 = vld [vmem:[%s219_s24] ss:$0 sm:$0xff]  ;;  %s477_s25 = sshll.u32 %s631_s12, 3 }
  0x11   : > { %v523_v1 = vld [vmem:[%s216_s19] sm:$0xff]   ;;  %v524_v2 = vld [vmem:[%s216_s19 + $0x8] sm:$0xff]   ;;  %v525_v3 = vld [vmem:[%s216_s19 + $0x10] sm:$0xff]   ;;  %s228_s28 = scalar_lea.vmem %s625_s3, %s477_s25 }
  0x12   : > { %486 = vmatpush3.bf16.msra.mxu0 %v523_v1  ;;  %v526_v4 = vld [vmem:[%s216_s19 + $0x18] sm:$0xff]  }
  0x13   : > { %487 = vmatprep.subr.bf16.mxu0 %v556_v0 }
  0x16   : > { %488 = vmatpush3.bf16.msra.mxu0 %v524_v2 }
  0x17   : > { %489 = vmatprep.subr.bf16.mxu0 %v556_v0 }
  0x1a   : > { %490 = vmatpush3.bf16.msra.mxu0 %v525_v3 }
  0x1b   : > { %491 = vmatprep.subr.bf16.mxu0 %v556_v0 }
  0x1e   : > { %492 = vmatpush3.bf16.msra.mxu0 %v526_v4 }
  0x21   : > { %494 = vmatmul.mubr.msk.bf16.vlgmr.msra.gmra.mrb[0].mxu0 %vm277_vm1, %v527_v5 }
  0xf4   : > { %v315_v7 = vpop.f32.mrb[0].mxu0 }
  0xf5   : > { %v316_v8 = vadd.f32 %v465_v6, %v315_v7  ;;  %v495_v9 = vpop.f32.mrb[1].mxu0 }
  0xf6   : > { %v318_v10 = vpop.f32.mrb[2].mxu0 }
  0xf7   : > { %v322_v11 = vmax.f32 %v316_v8, 0.0  ;;  %v319_v12 = vadd.f32 %v465_v6, %v318_v10  ;;  %v496_v13 = vpop.f32.mrb[3].mxu0 }
  0xf9   : > { %v323_v14 = vmax.f32 %v319_v12, 0.0  ;;  %v324_v15 = vmul.f32 %v322_v11, %v322_v11 }
  0xfb   : > { %v327_v16 = vsel %vm326_vm2, %v324_v15, 0.0  ;;  %v325_v17 = vmul.f32 %v323_v14, %v323_v14 }
  0xfc   : > { %328 = vadd.xlane.f32.xlu0 %v327_v16 }
  0xfd   : > { %v330_v18 = vsel %vm326_vm2, %v325_v17, 0.0 }
 0x100   : > { %331 = vadd.xlane.f32.xlu0 %v330_v18 }
 0x189   : > { %v329_v19 = vpop.xlane.xlu0 %328 }
 0x18a   : > { %v333_v20 = vadd.f32 1e-12, %v329_v19 }
 0x18c   : > { %528 = vrsqrt.f32 %v333_v20 }
 0x18d   : > { %v332_v21 = vpop.xlane.xlu0 %331 }
 0x18e   : > { %v334_v22 = vadd.f32 1e-12, %v332_v21 }
 0x190   : > { %530 = vrsqrt.f32 %v334_v22 }
 0x196   : > { %v529_v23 = vpop.eup %528 }
 0x197   : > { %v337_v24 = vmul.f32 %v529_v23, %v322_v11 }
 0x199   : > { %v478_v25 = vpack.c.bf16 %v337_v24, %v337_v24 }
 0x19a   : > { %v531_v26 = vpop.eup %530 }
 0x19b   : > { %348 = vst.msk [vmem:[%s228_s28] sm:$0xf] %vm347_vm3, %v478_v25  ;;  %v338_v27 = vmul.f32 %v531_v26, %v323_v14 }
 0x19d   : > { %v479_v28 = vpack.c.bf16 %v338_v27, %v338_v27 }
 0x19f   : > { %349 = vst.msk [vmem:[%s228_s28 + $0x4] sm:$0xf] %vm347_vm3, %v479_v28 }
 0x1a0 PF: > { %s13_s14 = sadd.s32 1, %s554_s14   ;;  %s626_s12 = smov %s550_s13 }
 0x1a1   : > { %p10_p5 = scmp.ge.s32.totalorder %s13_s14, 4   ;;  %s627_s13 = smov %s629_s15 }
 0x1a3   :  { %12 = sbr.rel (!%p10_p5) target bundleno = 2 (0x2), region = 68 }

// kernel: conv_knrm_forward.4
= control target key start
LH: loop header
LB: loop body
LE: loop exit
PB: predicated region body
PF: predicated region fallthrough
CT: control target
= control target key end

     0   :  { %s1450_s12 = smov 0   ;;  %s1452_s13 = smov 0   ;;  %s1853_s0 = inlined_call_operand.vmem [shape: bf16[256,64], index: 0, kind: input, shape index: {}]   ;;  %s1854_s1 = inlined_call_operand.vmem [shape: bf16[2,64,32], index: 1, kind: input, shape index: {}]   ;;  %s1855_s2 = inlined_call_operand.vmem [shape: f32[2,1,32], index: 2, kind: input, shape index: {}]   ;;  %s1856_s3 = inlined_call_operand.vmem [shape: bf16[2,256,32], index: 3, kind: output, shape index: {}]  }
   0x1   :  { %s1454_s14 = smov 0  }
   0x2 LB: > { %s22_s15 = sadd.s32 1, %s1424_s13  ;;  %p1120_p0 = scmp.ge.s32.totalorder %s1428_s14, 1  ;;  %s1428_s14 = sphi %s1454_s14, %s13_s14   ;;  %s1424_s13 = sphi %s1452_s13, %s1858_s13   ;;  %s1420_s12 = sphi %s1450_s12, %s1857_s12  }
   0x3   : > { %p23_p1 = scmp.ge.s32.totalorder %s22_s15, 2  ;;  %p170_p2 = scmp.lt.s32.totalorder %s1428_s14, 3 }
   0x5   : > { %s1860_s15 = smov (%p23_p1, %s22_s15), 0  ;;  %p171_p3 = pnand %p1120_p0, %p170_p2 }
   0x6   : > { %p212_p4 = scmp.lt.s32.totalorder (!%p171_p3), %s1420_s12, 1  ;;  %v1326_v0 = vld [vmem:[%s1853_s0] sm:$0xff] (!%p171_p3)   ;;  %vm382_vm0 = vcmask (!%p171_p3), 523264   ;;  %v1328_v6 = vld [vmem:[%s1853_s0 + $0x8] sm:$0xff] (!%p171_p3)   ;;  %v1330_v8 = vld [vmem:[%s1853_s0 + $0x10] sm:$0xff] (!%p171_p3)   ;;  %vm656_vm1 = vcmask (!%p171_p3), 261120  }
   0x7   : > { %174 = sbr.rel (%p171_p3) target bundleno = 474 (0x1da), region = 32  ;;  %v1327_v1 = vld [vmem:[%s1853_s0 + $0x40] sm:$0xff] (!%p171_p3)   ;;  %1258 = vmatprep.mubr.msk.bf16.mxu0 (!%p171_p3), %vm382_vm0, %v1326_v0  ;;  %v1329_v7 = vld [vmem:[%s1853_s0 + $0x48] sm:$0xff] (!%p171_p3)   ;;  %v1332_v9 = vld [vmem:[%s1853_s0 + $0x50] sm:$0xff] (!%p171_p3)   ;;  %vm977_vm2 = vcmask (!%p171_p3), 257024  }
   0x8   : > { %1274 = vmatprep.mubr.msk.bf16.mxu1 (!%p171_p3), %vm382_vm0, %v1327_v1  ;;  %v1331_v10 = vld [vmem:[%s1853_s0 + $0x18] sm:$0xff] (!%p171_p3)   ;;  %v1334_v12 = vld [vmem:[%s1853_s0 + $0x20] sm:$0xff] (!%p171_p3)   ;;  %v1335_v14 = vld [vmem:[%s1853_s0 + $0x28] sm:$0xff] (!%p171_p3)  }
   0x9   : > { %v1333_v11 = vld [vmem:[%s1853_s0 + $0x58] sm:$0xff] (!%p171_p3)   ;;  %v1336_v13 = vld [vmem:[%s1853_s0 + $0x60] sm:$0xff] (!%p171_p3)   ;;  %v1337_v15 = vld [vmem:[%s1853_s0 + $0x68] sm:$0xff] (!%p171_p3)  }
   0xa   : > { %v1338_v16 = vld [vmem:[%s1853_s0 + $0x30] sm:$0xff] (!%p171_p3)   ;;  %v1339_v18 = vld [vmem:[%s1853_s0 + $0x38] sm:$0xff] (!%p171_p3)  }
   0xb   : > { %v1340_v17 = vld [vmem:[%s1853_s0 + $0x70] sm:$0xff] (!%p171_p3)   ;;  %v1341_v19 = vld [vmem:[%s1853_s0 + $0x78] sm:$0xff] (!%p171_p3)  }
   0xe   : > { %s1862_s12 = smov (!%p212_p4, %s1420_s12), 1 }
   0xf   : > { %s1196_s20 = sshll.u32 %s1862_s12, 5  ;;  %s219_s4 = scalar_lea.vmem %s1855_s2, %s1862_s12 }
  0x10   : > { %s216_s23 = scalar_lea.vmem %s1854_s1, %s1196_s20  ;;  %v1542_v20 = vld [vmem:[%s219_s4] ss:$0 sm:$0xff]  ;;  %s1197_s5 = sshll.u32 %s1862_s12, 7 }
  0x11   : > { %v1322_v2 = vld [vmem:[%s216_s23] sm:$0xff]   ;;  %v1323_v3 = vld [vmem:[%s216_s23 + $0x8] sm:$0xff]   ;;  %v1324_v4 = vld [vmem:[%s216_s23 + $0x10] sm:$0xff]   ;;  %s1747_s8 = scalar_lea.vmem %s1856_s3, %s1197_s5 }
  0x12   : > { %1250 = vmatprep.subr.bf16.mxu0 %v1322_v2  ;;  %1290 = vmatprep.subr.bf16.mxu1 %v1322_v2  ;;  %v1325_v5 = vld [vmem:[%s216_s23 + $0x18] sm:$0xff]  }
  0x13   : > { %1251 = vmatpush3.bf16.msra.mxu0 %v1322_v2  ;;  %1294 = vmatpush3.bf16.msra.mxu1 %v1322_v2 }
  0x14   : > { %1252 = vmatprep.subr.bf16.mxu0 %v1323_v3  ;;  %1291 = vmatprep.subr.bf16.mxu1 %v1323_v3 }
  0x17   : > { %1253 = vmatpush3.bf16.msra.mxu0 %v1323_v3  ;;  %1295 = vmatpush3.bf16.msra.mxu1 %v1323_v3 }
  0x18   : > { %1254 = vmatprep.subr.bf16.mxu0 %v1324_v4  ;;  %1292 = vmatprep.subr.bf16.mxu1 %v1324_v4 }
  0x1b   : > { %1255 = vmatpush3.bf16.msra.mxu0 %v1324_v4  ;;  %1296 = vmatpush3.bf16.msra.mxu1 %v1324_v4 }
  0x1c   : > { %1256 = vmatprep.subr.bf16.mxu0 %v1325_v5  ;;  %1293 = vmatprep.subr.bf16.mxu1 %v1325_v5 }
  0x1f   : > { %1257 = vmatpush3.bf16.msra.mxu0 %v1325_v5  ;;  %1297 = vmatpush3.bf16.msra.mxu1 %v1325_v5 }
  0x22   : > { %1259 = vmatmul.mubr.msk.bf16.vlgmr.msra.gmra.mrb[0].mxu0 %vm382_vm0, %v1328_v6  ;;  %1275 = vmatmul.mubr.msk.bf16.vlgmr.msra.gmra.mrb[0].mxu1 %vm382_vm0, %v1329_v7 }
  0x23   : > { %1262 = vmatprep.mubr.msk.bf16.mxu0 %vm382_vm0, %v1330_v8  ;;  %1278 = vmatprep.mubr.msk.bf16.mxu1 %vm382_vm0, %v1332_v9 }
  0x2a   : > { %1263 = vmatmul.mubr.msk.bf16.gmra.mrb[4].mxu0 %vm382_vm0, %v1331_v10  ;;  %1279 = vmatmul.mubr.msk.bf16.gmra.mrb[4].mxu1 %vm382_vm0, %v1333_v11 }
  0x2b   : > { %1266 = vmatprep.mubr.msk.bf16.mxu0 %vm382_vm0, %v1334_v12  ;;  %1282 = vmatprep.mubr.msk.bf16.mxu1 %vm382_vm0, %v1336_v13 }
  0x32   : > { %1267 = vmatmul.mubr.msk.bf16.gmra.mrb[8].mxu0 %vm382_vm0, %v1335_v14  ;;  %1283 = vmatmul.mubr.msk.bf16.gmra.mrb[8].mxu1 %vm382_vm0, %v1337_v15 }
  0x33   : > { %1270 = vmatprep.mubr.msk.bf16.mxu0 %vm382_vm0, %v1338_v16  ;;  %1286 = vmatprep.mubr.msk.bf16.mxu1 %vm382_vm0, %v1340_v17 }
  0x3a   : > { %1271 = vmatmul.mubr.msk.bf16.gmra.mrb[12].mxu0 %vm382_vm0, %v1339_v18  ;;  %1287 = vmatmul.mubr.msk.bf16.gmra.mrb[12].mxu1 %vm382_vm0, %v1341_v19 }
  0xf5   : > { %v1260_v21 = vpop.f32.mrb[0].mxu0  ;;  %v1276_v22 = vpop.f32.mrb[0].mxu1 }
  0xf6   : > { %v474_v23 = vadd.f32 %v1260_v21, %v1542_v20  ;;  %v538_v24 = vadd.f32 %v1276_v22, %v1542_v20  ;;  %v465_v25 = vpop.f32.mrb[1].mxu0  ;;  %v529_v26 = vpop.f32.mrb[1].mxu1 }
  0xf7   : > { %v466_v27 = vadd.f32 %v1542_v20, %v465_v25  ;;  %v530_v28 = vadd.f32 %v1542_v20, %v529_v26  ;;  %v1261_v29 = vpop.f32.mrb[2].mxu0  ;;  %v1277_v30 = vpop.f32.mrb[2].mxu1 }
  0xf8   : > { %v1548_v31 = vmax.f32 %v474_v23, 0.0  ;;  %v1550_v32 = vmax.f32 %v538_v24, 0.0  ;;  %v477_v33 = vadd.f32 %v1261_v29, %v1542_v20  ;;  %v541_v34 = vadd.f32 %v1277_v30, %v1542_v20  ;;  %v468_v35 = vpop.f32.mrb[3].mxu0  ;;  %v532_v36 = vpop.f32.mrb[3].mxu1 }
  0xf9   : > { %v1554_v37 = vmax.f32 %v466_v27, 0.0  ;;  %v469_v38 = vadd.f32 %v1542_v20, %v468_v35  ;;  %v533_v39 = vadd.f32 %v1542_v20, %v532_v36  ;;  %v1564_v43 = vmax.f32 %v530_v28, 0.0 }
  0xfa   : > { %v1558_v40 = vmax.f32 %v477_v33, 0.0  ;;  %v642_v41 = vmul.f32 %v1550_v32, %v1550_v32  ;;  %v626_v42 = vmul.f32 %v1548_v31, %v1548_v31  ;;  %v1566_v44 = vmax.f32 %v541_v34, 0.0 }
  0xfb   : > { %v624_v48 = vmul.f32 %v1554_v37, %v1554_v37  ;;  %v1574_v51 = vmax.f32 %v469_v38, 0.0  ;;  %v1576_v52 = vmax.f32 %v533_v39, 0.0  ;;  %v640_v61 = vmul.f32 %v1564_v43, %v1564_v43 }
  0xfc   : > { %v711_v45 = vsel %vm656_vm1, %v642_v41, 0.0  ;;  %v663_v46 = vsel %vm656_vm1, %v626_v42, 0.0  ;;  %v627_v47 = vmul.f32 %v1558_v40, %v1558_v40  ;;  %v643_v60 = vmul.f32 %v1566_v44, %v1566_v44 }
  0xfd   : > { %712 = vadd.xlane.f32.xlu0 %v711_v45  ;;  %664 = vadd.xlane.f32.xlu1 %v663_v46  ;;  %v1264_v49 = vpop.f32.mrb[4].mxu0  ;;  %v1280_v50 = vpop.f32.mrb[4].mxu1  ;;  %v657_v0 = vsel %vm656_vm1, %v624_v48, 0.0  ;;  %v641_v7 = vmul.f32 %v1576_v52, %v1576_v52  ;;  %v625_v8 = vmul.f32 %v1574_v51, %v1574_v51  ;;  %v705_v12 = vsel %vm656_vm1, %v640_v61, 0.0 }
  0xfe   : > { %v490_v53 = vadd.f32 %v1264_v49, %v1542_v20  ;;  %v481_v54 = vpop.f32.mrb[5].mxu0  ;;  %v554_v55 = vadd.f32 %v1280_v50, %v1542_v20  ;;  %v545_v56 = vpop.f32.mrb[5].mxu1  ;;  %v666_v63 = vsel %vm656_vm1, %v627_v47, 0.0  ;;  %v714_v11 = vsel %vm656_vm1, %v643_v60, 0.0 }
  0xff   : > { %v482_v57 = vadd.f32 %v1542_v20, %v481_v54  ;;  %v1265_v58 = vpop.f32.mrb[6].mxu0  ;;  %v546_v59 = vadd.f32 %v1542_v20, %v545_v56  ;;  %v1281_v62 = vpop.f32.mrb[6].mxu1  ;;  %v708_v15 = vsel %vm656_vm1, %v641_v7, 0.0  ;;  %v660_v16 = vsel %vm656_vm1, %v625_v8, 0.0 }
 0x100   : > { %v493_v1 = vadd.f32 %v1265_v58, %v1542_v20  ;;  %v484_v2 = vpop.f32.mrb[7].mxu0  ;;  %v557_v3 = vadd.f32 %v1281_v62, %v1542_v20  ;;  %v548_v4 = vpop.f32.mrb[7].mxu1  ;;  %v1596_v9 = vmax.f32 %v490_v53, 0.0  ;;  %v1606_v22 = vmax.f32 %v554_v55, 0.0 }
 0x101   : > { %667 = vadd.xlane.f32.xlu1 %v666_v63  ;;  %658 = vadd.xlane.f32.xlu0 %v657_v0  ;;  %v485_v5 = vadd.f32 %v1542_v20, %v484_v2  ;;  %v549_v6 = vadd.f32 %v1542_v20, %v548_v4  ;;  %v1622_v39 = vmax.f32 %v482_v57, 0.0  ;;  %v1632_v50 = vmax.f32 %v546_v59, 0.0 }
 0x102   : > { %v1598_v10 = vmax.f32 %v493_v1, 0.0  ;;  %v1608_v23 = vmax.f32 %v557_v3, 0.0  ;;  %v630_v29 = vmul.f32 %v1596_v9, %v1596_v9  ;;  %v646_v41 = vmul.f32 %v1606_v22, %v1606_v22 }
 0x103   : > { %v1626_v42 = vmax.f32 %v485_v5, 0.0  ;;  %v1634_v53 = vmax.f32 %v549_v6, 0.0  ;;  %v628_v60 = vmul.f32 %v1622_v39, %v1622_v39 }
 0x104   : > { %v631_v28 = vmul.f32 %v1598_v10, %v1598_v10  ;;  %v675_v46 = vsel %vm656_vm1, %v630_v29, 0.0  ;;  %v647_v47 = vmul.f32 %v1608_v23, %v1608_v23  ;;  %v723_v58 = vsel %vm656_vm1, %v646_v41, 0.0 }
 0x105   : > { %715 = vadd.xlane.f32.xlu1 %v714_v11  ;;  %706 = vadd.xlane.f32.xlu0 %v705_v12  ;;  %v1268_v13 = vpop.f32.mrb[8].mxu0  ;;  %v1284_v14 = vpop.f32.mrb[8].mxu1  ;;  %v629_v1 = vmul.f32 %v1626_v42, %v1626_v42  ;;  %v669_v8 = vsel %vm656_vm1, %v628_v60, 0.0  ;;  %v644_v11 = vmul.f32 %v1632_v50, %v1632_v50 }
 0x106   : > { %v506_v17 = vadd.f32 %v1268_v13, %v1542_v20  ;;  %v497_v18 = vpop.f32.mrb[9].mxu0  ;;  %v570_v19 = vadd.f32 %v1284_v14, %v1542_v20  ;;  %v561_v21 = vpop.f32.mrb[9].mxu1  ;;  %v678_v45 = vsel %vm656_vm1, %v631_v28, 0.0  ;;  %v726_v0 = vsel %vm656_vm1, %v647_v47, 0.0 }
 0x107   : > { %v498_v24 = vadd.f32 %v1542_v20, %v497_v18  ;;  %v1269_v25 = vpop.f32.mrb[10].mxu0  ;;  %v1612_v26 = vadd.f32 %v1542_v20, %v561_v21  ;;  %v1285_v27 = vpop.f32.mrb[10].mxu1  ;;  %v672_v14 = vsel %vm656_vm1, %v629_v1, 0.0 }
 0x108   : > { %v509_v30 = vadd.f32 %v1269_v25, %v1542_v20  ;;  %v500_v33 = vpop.f32.mrb[11].mxu0  ;;  %v573_v34 = vadd.f32 %v1285_v27, %v1542_v20  ;;  %v564_v35 = vpop.f32.mrb[11].mxu1  ;;  %v1655_v12 = vmax.f32 %v506_v17, 0.0 }
 0x109   : > { %709 = vadd.xlane.f32.xlu1 %v708_v15  ;;  %661 = vadd.xlane.f32.xlu0 %v660_v16  ;;  %v501_v36 = vadd.f32 %v1542_v20, %v500_v33  ;;  %v565_v38 = vadd.f32 %v1542_v20, %v564_v35  ;;  %v645_v15 = vmul.f32 %v1634_v53, %v1634_v53  ;;  %v1662_v16 = vmax.f32 %v570_v19, 0.0 }
 0x10a   : > { %v1657_v13 = vmax.f32 %v509_v30, 0.0  ;;  %v1665_v18 = vmax.f32 %v573_v34, 0.0  ;;  %v634_v25 = vmul.f32 %v1655_v12, %v1655_v12  ;;  %v1672_v27 = vmax.f32 %v498_v24, 0.0 }
 0x10b   : > { %v720_v21 = vsel %vm656_vm1, %v645_v15, 0.0  ;;  %v650_v19 = vmul.f32 %v1662_v16, %v1662_v16  ;;  %v1676_v28 = vmax.f32 %v501_v36, 0.0  ;;  %v1683_v34 = vmax.f32 %v1612_v26, 0.0 }
 0x10c   : > { %v635_v17 = vmul.f32 %v1657_v13, %v1657_v13  ;;  %v687_v30 = vsel %vm656_vm1, %v634_v25, 0.0  ;;  %v651_v33 = vmul.f32 %v1665_v18, %v1665_v18  ;;  %v1685_v35 = vmax.f32 %v565_v38, 0.0 }
 0x10d   : > { %679 = vadd.xlane.f32.xlu1 %v678_v45  ;;  %676 = vadd.xlane.f32.xlu0 %v675_v46  ;;  %v1272_v48 = vpop.f32.mrb[12].mxu0  ;;  %v1288_v49 = vpop.f32.mrb[12].mxu1  ;;  %v735_v41 = vsel %vm656_vm1, %v650_v19, 0.0  ;;  %v633_v36 = vmul.f32 %v1676_v28, %v1676_v28  ;;  %v632_v45 = vmul.f32 %v1672_v27, %v1672_v27  ;;  %v648_v26 = vmul.f32 %v1683_v34, %v1683_v34 }
 0x10e   : > { %v522_v54 = vadd.f32 %v1272_v48, %v1542_v20  ;;  %v513_v55 = vpop.f32.mrb[13].mxu0  ;;  %v1638_v56 = vadd.f32 %v1288_v49, %v1542_v20  ;;  %v577_v57 = vpop.f32.mrb[13].mxu1  ;;  %v690_v29 = vsel %vm656_vm1, %v635_v17, 0.0  ;;  %v738_v24 = vsel %vm656_vm1, %v651_v33, 0.0 }
 0x10f   : > { %v514_v61 = vadd.f32 %v1542_v20, %v513_v55  ;;  %v1273_v62 = vpop.f32.mrb[14].mxu0  ;;  %v578_v59 = vadd.f32 %v1542_v20, %v577_v57  ;;  %v1289_v63 = vpop.f32.mrb[14].mxu1  ;;  %v649_v46 = vmul.f32 %v1685_v35, %v1685_v35  ;;  %v684_v48 = vsel %vm656_vm1, %v633_v36, 0.0 }
 0x110   : > { %v525_v2 = vadd.f32 %v1273_v62, %v1542_v20  ;;  %v516_v3 = vpop.f32.mrb[15].mxu0  ;;  %v589_v4 = vadd.f32 %v1289_v63, %v1542_v20  ;;  %v580_v5 = vpop.f32.mrb[15].mxu1  ;;  %v1697_v38 = vmax.f32 %v522_v54, 0.0  ;;  %v681_v49 = vsel %vm656_vm1, %v632_v45, 0.0 }
 0x111   : > { %727 = vadd.xlane.f32.xlu1 %v726_v0  ;;  %724 = vadd.xlane.f32.xlu0 %v723_v58  ;;  %v517_v6 = vadd.f32 %v1542_v20, %v516_v3  ;;  %v581_v7 = vadd.f32 %v1542_v20, %v580_v5  ;;  %v717_v20 = vsel %vm656_vm1, %v644_v11, 0.0  ;;  %v732_v55 = vsel %vm656_vm1, %v649_v46, 0.0 }
 0x112   : > { %v1699_v47 = vmax.f32 %v525_v2, 0.0  ;;  %v729_v57 = vsel %vm656_vm1, %v648_v26, 0.0  ;;  %v1705_v58 = vmax.f32 %v514_v61, 0.0  ;;  %v638_v62 = vmul.f32 %v1697_v38, %v1697_v38 }
 0x113   : > { %v1707_v60 = vmax.f32 %v517_v6, 0.0  ;;  %v1713_v63 = vmax.f32 %v578_v59, 0.0  ;;  %v1715_v0 = vmax.f32 %v581_v7, 0.0  ;;  %v1724_v5 = vmax.f32 %v1638_v56, 0.0 }
 0x114   : > { %v639_v54 = vmul.f32 %v1699_v47, %v1699_v47  ;;  %v699_v2 = vsel %vm656_vm1, %v638_v62, 0.0  ;;  %v636_v3 = vmul.f32 %v1705_v58, %v1705_v58  ;;  %v1726_v6 = vmax.f32 %v589_v4, 0.0 }
 0x115   : > { %673 = vadd.xlane.f32.xlu1 %v672_v14  ;;  %670 = vadd.xlane.f32.xlu0 %v669_v8  ;;  %v637_v61 = vmul.f32 %v1707_v60, %v1707_v60  ;;  %v653_v8 = vmul.f32 %v1715_v0, %v1715_v0  ;;  %v652_v11 = vmul.f32 %v1713_v63, %v1713_v63 }
 0x116   : > { %v702_v1 = vsel %vm656_vm1, %v639_v54, 0.0  ;;  %v693_v7 = vsel %vm656_vm1, %v636_v3, 0.0  ;;  %v655_v56 = vmul.f32 %v1726_v6, %v1726_v6  ;;  %v654_v4 = vmul.f32 %v1724_v5, %v1724_v5 }
 0x117   : > { %v696_v59 = vsel %vm656_vm1, %v637_v61, 0.0  ;;  %v744_v14 = vsel %vm656_vm1, %v653_v8, 0.0  ;;  %v741_v15 = vsel %vm656_vm1, %v652_v11, 0.0 }
 0x119   : > { %721 = vadd.xlane.f32.xlu1 %v720_v21  ;;  %718 = vadd.xlane.f32.xlu0 %v717_v20  ;;  %v750_v20 = vsel %vm656_vm1, %v655_v56, 0.0  ;;  %v747_v21 = vsel %vm656_vm1, %v654_v4, 0.0 }
 0x11d   : > { %691 = vadd.xlane.f32.xlu1 %v690_v29  ;;  %688 = vadd.xlane.f32.xlu0 %v687_v30 }
 0x121   : > { %739 = vadd.xlane.f32.xlu1 %v738_v24  ;;  %736 = vadd.xlane.f32.xlu0 %v735_v41 }
 0x125   : > { %685 = vadd.xlane.f32.xlu1 %v684_v48  ;;  %682 = vadd.xlane.f32.xlu0 %v681_v49 }
 0x129   : > { %733 = vadd.xlane.f32.xlu1 %v732_v55  ;;  %730 = vadd.xlane.f32.xlu0 %v729_v57 }
 0x12d   : > { %703 = vadd.xlane.f32.xlu1 %v702_v1  ;;  %700 = vadd.xlane.f32.xlu0 %v699_v2 }
 0x131   : > { %697 = vadd.xlane.f32.xlu1 %v696_v59  ;;  %694 = vadd.xlane.f32.xlu0 %v693_v7 }
 0x135   : > { %745 = vadd.xlane.f32.xlu1 %v744_v14  ;;  %742 = vadd.xlane.f32.xlu0 %v741_v15 }
 0x139   : > { %751 = vadd.xlane.f32.xlu1 %v750_v20  ;;  %748 = vadd.xlane.f32.xlu0 %v747_v21 }
 0x18a   : > { %v713_v17 = vpop.xlane.xlu0 %712  ;;  %v665_v25 = vpop.xlane.xlu1 %664 }
 0x18b   : > { %v771_v19 = vadd.f32 1e-12, %v713_v17  ;;  %v755_v29 = vadd.f32 1e-12, %v665_v25 }
 0x18d   : > { %1342 = vrsqrt.f32 %v771_v19 }
 0x18e   : > { %1344 = vrsqrt.f32 %v755_v29  ;;  %v668_v30 = vpop.xlane.xlu1 %667  ;;  %v659_v33 = vpop.xlane.xlu0 %658 }
 0x18f   : > { %v756_v24 = vadd.f32 1e-12, %v668_v30  ;;  %v753_v41 = vadd.f32 1e-12, %v659_v33 }
 0x191   : > { %1346 = vrsqrt.f32 %v756_v24 }
 0x192   : > { %1348 = vrsqrt.f32 %v753_v41  ;;  %v716_v36 = vpop.xlane.xlu1 %715  ;;  %v707_v45 = vpop.xlane.xlu0 %706 }
 0x193   : > { %v772_v46 = vadd.f32 1e-12, %v716_v36  ;;  %v769_v26 = vadd.f32 1e-12, %v707_v45 }
 0x195   : > { %1350 = vrsqrt.f32 %v772_v46 }
 0x196   : > { %1352 = vrsqrt.f32 %v769_v26  ;;  %v710_v48 = vpop.xlane.xlu1 %709  ;;  %v662_v49 = vpop.xlane.xlu0 %661 }
 0x197   : > { %v1343_v55 = vpop.eup %1342  ;;  %v770_v57 = vadd.f32 1e-12, %v710_v48  ;;  %v754_v54 = vadd.f32 1e-12, %v662_v49 }
 0x198   : > { %v1345_v62 = vpop.eup %1344  ;;  %v835_v1 = vmul.f32 %v1343_v55, %v1550_v32 }
 0x199   : > { %v819_v2 = vmul.f32 %v1345_v62, %v1548_v31  ;;  %1354 = vrsqrt.f32 %v770_v57 }
 0x19a   : > { %v1216_v61 = vpack.c.bf16 %v835_v1, %v835_v1  ;;  %1356 = vrsqrt.f32 %v754_v54  ;;  %v680_v3 = vpop.xlane.xlu1 %679  ;;  %v677_v59 = vpop.xlane.xlu0 %676 }
 0x19b   : > { %v1347_v7 = vpop.eup %1346  ;;  %v1200_v8 = vpack.c.bf16 %v819_v2, %v819_v2  ;;  %v760_v11 = vadd.f32 1e-12, %v680_v3  ;;  %v759_v14 = vadd.f32 1e-12, %v677_v59 }
 0x19c   : > { %v1349_v32 = vpop.eup %1348  ;;  %996 = vst.msk [vmem:[%s1747_s8 + $0x48] sm:$0xf] %vm977_vm2, %v1216_v61  ;;  %v820_v15 = vmul.f32 %v1347_v7, %v1558_v40 }
 0x19d   : > { %980 = vst.msk [vmem:[%s1747_s8 + $0x8] sm:$0xf] %vm977_vm2, %v1200_v8  ;;  %v817_v31 = vmul.f32 %v1349_v32, %v1554_v37  ;;  %1358 = vrsqrt.f32 %v760_v11 }
 0x19e   : > { %v1201_v56 = vpack.c.bf16 %v820_v15, %v820_v15  ;;  %1360 = vrsqrt.f32 %v759_v14  ;;  %v728_v4 = vpop.xlane.xlu1 %727  ;;  %v725_v20 = vpop.xlane.xlu0 %724 }
 0x19f   : > { %v1351_v21 = vpop.eup %1350  ;;  %v1198_v17 = vpack.c.bf16 %v817_v31, %v817_v31  ;;  %v776_v25 = vadd.f32 1e-12, %v728_v4  ;;  %v775_v19 = vadd.f32 1e-12, %v725_v20 }
 0x1a0   : > { %v1353_v29 = vpop.eup %1352  ;;  %981 = vst.msk [vmem:[%s1747_s8 + $0xc] sm:$0xf] %vm977_vm2, %v1201_v56  ;;  %v836_v40 = vmul.f32 %v1351_v21, %v1566_v44 }
 0x1a1   : > { %978 = vst.msk [vmem:[%s1747_s8] sm:$0xf] %vm977_vm2, %v1198_v17  ;;  %v833_v37 = vmul.f32 %v1353_v29, %v1564_v43  ;;  %1362 = vrsqrt.f32 %v776_v25 }
 0x1a2   : > { %v1217_v30 = vpack.c.bf16 %v836_v40, %v836_v40  ;;  %1364 = vrsqrt.f32 %v775_v19  ;;  %v674_v33 = vpop.xlane.xlu1 %673  ;;  %v671_v24 = vpop.xlane.xlu0 %670 }
 0x1a3   : > { %v1355_v41 = vpop.eup %1354  ;;  %v1214_v36 = vpack.c.bf16 %v833_v37, %v833_v37  ;;  %v758_v45 = vadd.f32 1e-12, %v674_v33  ;;  %v757_v46 = vadd.f32 1e-12, %v671_v24 }
 0x1a4   : > { %v1357_v26 = vpop.eup %1356  ;;  %997 = vst.msk [vmem:[%s1747_s8 + $0x4c] sm:$0xf] %vm977_vm2, %v1217_v30  ;;  %v834_v44 = vmul.f32 %v1355_v41, %v1576_v52 }
 0x1a5   : > { %994 = vst.msk [vmem:[%s1747_s8 + $0x40] sm:$0xf] %vm977_vm2, %v1214_v36  ;;  %v818_v43 = vmul.f32 %v1357_v26, %v1574_v51  ;;  %1366 = vrsqrt.f32 %v758_v45 }
 0x1a6   : > { %v1215_v48 = vpack.c.bf16 %v834_v44, %v834_v44  ;;  %1368 = vrsqrt.f32 %v757_v46  ;;  %v722_v49 = vpop.xlane.xlu1 %721  ;;  %v719_v55 = vpop.xlane.xlu0 %718 }
 0x1a7   : > { %v1359_v57 = vpop.eup %1358  ;;  %v1199_v54 = vpack.c.bf16 %v818_v43, %v818_v43  ;;  %v774_v62 = vadd.f32 1e-12, %v722_v49  ;;  %v773_v1 = vadd.f32 1e-12, %v719_v55 }
 0x1a8   : > { %v1361_v2 = vpop.eup %1360  ;;  %995 = vst.msk [vmem:[%s1747_s8 + $0x44] sm:$0xf] %vm977_vm2, %v1215_v48  ;;  %v824_v52 = vmul.f32 %v1359_v57, %v1598_v10 }
 0x1a9   : > { %979 = vst.msk [vmem:[%s1747_s8 + $0x4] sm:$0xf] %vm977_vm2, %v1199_v54  ;;  %v823_v51 = vmul.f32 %v1361_v2, %v1596_v9  ;;  %1370 = vrsqrt.f32 %v774_v62 }
 0x1aa   : > { %v1205_v61 = vpack.c.bf16 %v824_v52, %v824_v52  ;;  %1372 = vrsqrt.f32 %v773_v1  ;;  %v692_v3 = vpop.xlane.xlu1 %691  ;;  %v689_v59 = vpop.xlane.xlu0 %688 }
 0x1ab   : > { %v1363_v7 = vpop.eup %1362  ;;  %v1204_v8 = vpack.c.bf16 %v823_v51, %v823_v51  ;;  %v764_v11 = vadd.f32 1e-12, %v692_v3  ;;  %v763_v14 = vadd.f32 1e-12, %v689_v59 }
 0x1ac   : > { %v1365_v32 = vpop.eup %1364  ;;  %985 = vst.msk [vmem:[%s1747_s8 + $0x1c] sm:$0xf] %vm977_vm2, %v1205_v61  ;;  %v840_v10 = vmul.f32 %v1363_v7, %v1608_v23 }
 0x1ad   : > { %984 = vst.msk [vmem:[%s1747_s8 + $0x18] sm:$0xf] %vm977_vm2, %v1204_v8  ;;  %v839_v9 = vmul.f32 %v1365_v32, %v1606_v22  ;;  %1374 = vrsqrt.f32 %v764_v11 }
 0x1ae   : > { %v1221_v15 = vpack.c.bf16 %v840_v10, %v840_v10  ;;  %1376 = vrsqrt.f32 %v763_v14  ;;  %v740_v31 = vpop.xlane.xlu1 %739  ;;  %v737_v56 = vpop.xlane.xlu0 %736 }
 0x1af   : > { %v1367_v4 = vpop.eup %1366  ;;  %v1220_v20 = vpack.c.bf16 %v839_v9, %v839_v9  ;;  %v780_v21 = vadd.f32 1e-12, %v740_v31  ;;  %v779_v17 = vadd.f32 1e-12, %v737_v56 }
 0x1b0   : > { %v1369_v25 = vpop.eup %1368  ;;  %1001 = vst.msk [vmem:[%s1747_s8 + $0x5c] sm:$0xf] %vm977_vm2, %v1221_v15  ;;  %v822_v23 = vmul.f32 %v1367_v4, %v1626_v42 }
 0x1b1   : > { %1000 = vst.msk [vmem:[%s1747_s8 + $0x58] sm:$0xf] %vm977_vm2, %v1220_v20  ;;  %v821_v22 = vmul.f32 %v1369_v25, %v1622_v39  ;;  %1378 = vrsqrt.f32 %v780_v21 }
 0x1b2   : > { %v1203_v19 = vpack.c.bf16 %v822_v23, %v822_v23  ;;  %1380 = vrsqrt.f32 %v779_v17  ;;  %v686_v29 = vpop.xlane.xlu1 %685  ;;  %v683_v40 = vpop.xlane.xlu0 %682 }
 0x1b3   : > { %v1371_v37 = vpop.eup %1370  ;;  %v1202_v30 = vpack.c.bf16 %v821_v22, %v821_v22  ;;  %v762_v33 = vadd.f32 1e-12, %v686_v29  ;;  %v761_v24 = vadd.f32 1e-12, %v683_v40 }
 0x1b4   : > { %v1373_v41 = vpop.eup %1372  ;;  %983 = vst.msk [vmem:[%s1747_s8 + $0x14] sm:$0xf] %vm977_vm2, %v1203_v19  ;;  %v838_v42 = vmul.f32 %v1371_v37, %v1634_v53 }
 0x1b5   : > { %982 = vst.msk [vmem:[%s1747_s8 + $0x10] sm:$0xf] %vm977_vm2, %v1202_v30  ;;  %v837_v39 = vmul.f32 %v1373_v41, %v1632_v50  ;;  %1382 = vrsqrt.f32 %v762_v33 }
 0x1b6   : > { %v1219_v36 = vpack.c.bf16 %v838_v42, %v838_v42  ;;  %1384 = vrsqrt.f32 %v761_v24  ;;  %v734_v45 = vpop.xlane.xlu1 %733  ;;  %v731_v46 = vpop.xlane.xlu0 %730 }
 0x1b7   : > { %v1375_v26 = vpop.eup %1374  ;;  %v1218_v44 = vpack.c.bf16 %v837_v39, %v837_v39  ;;  %v778_v43 = vadd.f32 1e-12, %v734_v45  ;;  %v777_v48 = vadd.f32 1e-12, %v731_v46 }
 0x1b8   : > { %v1377_v49 = vpop.eup %1376  ;;  %999 = vst.msk [vmem:[%s1747_s8 + $0x54] sm:$0xf] %vm977_vm2, %v1219_v36  ;;  %v828_v53 = vmul.f32 %v1375_v26, %v1657_v13 }
 0x1b9   : > { %998 = vst.msk [vmem:[%s1747_s8 + $0x50] sm:$0xf] %vm977_vm2, %v1218_v44  ;;  %v827_v50 = vmul.f32 %v1377_v49, %v1655_v12  ;;  %1386 = vrsqrt.f32 %v778_v43 }
 0x1ba   : > { %v1209_v55 = vpack.c.bf16 %v828_v53, %v828_v53  ;;  %1388 = vrsqrt.f32 %v777_v48  ;;  %v704_v57 = vpop.xlane.xlu1 %703  ;;  %v701_v54 = vpop.xlane.xlu0 %700 }
 0x1bb   : > { %v1379_v62 = vpop.eup %1378  ;;  %v1208_v1 = vpack.c.bf16 %v827_v50, %v827_v50  ;;  %v768_v2 = vadd.f32 1e-12, %v704_v57  ;;  %v767_v52 = vadd.f32 1e-12, %v701_v54 }
 0x1bc   : > { %v1381_v51 = vpop.eup %1380  ;;  %989 = vst.msk [vmem:[%s1747_s8 + $0x2c] sm:$0xf] %vm977_vm2, %v1209_v55  ;;  %v844_v13 = vmul.f32 %v1379_v62, %v1665_v18 }
 0x1bd   : > { %988 = vst.msk [vmem:[%s1747_s8 + $0x28] sm:$0xf] %vm977_vm2, %v1208_v1  ;;  %v843_v12 = vmul.f32 %v1381_v51, %v1662_v16  ;;  %1390 = vrsqrt.f32 %v768_v2 }
 0x1be   : > { %v1225_v61 = vpack.c.bf16 %v844_v13, %v844_v13  ;;  %1392 = vrsqrt.f32 %v767_v52  ;;  %v698_v3 = vpop.xlane.xlu1 %697  ;;  %v695_v59 = vpop.xlane.xlu0 %694 }
 0x1bf   : > { %v1383_v7 = vpop.eup %1382  ;;  %v1224_v8 = vpack.c.bf16 %v843_v12, %v843_v12  ;;  %v766_v11 = vadd.f32 1e-12, %v698_v3  ;;  %v765_v14 = vadd.f32 1e-12, %v695_v59 }
 0x1c0   : > { %v1385_v32 = vpop.eup %1384  ;;  %1005 = vst.msk [vmem:[%s1747_s8 + $0x6c] sm:$0xf] %vm977_vm2, %v1225_v61  ;;  %v826_v18 = vmul.f32 %v1383_v7, %v1676_v28 }
 0x1c1   : > { %1004 = vst.msk [vmem:[%s1747_s8 + $0x68] sm:$0xf] %vm977_vm2, %v1224_v8  ;;  %v825_v16 = vmul.f32 %v1385_v32, %v1672_v27  ;;  %1394 = vrsqrt.f32 %v766_v11 }
 0x1c2   : > { %v1207_v10 = vpack.c.bf16 %v826_v18, %v826_v18  ;;  %1396 = vrsqrt.f32 %v765_v14  ;;  %v746_v9 = vpop.xlane.xlu1 %745  ;;  %v743_v15 = vpop.xlane.xlu0 %742 }
 0x1c3   : > { %v1387_v31 = vpop.eup %1386  ;;  %v1206_v56 = vpack.c.bf16 %v825_v16, %v825_v16  ;;  %v782_v4 = vadd.f32 1e-12, %v746_v9  ;;  %v781_v20 = vadd.f32 1e-12, %v743_v15 }
 0x1c4   : > { %v1389_v21 = vpop.eup %1388  ;;  %987 = vst.msk [vmem:[%s1747_s8 + $0x24] sm:$0xf] %vm977_vm2, %v1207_v10  ;;  %v842_v28 = vmul.f32 %v1387_v31, %v1685_v35 }
 0x1c5   : > { %986 = vst.msk [vmem:[%s1747_s8 + $0x20] sm:$0xf] %vm977_vm2, %v1206_v56  ;;  %v841_v27 = vmul.f32 %v1389_v21, %v1683_v34  ;;  %1398 = vrsqrt.f32 %v782_v4 }
 0x1c6   : > { %v1223_v17 = vpack.c.bf16 %v842_v28, %v842_v28  ;;  %1400 = vrsqrt.f32 %v781_v20  ;;  %v752_v25 = vpop.xlane.xlu1 %751  ;;  %v749_v23 = vpop.xlane.xlu0 %748 }
 0x1c7   : > { %v1391_v22 = vpop.eup %1390  ;;  %v1222_v19 = vpack.c.bf16 %v841_v27, %v841_v27  ;;  %v784_v29 = vadd.f32 1e-12, %v752_v25  ;;  %v783_v40 = vadd.f32 1e-12, %v749_v23 }
 0x1c8   : > { %v1393_v37 = vpop.eup %1392  ;;  %1003 = vst.msk [vmem:[%s1747_s8 + $0x64] sm:$0xf] %vm977_vm2, %v1223_v17  ;;  %v832_v35 = vmul.f32 %v1391_v22, %v1699_v47 }
 0x1c9   : > { %1002 = vst.msk [vmem:[%s1747_s8 + $0x60] sm:$0xf] %vm977_vm2, %v1222_v19  ;;  %v831_v34 = vmul.f32 %v1393_v37, %v1697_v38  ;;  %1402 = vrsqrt.f32 %v784_v29 }
 0x1ca   : > { %v1213_v30 = vpack.c.bf16 %v832_v35, %v832_v35  ;;  %1404 = vrsqrt.f32 %v783_v40 }
 0x1cb   : > { %v1395_v33 = vpop.eup %1394  ;;  %v1212_v24 = vpack.c.bf16 %v831_v34, %v831_v34 }
 0x1cc   : > { %v1397_v41 = vpop.eup %1396  ;;  %993 = vst.msk [vmem:[%s1747_s8 + $0x3c] sm:$0xf] %vm977_vm2, %v1213_v30  ;;  %v830_v42 = vmul.f32 %v1395_v33, %v1707_v60 }
 0x1cd   : > { %992 = vst.msk [vmem:[%s1747_s8 + $0x38] sm:$0xf] %vm977_vm2, %v1212_v24  ;;  %v829_v47 = vmul.f32 %v1397_v41, %v1705_v58 }
 0x1ce   : > { %v1211_v39 = vpack.c.bf16 %v830_v42, %v830_v42 }
 0x1cf   : > { %v1399_v36 = vpop.eup %1398  ;;  %v1210_v38 = vpack.c.bf16 %v829_v47, %v829_v47 }
 0x1d0   : > { %v1401_v45 = vpop.eup %1400  ;;  %991 = vst.msk [vmem:[%s1747_s8 + $0x34] sm:$0xf] %vm977_vm2, %v1211_v39  ;;  %v846_v46 = vmul.f32 %v1399_v36, %v1715_v0 }
 0x1d1   : > { %990 = vst.msk [vmem:[%s1747_s8 + $0x30] sm:$0xf] %vm977_vm2, %v1210_v38  ;;  %v845_v26 = vmul.f32 %v1401_v45, %v1713_v63 }
 0x1d2   : > { %v1227_v60 = vpack.c.bf16 %v846_v46, %v846_v46 }
 0x1d3   : > { %v1403_v44 = vpop.eup %1402  ;;  %v1226_v43 = vpack.c.bf16 %v845_v26, %v845_v26 }
 0x1d4   : > { %v1405_v48 = vpop.eup %1404  ;;  %1007 = vst.msk [vmem:[%s1747_s8 + $0x74] sm:$0xf] %vm977_vm2, %v1227_v60  ;;  %v848_v58 = vmul.f32 %v1403_v44, %v1726_v6 }
 0x1d5   : > { %1006 = vst.msk [vmem:[%s1747_s8 + $0x70] sm:$0xf] %vm977_vm2, %v1226_v43  ;;  %v847_v49 = vmul.f32 %v1405_v48, %v1724_v5 }
 0x1d6   : > { %v1229_v53 = vpack.c.bf16 %v848_v58, %v848_v58 }
 0x1d7   : > { %v1228_v50 = vpack.c.bf16 %v847_v49, %v847_v49 }
 0x1d8   : > { %1009 = vst.msk [vmem:[%s1747_s8 + $0x7c] sm:$0xf] %vm977_vm2, %v1229_v53 }
 0x1d9   : > { %1008 = vst.msk [vmem:[%s1747_s8 + $0x78] sm:$0xf] %vm977_vm2, %v1228_v50 }
 0x1da PF: > { %s13_s14 = sadd.s32 1, %s1428_s14   ;;  %s1857_s12 = smov %s1424_s13 }
 0x1db   : > { %p10_p5 = scmp.ge.s32.totalorder %s13_s14, 4   ;;  %s1858_s13 = smov %s1860_s15 }
 0x1dd   :  { %12 = sbr.rel (!%p10_p5) target bundleno = 2 (0x2), region = 68 }

// kernel: conv_knrm_forward.5
= control target key start
LH: loop header
LB: loop body
LE: loop exit
PB: predicated region body
PF: predicated region fallthrough
CT: control target
= control target key end

     0   :  { %vm137_vm0 = vcmask 261120   ;;  %v1827_v1 = vmov 0   ;;  %vm418_vm1 = vcmask 7168   ;;  %vm421_vm2 = vcmask 15360   ;;  %s1829_s13 = smov 22   ;;  %s1830_s14 = smov 33   ;;  %s2365_s1 = inlined_call_operand.vmem [shape: bf16[2,256,32], index: 1, kind: input, shape index: {}]   ;;  %s2366_s0 = inlined_call_operand.vmem [shape: bf16[2,16,32], index: 0, kind: input, shape index: {}]   ;;  %s2367_s2 = inlined_call_operand.vmem [shape: f32[2,8,1], index: 2, kind: input, shape index: {}]   ;;  %s2368_s3 = inlined_call_operand.vmem [shape: f32[2,1,128], index: 3, kind: input, shape index: {}]   ;;  %s2369_s4 = inlined_call_operand.vmem [shape: f32[2,1,44], index: 4, kind: output, shape index: {}]  }
   0x1   :  { %v1599_v0 = vld [vmem:[%s2365_s1 + $0x80] sm:$0xff]   ;;  %1597 = vset.pattern.permute.xlu0 %v1827_v1  ;;  %1598 = vset.pattern.permute.xlu1 %v1827_v1  ;;  %v1601_v3 = vld [vmem:[%s2365_s1 + $0x88] sm:$0xff]   ;;  %v1603_v7 = vld [vmem:[%s2365_s1 + $0x90] sm:$0xff]   ;;  %vm424_vm3 = vcmask 23552   ;;  %vm427_vm4 = vcmask 31744   ;;  %vm430_vm5 = vcmask 39936  }
   0x2   :  { %v1600_v2 = vld [vmem:[%s2365_s1] sm:$0xff]   ;;  %1577 = vmatprep.subr.msk.bf16.mxu0 %vm137_vm0, %v1599_v0  ;;  %v1602_v5 = vld [vmem:[%s2365_s1 + $0x8] sm:$0xff]   ;;  %v1604_v10 = vld [vmem:[%s2365_s1 + $0x10] sm:$0xff]   ;;  %vm433_vm6 = vcmask 48128   ;;  %vm436_vm7 = vcmask 56320   ;;  %vm439_vm8 = vcmask 64512  }
   0x3   :  { %v142_v4 = vsel %vm137_vm0, %v1600_v2, 0  ;;  %v145_v6 = vsel %vm137_vm0, %v1602_v5, 0  ;;  %v1609_v8 = vld [vmem:[%s2365_s1 + $0xc0] sm:$0xff]   ;;  %v1613_v12 = vld [vmem:[%s2365_s1 + $0xc8] sm:$0xff]   ;;  %v148_v14 = vsel %vm137_vm0, %v1604_v10, 0  ;;  %v1605_v15 = vld [vmem:[%s2365_s1 + $0x98] sm:$0xff]  }
   0x4   :  { %1542 = vmatpush3.bf16.xpose.msra.mxu0 %v142_v4  ;;  %1585 = vmatprep.subr.msk.bf16.mxu1 %vm137_vm0, %v1609_v8  ;;  %v1611_v9 = vld [vmem:[%s2365_s1 + $0x40] sm:$0xff]   ;;  %v1615_v13 = vld [vmem:[%s2365_s1 + $0x48] sm:$0xff]   ;;  %v1617_v17 = vld [vmem:[%s2365_s1 + $0xd0] sm:$0xff]   ;;  %vm442_vm9 = vcmask 72704   ;;  %vm445_vm10 = vcmask 80896   ;;  %vm462_vm11 = vcmask 89088  }
   0x5   :  { %1578 = vmatprep.subr.msk.bf16.mxu0 %vm137_vm0, %v1601_v3  ;;  %v842_v11 = vsel %vm137_vm0, %v1611_v9, 0  ;;  %v845_v16 = vsel %vm137_vm0, %v1615_v13, 0  ;;  %v1606_v18 = vld [vmem:[%s2365_s1 + $0x18] sm:$0xff]   ;;  %v1619_v19 = vld [vmem:[%s2365_s1 + $0x50] sm:$0xff]   ;;  %v1621_v20 = vld [vmem:[%s2366_s0] ss:$8 sps:$4 sm:$0xff]  }
   0x6   :  { %1560 = vmatpush3.bf16.xpose.msra.mxu1 %v842_v11  ;;  %v151_v21 = vsel %vm137_vm0, %v1606_v18, 0  ;;  %v1607_v22 = vld [vmem:[%s2365_s1 + $0xa0] sm:$0xff]   ;;  %1557 = vmatprep.mubr.msk.bf16.mxu0 %vm137_vm0, %v1621_v20  ;;  %v848_v24 = vsel %vm137_vm0, %v1619_v19, 0  ;;  %v1622_v25 = vld [vmem:[%s2365_s1 + $0xd8] sm:$0xff]   ;;  %v1610_v26 = vld [vmem:[%s2365_s1 + $0xa8] sm:$0xff]   ;;  %vm713_vm12 = vcmask 179200  }
   0x7   :  { %1586 = vmatprep.subr.msk.bf16.mxu1 %vm137_vm0, %v1613_v12  ;;  %v1608_v23 = vld [vmem:[%s2365_s1 + $0x20] sm:$0xff]   ;;  %v1623_v28 = vld [vmem:[%s2365_s1 + $0x58] sm:$0xff]   ;;  %v1612_v33 = vld [vmem:[%s2365_s1 + $0x28] sm:$0xff]   ;;  %vm715_vm13 = vcmask 269312   ;;  %vm717_vm14 = vcmask 352256  }
   0x8   :  { %v154_v27 = vsel %vm137_vm0, %v1608_v23, 0  ;;  %v1632_v29 = vld [vmem:[%s2366_s0 + $0x4] ss:$8 sps:$4 sm:$0xff]   ;;  %v851_v31 = vsel %vm137_vm0, %v1623_v28, 0  ;;  %v157_v35 = vsel %vm137_vm0, %v1612_v33, 0  ;;  %v1614_v36 = vld [vmem:[%s2365_s1 + $0xb0] sm:$0xff]  }
   0x9   :  { %v232_v30 = vld [vmem:[%s2367_s2] sm:$0xff]  ;;  %1575 = vmatprep.mubr.msk.bf16.mxu1 %vm137_vm0, %v1632_v29  ;;  %v1626_v38 = vld [vmem:[%s2365_s1 + $0xe8] sm:$0xff]   ;;  %v1616_v39 = vld [vmem:[%s2365_s1 + $0x30] sm:$0xff]  }
   0xa   :  { %458 = vperm.xlu0 %1597, %v232_v30   ;;  %v1624_v32 = vld [vmem:[%s2365_s1 + $0xe0] sm:$0xff]   ;;  %v1627_v40 = vld [vmem:[%s2365_s1 + $0x68] sm:$0xff]   ;;  %v160_v41 = vsel %vm137_vm0, %v1616_v39, 0  ;;  %v1618_v42 = vld [vmem:[%s2365_s1 + $0xb8] sm:$0xff]  }
   0xb   :  { %v1625_v34 = vld [vmem:[%s2365_s1 + $0x60] sm:$0xff]   ;;  %v857_v43 = vsel %vm137_vm0, %v1627_v40, 0  ;;  %v1628_v44 = vld [vmem:[%s2365_s1 + $0xf0] sm:$0xff]   ;;  %v1620_v45 = vld [vmem:[%s2365_s1 + $0x38] sm:$0xff]  }
   0xc   :  { %1544 = vmatpush3.bf16.xpose.msra.mxu0 %v145_v6  ;;  %v854_v37 = vsel %vm137_vm0, %v1625_v34, 0  ;;  %v1629_v46 = vld [vmem:[%s2365_s1 + $0x70] sm:$0xff]   ;;  %v163_v47 = vsel %vm137_vm0, %v1620_v45, 0  ;;  %v1630_v49 = vld [vmem:[%s2365_s1 + $0xf8] sm:$0xff]   ;;  %v2000_v52 = vld [vmem:[%s2368_s3] ss:$0 sm:$0xff] }
   0xd   :  { %1579 = vmatprep.subr.msk.bf16.mxu0 %vm137_vm0, %v1603_v7  ;;  %v860_v48 = vsel %vm137_vm0, %v1629_v46, 0  ;;  %v1631_v50 = vld [vmem:[%s2365_s1 + $0x78] sm:$0xff]  }
   0xe   :  { %1562 = vmatpush3.bf16.xpose.msra.mxu1 %v845_v16  ;;  %v863_v51 = vsel %vm137_vm0, %v1631_v50, 0 }
   0xf   :  { %1587 = vmatprep.subr.msk.bf16.mxu1 %vm137_vm0, %v1617_v17 }
  0x14   :  { %1546 = vmatpush3.bf16.xpose.msra.mxu0 %v148_v14 }
  0x15   :  { %1580 = vmatprep.subr.msk.bf16.mxu0 %vm137_vm0, %v1605_v15 }
  0x16   :  { %1564 = vmatpush3.bf16.xpose.msra.mxu1 %v848_v24 }
  0x17   :  { %1588 = vmatprep.subr.msk.bf16.mxu1 %vm137_vm0, %v1622_v25 }
  0x1c   :  { %1548 = vmatpush3.bf16.xpose.msra.mxu0 %v151_v21 }
  0x1d   :  { %1581 = vmatprep.subr.msk.bf16.mxu0 %vm137_vm0, %v1607_v22 }
  0x1e   :  { %1566 = vmatpush3.bf16.xpose.msra.mxu1 %v851_v31 }
  0x1f   :  { %1589 = vmatprep.subr.msk.bf16.mxu1 %vm137_vm0, %v1624_v32 }
  0x24   :  { %1550 = vmatpush3.bf16.xpose.msra.mxu0 %v154_v27 }
  0x25   :  { %1582 = vmatprep.subr.msk.bf16.mxu0 %vm137_vm0, %v1610_v26 }
  0x26   :  { %1568 = vmatpush3.bf16.xpose.msra.mxu1 %v854_v37 }
  0x27   :  { %1590 = vmatprep.subr.msk.bf16.mxu1 %vm137_vm0, %v1626_v38 }
  0x2c   :  { %1552 = vmatpush3.bf16.xpose.msra.mxu0 %v157_v35 }
  0x2d   :  { %1583 = vmatprep.subr.msk.bf16.mxu0 %vm137_vm0, %v1614_v36 }
  0x2e   :  { %1570 = vmatpush3.bf16.xpose.msra.mxu1 %v857_v43 }
  0x2f   :  { %1591 = vmatprep.subr.msk.bf16.mxu1 %vm137_vm0, %v1628_v44 }
  0x34   :  { %1554 = vmatpush3.bf16.xpose.msra.mxu0 %v160_v41 }
  0x35   :  { %1584 = vmatprep.subr.msk.bf16.mxu0 %vm137_vm0, %v1618_v42 }
  0x36   :  { %1572 = vmatpush3.bf16.xpose.msra.mxu1 %v860_v48 }
  0x37   :  { %1592 = vmatprep.subr.msk.bf16.mxu1 %vm137_vm0, %v1630_v49 }
  0x3c   :  { %1556 = vmatpush3.bf16.xpose.msra.mxu0 %v163_v47 }
  0x3e   :  { %1574 = vmatpush3.bf16.xpose.msra.mxu1 %v863_v51 }
  0x43   :  { %1558 = vmatmul.mubr.msk.bf16.vlgmr.msra.gmra.mrb[0].mxu0 %vm137_vm0, %v1621_v20 }
  0x45   :  { %1576 = vmatmul.mubr.msk.bf16.vlgmr.msra.gmra.mrb[0].mxu1 %vm137_vm0, %v1632_v29 }
 0x116   :  { %v223_v53 = vpop.f32.mrb[0].mxu0 }
 0x117   :  { %v2003_v54 = vmul.f32 %v2000_v52, %v223_v53  ;;  %v225_v55 = vpop.f32.mrb[1].mxu0 }
 0x118   :  { %v2006_v56 = vmul.f32 %v2000_v52, %v225_v55  ;;  %v2008_v57 = vpop.f32.mrb[2].mxu0  ;;  %v2020_v21 = vpop.f32.mrb[0].mxu1 }
 0x119   :  { %v2010_v58 = vpop.f32.mrb[3].mxu0  ;;  %v1433_v59 = vadd.f32 -0.9, %v2003_v54  ;;  %v1431_v60 = vadd.f32 -1.0, %v2003_v54  ;;  %v1435_v61 = vadd.f32 -0.7, %v2003_v54 }
 0x11a   :  { %v1453_v62 = vadd.f32 -1.0, %v2006_v56  ;;  %v1437_v63 = vadd.f32 -0.5, %v2003_v54  ;;  %v1455_v0 = vadd.f32 -0.9, %v2006_v56  ;;  %v1439_v4 = vadd.f32 -0.3, %v2003_v54 }
 0x11b   :  { %v260_v1 = vmul.f32 %v1433_v59, %v1433_v59  ;;  %v244_v2 = vmul.f32 %v1431_v60, %v1431_v60  ;;  %v276_v3 = vmul.f32 %v1435_v61, %v1435_v61  ;;  %v1457_v8 = vadd.f32 -0.7, %v2006_v56  ;;  %v925_v25 = vpop.f32.mrb[1].mxu1 }
 0x11c   :  { %v482_v5 = vmul.f32 %v1453_v62, %v1453_v62  ;;  %v292_v6 = vmul.f32 %v1437_v63, %v1437_v63  ;;  %v498_v7 = vmul.f32 %v1455_v0, %v1455_v0  ;;  %v308_v12 = vmul.f32 %v1439_v4, %v1439_v4  ;;  %v2024_v29 = vpop.f32.mrb[2].mxu1 }
 0x11d   :  { %v262_v9 = vmul.f32 -50.0, %v260_v1  ;;  %v246_v10 = vmul.f32 -500000.0, %v244_v2  ;;  %v278_v11 = vmul.f32 -50.0, %v276_v3  ;;  %v514_v16 = vmul.f32 %v1457_v8, %v1457_v8  ;;  %v2026_v32 = vpop.f32.mrb[3].mxu1 }
 0x11e   :  { %v484_v13 = vmul.f32 -500000.0, %v482_v5  ;;  %v294_v14 = vmul.f32 -50.0, %v292_v6  ;;  %v500_v15 = vmul.f32 -50.0, %v498_v7  ;;  %v1441_v22 = vadd.f32 -0.1, %v2003_v54 }
 0x11f   :  { %v264_v17 = vmul.f32 1.442695, %v262_v9  ;;  %v248_v18 = vmul.f32 1.442695, %v246_v10  ;;  %v280_v19 = vmul.f32 1.442695, %v278_v11 }
 0x120   :  { %v486_v20 = vmul.f32 1.442695, %v484_v13  ;;  %v310_v23 = vmul.f32 -50.0, %v308_v12  ;;  %v516_v24 = vmul.f32 -50.0, %v514_v16  ;;  %v1459_v26 = vadd.f32 -0.5, %v2006_v56 }
 0x121   :  { %1633 = vpow2.f32 %v264_v17  ;;  %v296_v27 = vmul.f32 1.442695, %v294_v14  ;;  %v502_v28 = vmul.f32 1.442695, %v500_v15  ;;  %v324_v30 = vmul.f32 %v1441_v22, %v1441_v22  ;;  %v2040_v1 = vld [vmem:[%s2368_s3 + $0x1] ss:$0 sm:$0xff] }
 0x122   :  { %1635 = vpow2.f32 %v248_v18  ;;  %v530_v31 = vmul.f32 %v1459_v26, %v1459_v26  ;;  %v1443_v33 = vadd.f32 0.1, %v2003_v54  ;;  %v1461_v34 = vadd.f32 -0.3, %v2006_v56 }
 0x123   :  { %1637 = vpow2.f32 %v280_v19  ;;  %v312_v35 = vmul.f32 1.442695, %v310_v23  ;;  %v518_v36 = vmul.f32 1.442695, %v516_v24  ;;  %v1445_v37 = vadd.f32 0.3, %v2003_v54 }
 0x124   :  { %1639 = vpow2.f32 %v486_v20  ;;  %v532_v38 = vmul.f32 -50.0, %v530_v31  ;;  %v546_v39 = vmul.f32 %v1461_v34, %v1461_v34  ;;  %v1463_v40 = vadd.f32 -0.1, %v2006_v56 }
 0x125   :  { %1641 = vpow2.f32 %v502_v28  ;;  %v326_v41 = vmul.f32 -50.0, %v324_v30  ;;  %v340_v42 = vmul.f32 %v1443_v33, %v1443_v33  ;;  %v356_v43 = vmul.f32 %v1445_v37, %v1445_v37 }
 0x126   :  { %1643 = vpow2.f32 %v296_v27  ;;  %v562_v44 = vmul.f32 %v1463_v40, %v1463_v40  ;;  %v534_v46 = vmul.f32 1.442695, %v532_v38  ;;  %v548_v47 = vmul.f32 -50.0, %v546_v39 }
 0x127   :  { %1645 = vpow2.f32 %v312_v35  ;;  %v1465_v48 = vadd.f32 0.1, %v2006_v56  ;;  %v328_v51 = vmul.f32 1.442695, %v326_v41  ;;  %v342_v53 = vmul.f32 -50.0, %v340_v42 }
 0x128   :  { %1647 = vpow2.f32 %v518_v36  ;;  %v1447_v55 = vadd.f32 0.5, %v2003_v54  ;;  %v358_v61 = vmul.f32 -50.0, %v356_v43  ;;  %v564_v63 = vmul.f32 -50.0, %v562_v44 }
 0x129   :  { %v1449_v0 = vadd.f32 0.7, %v2003_v54  ;;  %1649 = vpow2.f32 %v534_v46  ;;  %v550_v2 = vmul.f32 1.442695, %v548_v47  ;;  %v578_v3 = vmul.f32 %v1465_v48, %v1465_v48 }
 0x12a   :  { %v1467_v4 = vadd.f32 0.3, %v2006_v56  ;;  %1651 = vpow2.f32 %v328_v51  ;;  %v344_v6 = vmul.f32 1.442695, %v342_v53  ;;  %v372_v7 = vmul.f32 %v1447_v55, %v1447_v55 }
 0x12b   :  { %v1634_v45 = vpop.eup %1633  ;;  %v360_v10 = vmul.f32 1.442695, %v358_v61  ;;  %v2046_v12 = vmul.f32 %v2040_v1, %v925_v25  ;;  %v566_v13 = vmul.f32 1.442695, %v564_v63  ;;  %v388_v14 = vmul.f32 %v1449_v0, %v1449_v0 }
 0x12c   :  { %v1636_v49 = vpop.eup %1635  ;;  %v268_v50 = vmul.f32 %v1634_v45, %v2000_v52  ;;  %1653 = vpow2.f32 %v550_v2  ;;  %v580_v15 = vmul.f32 -50.0, %v578_v3  ;;  %v594_v16 = vmul.f32 %v1467_v4, %v1467_v4 }
 0x12d   :  { %v1638_v59 = vpop.eup %1637  ;;  %v252_v60 = vmul.f32 %v1636_v49, %v2000_v52  ;;  %v1469_v17 = vadd.f32 0.5, %v2006_v56  ;;  %1655 = vpow2.f32 %v344_v6  ;;  %v374_v20 = vmul.f32 -50.0, %v372_v7 }
 0x12e   :  { %v1640_v62 = vpop.eup %1639  ;;  %270 = vadd.xlane.f32.xlu1 %v268_v50  ;;  %v284_v9 = vmul.f32 %v1638_v59, %v2000_v52  ;;  %v1451_v22 = vadd.f32 0.9, %v2003_v54  ;;  %1657 = vpow2.f32 %v360_v10  ;;  %v390_v25 = vmul.f32 -50.0, %v388_v14 }
 0x12f   :  { %254 = vadd.xlane.f32.xlu0 %v252_v60  ;;  %v490_v5 = vmul.f32 %v1640_v62, %v2000_v52  ;;  %v1642_v8 = vpop.eup %1641  ;;  %1659 = vpow2.f32 %v566_v13  ;;  %v1520_v26 = vadd.f32 -0.9, %v2046_v12  ;;  %v582_v27 = vmul.f32 1.442695, %v580_v15 }
 0x130   :  { %v1644_v11 = vpop.eup %1643  ;;  %v506_v19 = vmul.f32 %v1642_v8, %v2000_v52  ;;  %v596_v28 = vmul.f32 -50.0, %v594_v16  ;;  %v610_v30 = vmul.f32 %v1469_v17, %v1469_v17  ;;  %v1471_v31 = vadd.f32 0.7, %v2006_v56 }
 0x131   :  { %v1646_v18 = vpop.eup %1645  ;;  %v300_v24 = vmul.f32 %v1644_v11, %v2000_v52  ;;  %v376_v34 = vmul.f32 1.442695, %v374_v20  ;;  %v404_v35 = vmul.f32 %v1451_v22, %v1451_v22  ;;  %v1526_v54 = vadd.f32 -0.3, %v2046_v12 }
 0x132   :  { %492 = vadd.xlane.f32.xlu1 %v490_v5  ;;  %v1648_v23 = vpop.eup %1647  ;;  %v316_v37 = vmul.f32 %v1646_v18, %v2000_v52  ;;  %v1518_v38 = vadd.f32 -1.0, %v2046_v12  ;;  %v392_v40 = vmul.f32 1.442695, %v390_v25  ;;  %v1189_v41 = vmul.f32 %v1520_v26, %v1520_v26 }
 0x133   :  { %286 = vadd.xlane.f32.xlu0 %v284_v9  ;;  %v522_v33 = vmul.f32 %v1648_v23, %v2000_v52  ;;  %v1650_v36 = vpop.eup %1649  ;;  %1661 = vpow2.f32 %v582_v27  ;;  %v598_v42 = vmul.f32 1.442695, %v596_v28  ;;  %v612_v43 = vmul.f32 -50.0, %v610_v30 }
 0x134   :  { %v1652_v39 = vpop.eup %1651  ;;  %v626_v44 = vmul.f32 %v1471_v31, %v1471_v31  ;;  %v538_v45 = vmul.f32 %v1650_v36, %v2000_v52  ;;  %1663 = vpow2.f32 %v376_v34  ;;  %v406_v46 = vmul.f32 -50.0, %v404_v35 }
 0x135   :  { %v1237_v47 = vmul.f32 %v1526_v54, %v1526_v54  ;;  %v332_v49 = vmul.f32 %v1652_v39, %v2000_v52  ;;  %v1173_v50 = vmul.f32 %v1518_v38, %v1518_v38  ;;  %1665 = vpow2.f32 %v392_v40 }
 0x136   :  { %508 = vadd.xlane.f32.xlu1 %v506_v19  ;;  %v1654_v48 = vpop.eup %1653  ;;  %v1191_v53 = vmul.f32 -50.0, %v1189_v41  ;;  %1667 = vpow2.f32 %v598_v42  ;;  %v614_v59 = vmul.f32 1.442695, %v612_v43  ;;  %v628_v60 = vmul.f32 -50.0, %v626_v44 }
 0x137   :  { %302 = vadd.xlane.f32.xlu0 %v300_v24  ;;  %v1656_v51 = vpop.eup %1655  ;;  %v1522_v61 = vadd.f32 -0.7, %v2046_v12  ;;  %v554_v63 = vmul.f32 %v1654_v48, %v2000_v52  ;;  %v408_v0 = vmul.f32 1.442695, %v406_v46  ;;  %v1239_v2 = vmul.f32 -50.0, %v1237_v47 }
 0x138   :  { %v1658_v55 = vpop.eup %1657  ;;  %v1530_v3 = vadd.f32 0.1, %v2046_v12  ;;  %v348_v4 = vmul.f32 %v1656_v51, %v2000_v52  ;;  %v1175_v5 = vmul.f32 -500000.0, %v1173_v50  ;;  %v1534_v6 = vadd.f32 0.5, %v2046_v12 }
 0x139   :  { %v1660_v62 = vpop.eup %1659  ;;  %v1193_v7 = vmul.f32 1.442695, %v1191_v53  ;;  %v1524_v8 = vadd.f32 -0.5, %v2046_v12  ;;  %1669 = vpow2.f32 %v614_v59  ;;  %v630_v9 = vmul.f32 1.442695, %v628_v60 }
 0x13a   :  { %524 = vadd.xlane.f32.xlu1 %v522_v33  ;;  %v1205_v10 = vmul.f32 %v1522_v61, %v1522_v61  ;;  %v570_v11 = vmul.f32 %v1660_v62, %v2000_v52  ;;  %1671 = vpow2.f32 %v408_v0  ;;  %v1241_v13 = vmul.f32 1.442695, %v1239_v2 }
 0x13b   :  { %318 = vadd.xlane.f32.xlu0 %v316_v37  ;;  %v1269_v14 = vmul.f32 %v1530_v3, %v1530_v3  ;;  %v364_v16 = vmul.f32 %v1658_v55, %v2000_v52  ;;  %v1177_v17 = vmul.f32 1.442695, %v1175_v5  ;;  %v1301_v18 = vmul.f32 %v1534_v6, %v1534_v6 }
 0x13c   :  { %1673 = vpow2.f32 %v1193_v7  ;;  %v1221_v20 = vmul.f32 %v1524_v8, %v1524_v8  ;;  %v1528_v22 = vadd.f32 -0.1, %v2046_v12  ;;  %v2071_v23 = vmul.f32 %v2000_v52, %v2008_v57 }
 0x13d   :  { %v1662_v15 = vpop.eup %1661  ;;  %1675 = vpow2.f32 %v630_v9  ;;  %v1207_v24 = vmul.f32 -50.0, %v1205_v10  ;;  %v1271_v27 = vmul.f32 -50.0, %v1269_v14  ;;  %v1473_v28 = vadd.f32 0.9, %v2006_v56 }
 0x13e   :  { %540 = vadd.xlane.f32.xlu1 %v538_v45  ;;  %v1664_v19 = vpop.eup %1663  ;;  %v586_v26 = vmul.f32 %v1662_v15, %v2000_v52  ;;  %1677 = vpow2.f32 %v1241_v13  ;;  %v1303_v33 = vmul.f32 -50.0, %v1301_v18  ;;  %v1223_v34 = vmul.f32 -50.0, %v1221_v20 }
 0x13f   :  { %334 = vadd.xlane.f32.xlu0 %v332_v49  ;;  %v1666_v25 = vpop.eup %1665  ;;  %v380_v31 = vmul.f32 %v1664_v19, %v2000_v52  ;;  %1679 = vpow2.f32 %v1177_v17  ;;  %v1253_v35 = vmul.f32 %v1528_v22, %v1528_v22  ;;  %v2078_v57 = vmul.f32 %v2040_v1, %v2024_v29 }
 0x140   :  { %v1668_v30 = vpop.eup %1667  ;;  %v1209_v54 = vmul.f32 1.442695, %v1207_v24  ;;  %v1532_v36 = vadd.f32 0.3, %v2046_v12  ;;  %v1273_v38 = vmul.f32 1.442695, %v1271_v27  ;;  %v642_v56 = vmul.f32 %v1473_v28, %v1473_v28 }
 0x141   :  { %v602_v37 = vmul.f32 %v1668_v30, %v2000_v52  ;;  %v1432_v39 = vadd.f32 -1.0, %v2071_v23  ;;  %v396_v41 = vmul.f32 %v1666_v25, %v2000_v52  ;;  %v1305_v42 = vmul.f32 1.442695, %v1303_v33 }
 0x142   :  { %556 = vadd.xlane.f32.xlu1 %v554_v63  ;;  %v1225_v44 = vmul.f32 1.442695, %v1223_v34  ;;  %v1255_v45 = vmul.f32 -50.0, %v1253_v35  ;;  %v1536_v29 = vadd.f32 0.7, %v2046_v12  ;;  %1681 = vpow2.f32 %v1209_v54 }
 0x143   :  { %350 = vadd.xlane.f32.xlu0 %v348_v4  ;;  %v1670_v40 = vpop.eup %1669  ;;  %v1285_v46 = vmul.f32 %v1532_v36, %v1532_v36  ;;  %v1499_v47 = vadd.f32 -0.9, %v2078_v57  ;;  %1683 = vpow2.f32 %v1273_v38  ;;  %v644_v50 = vmul.f32 -50.0, %v642_v56 }
 0x144   :  { %v1672_v43 = vpop.eup %1671  ;;  %v618_v49 = vmul.f32 %v1670_v40, %v2000_v52  ;;  %v245_v51 = vmul.f32 %v1432_v39, %v1432_v39  ;;  %1685 = vpow2.f32 %v1305_v42  ;;  %v1257_v60 = vmul.f32 1.442695, %v1255_v45 }
 0x145   :  { %v412_v55 = vmul.f32 %v1672_v43, %v2000_v52  ;;  %1687 = vpow2.f32 %v1225_v44  ;;  %v1317_v61 = vmul.f32 %v1536_v29, %v1536_v29  ;;  %v1287_v0 = vmul.f32 -50.0, %v1285_v46 }
 0x146   :  { %572 = vadd.xlane.f32.xlu1 %v570_v11  ;;  %v1674_v48 = vpop.eup %1673  ;;  %v963_v2 = vmul.f32 %v1499_v47, %v1499_v47  ;;  %v1538_v3 = vadd.f32 0.9, %v2046_v12  ;;  %v646_v5 = vmul.f32 1.442695, %v644_v50  ;;  %v247_v6 = vmul.f32 -500000.0, %v245_v51 }
 0x147   :  { %366 = vadd.xlane.f32.xlu0 %v364_v16  ;;  %v1676_v53 = vpop.eup %1675  ;;  %v1197_v63 = vmul.f32 %v1674_v48, %v2040_v1  ;;  %v1501_v7 = vadd.f32 -0.7, %v2078_v57  ;;  %1689 = vpow2.f32 %v1257_v60  ;;  %v1319_v10 = vmul.f32 -50.0, %v1317_v61 }
 0x148   :  { %v1678_v59 = vpop.eup %1677  ;;  %v634_v4 = vmul.f32 %v1676_v53, %v2000_v52  ;;  %v1434_v11 = vadd.f32 -0.9, %v2071_v23  ;;  %v1289_v13 = vmul.f32 1.442695, %v1287_v0  ;;  %v965_v14 = vmul.f32 -50.0, %v963_v2 }
 0x149   :  { %v1680_v62 = vpop.eup %1679  ;;  %v1245_v8 = vmul.f32 %v1678_v59, %v2040_v1  ;;  %v1333_v15 = vmul.f32 %v1538_v3, %v1538_v3  ;;  %v1503_v12 = vadd.f32 -0.5, %v2078_v57  ;;  %1691 = vpow2.f32 %v646_v5 }
 0x14a   :  { %588 = vadd.xlane.f32.xlu1 %v586_v26  ;;  %v1181_v9 = vmul.f32 %v1680_v62, %v2040_v1  ;;  %v250_v16 = vmul.f32 1.442695, %v247_v6  ;;  %v979_v17 = vmul.f32 %v1501_v7, %v1501_v7  ;;  %v1321_v20 = vmul.f32 1.442695, %v1319_v10 }
 0x14b   :  { %382 = vadd.xlane.f32.xlu0 %v380_v31  ;;  %v261_v22 = vmul.f32 %v1434_v11, %v1434_v11  ;;  %v1436_v24 = vadd.f32 -0.7, %v2071_v23  ;;  %1693 = vpow2.f32 %v1289_v13  ;;  %v968_v26 = vmul.f32 1.442695, %v965_v14 }
 0x14c   :  { %v1682_v18 = vpop.eup %1681  ;;  %v1335_v27 = vmul.f32 -50.0, %v1333_v15  ;;  %v995_v28 = vmul.f32 %v1503_v12, %v1503_v12  ;;  %1695 = vpow2.f32 %v250_v16  ;;  %v981_v33 = vmul.f32 -50.0, %v979_v17 }
 0x14d   :  { %v1684_v19 = vpop.eup %1683  ;;  %v1213_v31 = vmul.f32 %v1682_v18, %v2040_v1  ;;  %v1507_v34 = vadd.f32 -0.1, %v2078_v57  ;;  %v2102_v54 = vmul.f32 %v2000_v52, %v2010_v58  ;;  %1697 = vpow2.f32 %v1321_v20 }
 0x14e   :  { %604 = vadd.xlane.f32.xlu1 %v602_v37  ;;  %v1686_v25 = vpop.eup %1685  ;;  %v1277_v35 = vmul.f32 %v1684_v19, %v2040_v1  ;;  %v263_v36 = vmul.f32 -50.0, %v261_v22  ;;  %v277_v37 = vmul.f32 %v1436_v24, %v1436_v24  ;;  %1699 = vpow2.f32 %v968_v26 }
 0x14f   :  { %398 = vadd.xlane.f32.xlu0 %v396_v41  ;;  %v1688_v30 = vpop.eup %1687  ;;  %v1337_v38 = vmul.f32 1.442695, %v1335_v27  ;;  %v997_v56 = vmul.f32 -50.0, %v995_v28  ;;  %v1438_v39 = vadd.f32 -0.5, %v2071_v23  ;;  %v984_v42 = vmul.f32 1.442695, %v981_v33 }
 0x150   :  { %v1229_v41 = vmul.f32 %v1688_v30, %v2040_v1  ;;  %v1027_v43 = vmul.f32 %v1507_v34, %v1507_v34  ;;  %v1511_v44 = vadd.f32 0.3, %v2078_v57  ;;  %v1309_v58 = vmul.f32 %v1686_v25, %v2040_v1 }
 0x151   :  { %v1690_v40 = vpop.eup %1689  ;;  %v2110_v29 = vmul.f32 %v2040_v1, %v2026_v32  ;;  %v266_v46 = vmul.f32 1.442695, %v263_v36  ;;  %v279_v47 = vmul.f32 -50.0, %v277_v37  ;;  %v1440_v48 = vadd.f32 -0.3, %v2071_v23 }
 0x152   :  { %620 = vadd.xlane.f32.xlu1 %v618_v49  ;;  %1701 = vpow2.f32 %v1337_v38  ;;  %v1000_v49 = vmul.f32 1.442695, %v997_v56  ;;  %v293_v50 = vmul.f32 %v1438_v39, %v1438_v39  ;;  %v1464_v51 = vadd.f32 -0.1, %v2102_v54 }
 0x153   :  { %414 = vadd.xlane.f32.xlu0 %v412_v55  ;;  %v1692_v45 = vpop.eup %1691  ;;  %v1261_v53 = vmul.f32 %v1690_v40, %v2040_v1  ;;  %1703 = vpow2.f32 %v984_v42  ;;  %v1029_v55 = vmul.f32 -50.0, %v1027_v43  ;;  %v1059_v59 = vmul.f32 %v1511_v44, %v1511_v44 }
 0x154   :  { %v650_v32 = vmul.f32 %v1692_v45, %v2000_v52  ;;  %1705 = vpow2.f32 %v266_v46  ;;  %v282_v62 = vmul.f32 1.442695, %v279_v47  ;;  %v295_v0 = vmul.f32 -50.0, %v293_v50 }
 0x155   :  { %v1694_v60 = vpop.eup %1693  ;;  %1707 = vpow2.f32 %v1000_v49  ;;  %v563_v2 = vmul.f32 %v1464_v51, %v1464_v51  ;;  %v1442_v3 = vadd.f32 -0.1, %v2071_v23  ;;  %v1032_v6 = vmul.f32 1.442695, %v1029_v55 }
 0x156   :  { %636 = vadd.xlane.f32.xlu1 %v634_v4  ;;  %v1696_v61 = vpop.eup %1695  ;;  %v1293_v5 = vmul.f32 %v1694_v60, %v2040_v1  ;;  %v1061_v7 = vmul.f32 -50.0, %v1059_v59  ;;  %1709 = vpow2.f32 %v282_v62  ;;  %v1444_v13 = vadd.f32 0.1, %v2071_v23 }
 0x157   :  { %1199 = vadd.xlane.f32.xlu0 %v1197_v63  ;;  %v309_v63 = vmul.f32 %v1440_v48, %v1440_v48  ;;  %v1698_v4 = vpop.eup %1697  ;;  %v253_v10 = vmul.f32 %v1696_v61, %v2000_v52  ;;  %v298_v14 = vmul.f32 1.442695, %v295_v0  ;;  %v565_v15 = vmul.f32 -50.0, %v563_v2 }
 0x158   :  { %v325_v12 = vmul.f32 %v1442_v3, %v1442_v3  ;;  %v1525_v16 = vadd.f32 -0.5, %v2110_v29  ;;  %v1325_v17 = vmul.f32 %v1698_v4, %v2040_v1  ;;  %1711 = vpow2.f32 %v1032_v6 }
 0x159   :  { %v311_v11 = vmul.f32 -50.0, %v309_v63  ;;  %v1064_v18 = vmul.f32 1.442695, %v1061_v7  ;;  %v341_v26 = vmul.f32 %v1444_v13, %v1444_v13  ;;  %v1446_v27 = vadd.f32 0.3, %v2071_v23 }
 0x15a   :  { %1183 = vadd.xlane.f32.xlu1 %v1181_v9  ;;  %v1700_v9 = vpop.eup %1699  ;;  %1713 = vpow2.f32 %v298_v14  ;;  %v568_v28 = vmul.f32 1.442695, %v565_v15  ;;  %v327_v30 = vmul.f32 -50.0, %v325_v12  ;;  %v1529_v36 = vadd.f32 -0.1, %v2110_v29 }
 0x15b   :  { %1247 = vadd.xlane.f32.xlu0 %v1245_v8  ;;  %v1521_v8 = vadd.f32 -0.9, %v2110_v29  ;;  %v971_v22 = vmul.f32 %v1700_v9, %v2040_v1  ;;  %v314_v25 = vmul.f32 1.442695, %v311_v11  ;;  %1715 = vpow2.f32 %v1064_v18 }
 0x15c   :  { %v1702_v20 = vpop.eup %1701  ;;  %v343_v56 = vmul.f32 -50.0, %v341_v26  ;;  %v357_v39 = vmul.f32 %v1446_v27, %v1446_v27  ;;  %v330_v40 = vmul.f32 1.442695, %v327_v30  ;;  %v1448_v42 = vadd.f32 0.5, %v2071_v23 }
 0x15d   :  { %v1190_v19 = vmul.f32 %v1521_v8, %v1521_v8  ;;  %v1704_v24 = vpop.eup %1703  ;;  %v1341_v34 = vmul.f32 %v1702_v20, %v2040_v1  ;;  %1717 = vpow2.f32 %v314_v25  ;;  %v1254_v45 = vmul.f32 %v1529_v36, %v1529_v36 }
 0x15e   :  { %1215 = vadd.xlane.f32.xlu1 %v1213_v31  ;;  %v1222_v31 = vmul.f32 %v1525_v16, %v1525_v16  ;;  %v1706_v33 = vpop.eup %1705  ;;  %v987_v38 = vmul.f32 %v1704_v24, %v2040_v1  ;;  %1719 = vpow2.f32 %v568_v28  ;;  %v1533_v46 = vadd.f32 0.3, %v2110_v29 }
 0x15f   :  { %1279 = vadd.xlane.f32.xlu0 %v1277_v35  ;;  %v1192_v35 = vmul.f32 -50.0, %v1190_v19  ;;  %v1708_v37 = vpop.eup %1707  ;;  %v269_v44 = vmul.f32 %v1706_v33, %v2000_v52  ;;  %v346_v49 = vmul.f32 1.442695, %v343_v56  ;;  %v359_v50 = vmul.f32 -50.0, %v357_v39 }
 0x160   :  { %v1710_v43 = vpop.eup %1709  ;;  %v1003_v47 = vmul.f32 %v1708_v37, %v2040_v1  ;;  %v1450_v51 = vadd.f32 0.7, %v2071_v23  ;;  %1721 = vpow2.f32 %v330_v40  ;;  %v373_v55 = vmul.f32 %v1448_v42, %v1448_v42 }
 0x161   :  { %v1535_v59 = vadd.f32 0.5, %v2110_v29  ;;  %v285_v60 = vmul.f32 %v1710_v43, %v2000_v52  ;;  %v1286_v61 = vmul.f32 %v1533_v46, %v1533_v46  ;;  %v362_v2 = vmul.f32 1.442695, %v359_v50 }
 0x162   :  { %1231 = vadd.xlane.f32.xlu1 %v1229_v41  ;;  %v1224_v41 = vmul.f32 -50.0, %v1222_v31  ;;  %v1712_v48 = vpop.eup %1711  ;;  %v389_v3 = vmul.f32 %v1450_v51, %v1450_v51  ;;  %v1452_v4 = vadd.f32 0.9, %v2071_v23  ;;  %v1472_v11 = vadd.f32 0.7, %v2102_v54 }
 0x163   :  { %1311 = vadd.xlane.f32.xlu0 %v1309_v58  ;;  %v1195_v58 = vmul.f32 1.442695, %v1192_v35  ;;  %v1035_v63 = vmul.f32 %v1712_v48, %v2040_v1  ;;  %v1302_v6 = vmul.f32 %v1535_v59, %v1535_v59  ;;  %v1497_v18 = vadd.f32 -1.0, %v2078_v57 }
 0x164   :  { %v1714_v62 = vpop.eup %1713  ;;  %v391_v15 = vmul.f32 -50.0, %v389_v3  ;;  %v405_v12 = vmul.f32 %v1452_v4, %v1452_v4  ;;  %v627_v20 = vmul.f32 %v1472_v11, %v1472_v11  ;;  %v2146_v27 = vmul.f32 %v2040_v1, %v2020_v21 }
 0x165   :  { %1723 = vpow2.f32 %v1195_v58  ;;  %v1716_v0 = vpop.eup %1715  ;;  %v301_v8 = vmul.f32 %v1714_v62, %v2000_v52  ;;  %v1505_v31 = vadd.f32 -0.3, %v2078_v57  ;;  %v1539_v35 = vadd.f32 0.9, %v2110_v29 }
 0x166   :  { %1263 = vadd.xlane.f32.xlu1 %v1261_v53  ;;  %v1227_v53 = vmul.f32 1.442695, %v1224_v41  ;;  %1725 = vpow2.f32 %v346_v49  ;;  %v1067_v14 = vmul.f32 %v1716_v0, %v2040_v1  ;;  %v394_v28 = vmul.f32 1.442695, %v391_v15 }
 0x167   :  { %652 = vadd.xlane.f32.xlu0 %v650_v32  ;;  %v1256_v32 = vmul.f32 -50.0, %v1254_v45  ;;  %v1718_v7 = vpop.eup %1717  ;;  %v407_v30 = vmul.f32 -50.0, %v405_v12  ;;  %v1011_v41 = vmul.f32 %v1505_v31, %v1505_v31  ;;  %v1509_v42 = vadd.f32 0.1, %v2078_v57 }
 0x168   :  { %1727 = vpow2.f32 %v1227_v53  ;;  %v1720_v13 = vpop.eup %1719  ;;  %v317_v23 = vmul.f32 %v1718_v7, %v2000_v52  ;;  %v1496_v48 = vadd.f32 -1.0, %v2146_v27 }
 0x169   :  { %v1259_v9 = vmul.f32 1.442695, %v1256_v32  ;;  %1729 = vpow2.f32 %v362_v2  ;;  %v571_v25 = vmul.f32 %v1720_v13, %v2000_v52  ;;  %v410_v40 = vmul.f32 1.442695, %v407_v30 }
 0x16a   :  { %1295 = vadd.xlane.f32.xlu1 %v1293_v5  ;;  %v375_v5 = vmul.f32 -50.0, %v373_v55  ;;  %v1722_v24 = vpop.eup %1721  ;;  %v1013_v51 = vmul.f32 -50.0, %v1011_v41  ;;  %v1043_v53 = vmul.f32 %v1509_v42, %v1509_v42  ;;  %v1513_v55 = vadd.f32 0.5, %v2078_v57 }
 0x16b   :  { %256 = vadd.xlane.f32.xlu0 %v253_v10  ;;  %v1288_v10 = vmul.f32 -50.0, %v1286_v61  ;;  %1731 = vpow2.f32 %v1259_v9  ;;  %v333_v37 = vmul.f32 %v1722_v24, %v2000_v52  ;;  %v1498_v32 = vadd.f32 -0.9, %v2146_v27 }
 0x16c   :  { %v378_v16 = vmul.f32 1.442695, %v375_v5  ;;  %v1016_v4 = vmul.f32 1.442695, %v1013_v51  ;;  %v1045_v5 = vmul.f32 -50.0, %v1043_v53 }
 0x16d   :  { %v1291_v19 = vmul.f32 1.442695, %v1288_v10  ;;  %v1515_v9 = vadd.f32 0.7, %v2078_v57  ;;  %v1508_v42 = vadd.f32 0.1, %v2146_v27 }
 0x16e   :  { %1327 = vadd.xlane.f32.xlu1 %v1325_v17  ;;  %v1304_v17 = vmul.f32 -50.0, %v1302_v6  ;;  %1733 = vpow2.f32 %v378_v16  ;;  %v1075_v6 = vmul.f32 %v1513_v55, %v1513_v55 }
 0x16f   :  { %974 = vadd.xlane.f32.xlu0 %v971_v22  ;;  %v1537_v22 = vadd.f32 0.7, %v2110_v29  ;;  %v1724_v26 = vpop.eup %1723  ;;  %1735 = vpow2.f32 %v1291_v19  ;;  %v1517_v19 = vadd.f32 0.9, %v2078_v57  ;;  %v1042_v55 = vmul.f32 %v1508_v42, %v1508_v42 }
 0x170   :  { %v1307_v33 = vmul.f32 1.442695, %v1304_v17  ;;  %v1726_v36 = vpop.eup %1725  ;;  %v1198_v21 = vmul.f32 %v1724_v26, %v2040_v1  ;;  %1737 = vpow2.f32 %v394_v28  ;;  %v1077_v16 = vmul.f32 -50.0, %v1075_v6 }
 0x171   :  { %v1318_v56 = vmul.f32 %v1537_v22, %v1537_v22  ;;  %v349_v45 = vmul.f32 %v1726_v36, %v2000_v52  ;;  %v1502_v26 = vadd.f32 -0.5, %v2146_v27  ;;  %v1107_v36 = vmul.f32 %v1517_v19, %v1517_v19 }
 0x172   :  { %1343 = vadd.xlane.f32.xlu1 %v1341_v34  ;;  %v947_v34 = vmul.f32 %v1497_v18, %v1497_v18  ;;  %v1728_v39 = vpop.eup %1727  ;;  %1739 = vpow2.f32 %v1307_v33  ;;  %v1091_v18 = vmul.f32 %v1515_v9, %v1515_v9  ;;  %v1080_v31 = vmul.f32 1.442695, %v1077_v16 }
 0x173   :  { %990 = vadd.xlane.f32.xlu0 %v987_v38  ;;  %v629_v38 = vmul.f32 -50.0, %v627_v20  ;;  %v1730_v58 = vpop.eup %1729  ;;  %v1230_v49 = vmul.f32 %v1728_v39, %v2040_v1  ;;  %1741 = vpow2.f32 %v410_v40  ;;  %v1454_v33 = vadd.f32 -1.0, %v2102_v54 }
 0x174   :  { %v949_v43 = vmul.f32 -500000.0, %v947_v34  ;;  %v365_v61 = vmul.f32 %v1730_v58, %v2000_v52  ;;  %v1093_v57 = vmul.f32 -50.0, %v1091_v18  ;;  %v1456_v58 = vadd.f32 -0.9, %v2102_v54 }
 0x175   :  { %v632_v46 = vmul.f32 1.442695, %v629_v38  ;;  %v1732_v50 = vpop.eup %1731  ;;  %v994_v38 = vmul.f32 %v1502_v26, %v1502_v26  ;;  %v1044_v6 = vmul.f32 -50.0, %v1042_v55  ;;  %v1462_v18 = vadd.f32 -0.3, %v2102_v54 }
 0x176   :  { %272 = vadd.xlane.f32.xlu1 %v269_v44  ;;  %v1334_v44 = vmul.f32 %v1539_v35, %v1539_v35  ;;  %v952_v59 = vmul.f32 1.442695, %v949_v43  ;;  %v1262_v2 = vmul.f32 %v1732_v50, %v2040_v1  ;;  %v1096_v43 = vmul.f32 1.442695, %v1093_v57 }
 0x177   :  { %1006 = vadd.xlane.f32.xlu0 %v1003_v47  ;;  %v1320_v47 = vmul.f32 -50.0, %v1318_v56  ;;  %1743 = vpow2.f32 %v632_v46  ;;  %v1506_v56 = vadd.f32 -0.1, %v2146_v27  ;;  %v1046_v16 = vmul.f32 1.442695, %v1044_v6 }
 0x178   :  { %v1734_v0 = vpop.eup %1733  ;;  %1745 = vpow2.f32 %v952_v59  ;;  %v1510_v59 = vadd.f32 0.3, %v2146_v27  ;;  %v1514_v26 = vadd.f32 0.7, %v2146_v27 }
 0x179   :  { %v1323_v62 = vmul.f32 1.442695, %v1320_v47  ;;  %v1736_v3 = vpop.eup %1735  ;;  %v381_v11 = vmul.f32 %v1734_v0, %v2000_v52 }
 0x17a   :  { %288 = vadd.xlane.f32.xlu1 %v285_v60  ;;  %v1336_v60 = vmul.f32 -50.0, %v1334_v44  ;;  %v1738_v10 = vpop.eup %1737  ;;  %v1294_v12 = vmul.f32 %v1736_v3, %v2040_v1  ;;  %v1109_v44 = vmul.f32 -50.0, %v1107_v36  ;;  %v1466_v36 = vadd.f32 0.1, %v2102_v54 }
 0x17b   :  { %1038 = vadd.xlane.f32.xlu0 %v1035_v63  ;;  %v946_v63 = vmul.f32 %v1496_v48, %v1496_v48  ;;  %1747 = vpow2.f32 %v1323_v62  ;;  %v397_v22 = vmul.f32 %v1738_v10, %v2000_v52  ;;  %v996_v48 = vmul.f32 -50.0, %v994_v38 }
 0x17c   :  { %v1339_v7 = vmul.f32 1.442695, %v1336_v60  ;;  %v1740_v15 = vpop.eup %1739  ;;  %1749 = vpow2.f32 %v1016_v4  ;;  %v1112_v60 = vmul.f32 1.442695, %v1109_v44  ;;  %v1460_v10 = vadd.f32 -0.5, %v2102_v54 }
 0x17d   :  { %v948_v13 = vmul.f32 -500000.0, %v946_v63  ;;  %v1742_v20 = vpop.eup %1741  ;;  %v1310_v28 = vmul.f32 %v1740_v15, %v2040_v1  ;;  %v998_v0 = vmul.f32 1.442695, %v996_v48  ;;  %v1512_v15 = vadd.f32 0.5, %v2146_v27 }
 0x17e   :  { %304 = vadd.xlane.f32.xlu1 %v301_v8  ;;  %v962_v8 = vmul.f32 %v1498_v32, %v1498_v32  ;;  %1751 = vpow2.f32 %v1339_v7  ;;  %v413_v34 = vmul.f32 %v1742_v20, %v2000_v52  ;;  %v483_v52 = vmul.f32 %v1454_v33, %v1454_v33 }
 0x17f   :  { %1070 = vadd.xlane.f32.xlu0 %v1067_v14  ;;  %v1500_v14 = vadd.f32 -0.7, %v2146_v27  ;;  %v950_v24 = vmul.f32 1.442695, %v948_v13  ;;  %v499_v32 = vmul.f32 %v1456_v58, %v1456_v58  ;;  %v1058_v7 = vmul.f32 %v1510_v59, %v1510_v59 }
 0x180   :  { %v964_v17 = vmul.f32 -50.0, %v962_v8  ;;  %v485_v53 = vmul.f32 -500000.0, %v483_v52  ;;  %v1468_v58 = vadd.f32 0.3, %v2102_v54 }
 0x181   :  { %v1744_v30 = vpop.eup %1743  ;;  %v501_v8 = vmul.f32 -50.0, %v499_v32 }
 0x182   :  { %320 = vadd.xlane.f32.xlu1 %v317_v23  ;;  %v1048_v23 = vmul.f32 1.442695, %v1045_v5  ;;  %v966_v35 = vmul.f32 1.442695, %v964_v17  ;;  %v1746_v39 = vpop.eup %1745  ;;  %v488_v5 = vmul.f32 1.442695, %v485_v53  ;;  %v595_v59 = vmul.f32 %v1468_v58, %v1468_v58 }
 0x183   :  { %574 = vadd.xlane.f32.xlu0 %v571_v25  ;;  %v978_v25 = vmul.f32 %v1500_v14, %v1500_v14  ;;  %v955_v46 = vmul.f32 %v1746_v39, %v2040_v1  ;;  %v1060_v17 = vmul.f32 -50.0, %v1058_v7  ;;  %v504_v19 = vmul.f32 1.442695, %v501_v8 }
 0x184   :  { %1753 = vpow2.f32 %v1048_v23  ;;  %v1516_v39 = vadd.f32 0.9, %v2146_v27  ;;  %v1519_v7 = vadd.f32 -1.0, %v2110_v29 }
 0x185   :  { %1755 = vpow2.f32 %v950_v24  ;;  %v1748_v41 = vpop.eup %1747  ;;  %v1062_v33 = vmul.f32 1.442695, %v1060_v17 }
 0x186   :  { %336 = vadd.xlane.f32.xlu1 %v333_v37  ;;  %v980_v37 = vmul.f32 -50.0, %v978_v25  ;;  %1757 = vpow2.f32 %v1080_v31  ;;  %v1326_v51 = vmul.f32 %v1748_v41, %v2040_v1  ;;  %v1074_v25 = vmul.f32 %v1512_v15, %v1512_v15  ;;  %v2199_v41 = vld [vmem:[%s2368_s3 + $0x1] ss:$0 sm:$0xff] }
 0x187   :  { %1201 = vadd.xlane.f32.xlu0 %v1198_v21  ;;  %v2174_v21 = vld [vmem:[%s2368_s3] ss:$0 sm:$0xff]  ;;  %1759 = vpow2.f32 %v966_v35  ;;  %v1106_v48 = vmul.f32 %v1516_v39, %v1516_v39 }
 0x188   :  { %v635_v40 = vmul.f32 %v2174_v21, %v1744_v30  ;;  %v982_v47 = vmul.f32 1.442695, %v980_v37  ;;  %1761 = vpow2.f32 %v1096_v43  ;;  %v1076_v38 = vmul.f32 -50.0, %v1074_v25 }
 0x18a   :  { %352 = vadd.xlane.f32.xlu1 %v349_v45  ;;  %v1750_v45 = vpop.eup %1749  ;;  %1763 = vpow2.f32 %v982_v47 }
 0x18b   :  { %1233 = vadd.xlane.f32.xlu0 %v1230_v49  ;;  %v1026_v49 = vmul.f32 %v1506_v56, %v1506_v56  ;;  %v1752_v50 = vpop.eup %1751  ;;  %v1019_v63 = vmul.f32 %v1750_v45, %v2040_v1  ;;  %1765 = vpow2.f32 %v1112_v60  ;;  %v1090_v56 = vmul.f32 %v1514_v26, %v1514_v26 }
 0x18c   :  { %v1342_v3 = vmul.f32 %v1752_v50, %v2040_v1  ;;  %1767 = vpow2.f32 %v998_v0  ;;  %v1470_v60 = vadd.f32 0.5, %v2102_v54 }
 0x18d   :  { %1769 = vpow2.f32 %v488_v5  ;;  %v1092_v47 = vmul.f32 -50.0, %v1090_v56  ;;  %v597_v5 = vmul.f32 -50.0, %v595_v59 }
 0x18e   :  { %368 = vadd.xlane.f32.xlu1 %v365_v61  ;;  %v1458_v61 = vadd.f32 -0.7, %v2102_v54  ;;  %v1754_v62 = vpop.eup %1753  ;;  %v611_v6 = vmul.f32 %v1470_v60, %v1470_v60 }
 0x18f   :  { %1265 = vadd.xlane.f32.xlu0 %v1262_v2  ;;  %v1028_v2 = vmul.f32 -50.0, %v1026_v49  ;;  %v1756_v4 = vpop.eup %1755  ;;  %v1051_v13 = vmul.f32 %v1754_v62, %v2040_v1  ;;  %v1094_v62 = vmul.f32 1.442695, %v1092_v47 }
 0x190   :  { %v515_v9 = vmul.f32 %v1458_v61, %v1458_v61  ;;  %v954_v23 = vmul.f32 %v1756_v4, %v2040_v1 }
 0x191   :  { %v1030_v14 = vmul.f32 1.442695, %v1028_v2 }
 0x192   :  { %384 = vadd.xlane.f32.xlu1 %v381_v11  ;;  %v1758_v11 = vpop.eup %1757  ;;  %v517_v20 = vmul.f32 -50.0, %v515_v9 }
 0x193   :  { %1297 = vadd.xlane.f32.xlu0 %v1294_v12  ;;  %v1760_v12 = vpop.eup %1759  ;;  %v1083_v24 = vmul.f32 %v1758_v11, %v2040_v1  ;;  %1771 = vpow2.f32 %v1030_v14  ;;  %v1523_v14 = vadd.f32 -0.7, %v2110_v29 }
 0x194   :  { %v970_v30 = vmul.f32 %v1760_v12, %v2040_v1  ;;  %1773 = vpow2.f32 %v1046_v16  ;;  %v520_v35 = vmul.f32 1.442695, %v517_v20  ;;  %v600_v12 = vmul.f32 1.442695, %v597_v5 }
 0x195   :  { %1775 = vpow2.f32 %v504_v19  ;;  %v1174_v16 = vmul.f32 %v1519_v7, %v1519_v7 }
 0x196   :  { %400 = vadd.xlane.f32.xlu1 %v397_v22  ;;  %v531_v22 = vmul.f32 %v1460_v10, %v1460_v10  ;;  %1777 = vpow2.f32 %v1062_v33 }
 0x197   :  { %1313 = vadd.xlane.f32.xlu0 %v1310_v28  ;;  %v1762_v28 = vpop.eup %1761  ;;  %1779 = vpow2.f32 %v520_v35 }
 0x198   :  { %v1764_v31 = vpop.eup %1763  ;;  %v533_v57 = vmul.f32 -50.0, %v531_v22  ;;  %v1099_v37 = vmul.f32 %v1762_v28, %v2040_v1  ;;  %v579_v1 = vmul.f32 %v1466_v36, %v1466_v36  ;;  %v1176_v28 = vmul.f32 -500000.0, %v1174_v16 }
 0x199   :  { %v986_v52 = vmul.f32 %v2199_v41, %v1764_v31 }
 0x19a   :  { %416 = vadd.xlane.f32.xlu1 %v413_v34  ;;  %v547_v34 = vmul.f32 %v1462_v18, %v1462_v18  ;;  %v536_v44 = vmul.f32 1.442695, %v533_v57  ;;  %v581_v55 = vmul.f32 -50.0, %v579_v1  ;;  %v1179_v39 = vmul.f32 1.442695, %v1176_v28 }
 0x19b   :  { %638 = vadd.xlane.f32.xlu0 %v635_v40  ;;  %v1766_v40 = vpop.eup %1765 }
 0x19c   :  { %v1768_v42 = vpop.eup %1767  ;;  %v549_v43 = vmul.f32 -50.0, %v547_v34  ;;  %v1115_v45 = vmul.f32 %v2199_v41, %v1766_v40  ;;  %1781 = vpow2.f32 %v536_v44  ;;  %v584_v4 = vmul.f32 1.442695, %v581_v55 }
 0x19d   :  { %v1770_v49 = vpop.eup %1769  ;;  %v1002_v50 = vmul.f32 %v2199_v41, %v1768_v42 }
 0x19e   :  { %958 = vadd.xlane.f32.xlu1 %v955_v46  ;;  %v1078_v46 = vmul.f32 1.442695, %v1076_v38  ;;  %v552_v53 = vmul.f32 1.442695, %v549_v43  ;;  %v491_v61 = vmul.f32 %v2174_v21, %v1770_v49 }
 0x19f   :  { %1329 = vadd.xlane.f32.xlu0 %v1326_v51  ;;  %v1772_v51 = vpop.eup %1771 }
 0x1a0   :  { %v1774_v32 = vpop.eup %1773  ;;  %1783 = vpow2.f32 %v1078_v46  ;;  %v1034_v2 = vmul.f32 %v2199_v41, %v1772_v51 }
 0x1a1   :  { %v1776_v0 = vpop.eup %1775  ;;  %1785 = vpow2.f32 %v552_v53 }
 0x1a2   :  { %1022 = vadd.xlane.f32.xlu1 %v1019_v63  ;;  %v1108_v63 = vmul.f32 -50.0, %v1106_v48  ;;  %v1778_v8 = vpop.eup %1777  ;;  %v507_v9 = vmul.f32 %v2174_v21, %v1776_v0  ;;  %1787 = vpow2.f32 %v1094_v62 }
 0x1a3   :  { %1345 = vadd.xlane.f32.xlu0 %v1342_v3  ;;  %v2208_v3 = vpop.permute.xlu0 %458  ;;  %v1780_v11 = vpop.eup %1779  ;;  %1789 = vpow2.f32 %v584_v4  ;;  %v1066_v20 = vmul.f32 %v2199_v41, %v1778_v8 }
 0x1a4   :  { %v1110_v10 = vmul.f32 1.442695, %v1108_v63  ;;  %v523_v18 = vmul.f32 %v2174_v21, %v1780_v11 }
 0x1a6   :  { %1054 = vadd.xlane.f32.xlu1 %v1051_v13  ;;  %v1050_v13 = vmul.f32 %v2199_v41, %v1774_v32  ;;  %1791 = vpow2.f32 %v1110_v10  ;;  %v1782_v19 = vpop.eup %1781 }
 0x1a7   :  { %956 = vadd.xlane.f32.xlu0 %v954_v23  ;;  %v613_v23 = vmul.f32 -50.0, %v611_v6  ;;  %1793 = vpow2.f32 %v600_v12  ;;  %v539_v35 = vmul.f32 %v2174_v21, %v1782_v19 }
 0x1a9   :  { %v616_v26 = vmul.f32 1.442695, %v613_v23 }
 0x1aa   :  { %1086 = vadd.xlane.f32.xlu1 %v1083_v24  ;;  %v1784_v22 = vpop.eup %1783  ;;  %v1206_v24 = vmul.f32 %v1523_v14, %v1523_v14 }
 0x1ab   :  { %972 = vadd.xlane.f32.xlu0 %v970_v30  ;;  %v1527_v30 = vadd.f32 -0.3, %v2110_v29  ;;  %v1786_v31 = vpop.eup %1785  ;;  %v1082_v36 = vmul.f32 %v2199_v41, %v1784_v22  ;;  %1795 = vpow2.f32 %v616_v26 }
 0x1ac   :  { %v1208_v38 = vmul.f32 -50.0, %v1206_v24  ;;  %v555_v43 = vmul.f32 %v2174_v21, %v1786_v31  ;;  %1797 = vpow2.f32 %v1179_v39 }
 0x1ad   :  { %v1238_v40 = vmul.f32 %v1527_v30, %v1527_v30 }
 0x1ae   :  { %1102 = vadd.xlane.f32.xlu1 %v1099_v37  ;;  %v1788_v37 = vpop.eup %1787  ;;  %v1211_v46 = vmul.f32 1.442695, %v1208_v38 }
 0x1af   :  { %988 = vadd.xlane.f32.xlu0 %v986_v52  ;;  %v1531_v52 = vadd.f32 0.1, %v2110_v29  ;;  %v1790_v44 = vpop.eup %1789  ;;  %v1098_v58 = vmul.f32 %v2199_v41, %v1788_v37  ;;  %v1240_v48 = vmul.f32 -50.0, %v1238_v40  ;;  %v1474_v29 = vadd.f32 0.9, %v2102_v54 }
 0x1b0   :  { %v587_v51 = vmul.f32 %v2174_v21, %v1790_v44  ;;  %1799 = vpow2.f32 %v1211_v46 }
 0x1b1   :  { %v1270_v49 = vmul.f32 %v1531_v52, %v1531_v52  ;;  %v1243_v32 = vmul.f32 1.442695, %v1240_v48  ;;  %v643_v62 = vmul.f32 %v1474_v29, %v1474_v29 }
 0x1b2   :  { %1118 = vadd.xlane.f32.xlu1 %v1115_v45  ;;  %v1792_v45 = vpop.eup %1791 }
 0x1b3   :  { %1004 = vadd.xlane.f32.xlu0 %v1002_v50  ;;  %v1794_v53 = vpop.eup %1793  ;;  %v1114_v59 = vmul.f32 %v2199_v41, %v1792_v45  ;;  %1801 = vpow2.f32 %v1243_v32  ;;  %v645_v6 = vmul.f32 -50.0, %v643_v62 }
 0x1b4   :  { %v603_v54 = vmul.f32 %v2174_v21, %v1794_v53 }
 0x1b5   :  { %v1796_v0 = vpop.eup %1795 }
 0x1b6   :  { %494 = vadd.xlane.f32.xlu1 %v491_v61  ;;  %v1272_v61 = vmul.f32 -50.0, %v1270_v49  ;;  %v619_v8 = vmul.f32 %v2174_v21, %v1796_v0 }
 0x1b7   :  { %1036 = vadd.xlane.f32.xlu0 %v1034_v2 }
 0x1b8   :  { %v1275_v5 = vmul.f32 1.442695, %v1272_v61 }
 0x1ba   :  { %510 = vadd.xlane.f32.xlu1 %v507_v9  ;;  %v1798_v9 = vpop.eup %1797  ;;  %1803 = vpow2.f32 %v1275_v5  ;;  %v1504_v5 = vadd.f32 -0.3, %v2146_v27 }
 0x1bb   :  { %1052 = vadd.xlane.f32.xlu0 %v1050_v13  ;;  %v271_v15 = vpop.xlane.xlu1 %270  ;;  %v648_v13 = vmul.f32 1.442695, %v645_v6  ;;  %v1800_v12 = vpop.eup %1799 }
 0x1bc   :  { %v255_v17 = vpop.xlane.xlu0 %254 }
 0x1bd   :  { %v419_v33 = vsel %vm418_vm1, %v255_v17, %v271_v15  ;;  %v1182_v15 = vmul.f32 %v2199_v41, %v1798_v9  ;;  %1805 = vpow2.f32 %v648_v13  ;;  %v1802_v19 = vpop.eup %1801 }
 0x1be   :  { %526 = vadd.xlane.f32.xlu1 %v523_v18  ;;  %v1214_v18 = vmul.f32 %v2199_v41, %v1800_v12  ;;  %v1246_v26 = vmul.f32 %v2199_v41, %v1802_v19 }
 0x1bf   :  { %1068 = vadd.xlane.f32.xlu0 %v1066_v20  ;;  %v2216_v25 = vpop.xlane.xlu1 %492 }
 0x1c0   :  { %v287_v34 = vpop.xlane.xlu0 %286 }
 0x1c1   :  { %v422_v57 = vsel %vm421_vm2, %v419_v33, %v287_v34 }
 0x1c2   :  { %542 = vadd.xlane.f32.xlu1 %v539_v35 }
 0x1c3   :  { %1084 = vadd.xlane.f32.xlu0 %v1082_v36  ;;  %v2223_v56 = vpop.xlane.xlu1 %508 }
 0x1c4   :  { %v303_v42 = vpop.xlane.xlu0 %302  ;;  %v1804_v28 = vpop.eup %1803 }
 0x1c5   :  { %v425_v1 = vsel %vm424_vm3, %v422_v57, %v303_v42  ;;  %v1278_v34 = vmul.f32 %v2199_v41, %v1804_v28 }
 0x1c6   :  { %558 = vadd.xlane.f32.xlu1 %v555_v43  ;;  %v656_v43 = vsel %vm418_vm1, %v2216_v25, %v2223_v56 }
 0x1c7   :  { %1100 = vadd.xlane.f32.xlu0 %v1098_v58  ;;  %v2229_v47 = vpop.xlane.xlu1 %524  ;;  %v1806_v35 = vpop.eup %1805 }
 0x1c8   :  { %v319_v50 = vpop.xlane.xlu0 %318  ;;  %v651_v38 = vmul.f32 %v2174_v21, %v1806_v35  ;;  %v658_v58 = vsel %vm421_vm2, %v656_v43, %v2229_v47 }
 0x1c9   :  { %v428_v55 = vsel %vm427_vm4, %v425_v1, %v319_v50 }
 0x1ca   :  { %590 = vadd.xlane.f32.xlu1 %v587_v51 }
 0x1cb   :  { %1116 = vadd.xlane.f32.xlu0 %v1114_v59  ;;  %v2235_v60 = vpop.xlane.xlu1 %540 }
 0x1cc   :  { %v335_v63 = vpop.xlane.xlu0 %334  ;;  %v660_v45 = vsel %vm424_vm3, %v658_v58, %v2235_v60  ;;  %v1493_v60 = vld [vmem:[%s2367_s2 + $0x8] sm:$0xff]  ;;  %s1828_s2 = smov 11  }
 0x1cd   :  { %v431_v2 = vsel %vm430_vm5, %v428_v55, %v335_v63 }
 0x1ce   :  { %606 = vadd.xlane.f32.xlu1 %v603_v54 }
 0x1cf   :  { %v557_v4 = vpop.xlane.xlu1 %556 }
 0x1d0   :  { %v351_v7 = vpop.xlane.xlu0 %350  ;;  %v662_v21 = vsel %vm427_vm4, %v660_v45, %v557_v4 }
 0x1d1   :  { %v434_v10 = vsel %vm433_vm6, %v431_v2, %v351_v7 }
 0x1d2   :  { %622 = vadd.xlane.f32.xlu1 %v619_v8  ;;  %v1010_v8 = vmul.f32 %v1504_v5, %v1504_v5 }
 0x1d3   :  { %v573_v11 = vpop.xlane.xlu1 %572 }
 0x1d4   :  { %v367_v14 = vpop.xlane.xlu0 %366  ;;  %v664_v48 = vsel %vm430_vm5, %v662_v21, %v573_v11  ;;  %v1012_v13 = vmul.f32 -50.0, %v1010_v8 }
 0x1d5   :  { %v437_v23 = vsel %vm436_vm7, %v434_v10, %v367_v14 }
 0x1d6   :  { %1185 = vadd.xlane.f32.xlu1 %v1182_v15 }
 0x1d7   :  { %v589_v16 = vpop.xlane.xlu1 %588 }
 0x1d8   :  { %v383_v17 = vpop.xlane.xlu0 %382  ;;  %v666_v50 = vsel %vm433_vm6, %v664_v48, %v589_v16 }
 0x1d9   :  { %v440_v20 = vsel %vm439_vm8, %v437_v23, %v383_v17  ;;  %v1014_v23 = vmul.f32 1.442695, %v1012_v13 }
 0x1da   :  { %1217 = vadd.xlane.f32.xlu1 %v1214_v18 }
 0x1db   :  { %v605_v22 = vpop.xlane.xlu1 %604 }
 0x1dc   :  { %v399_v24 = vpop.xlane.xlu0 %398  ;;  %v668_v56 = vsel %vm436_vm7, %v666_v50, %v605_v22 }
 0x1dd   :  { %v443_v30 = vsel %vm442_vm9, %v440_v20, %v399_v24 }
 0x1de   :  { %1249 = vadd.xlane.f32.xlu1 %v1246_v26 }
 0x1df   :  { %v621_v31 = vpop.xlane.xlu1 %620 }
 0x1e0   :  { %v415_v33 = vpop.xlane.xlu0 %414  ;;  %v670_v51 = vsel %vm439_vm8, %v668_v56, %v621_v31 }
 0x1e1   :  { %v2249_v57 = vsel %vm445_vm10, %v443_v30, %v415_v33 }
 0x1e2   :  { %1281 = vadd.xlane.f32.xlu1 %v1278_v34 }
 0x1e3   :  { %v637_v36 = vpop.xlane.xlu1 %636 }
 0x1e4   :  { %v1200_v37 = vpop.xlane.xlu0 %1199  ;;  %v672_v53 = vsel %vm442_vm9, %v670_v51, %v637_v36 }
 0x1e6   :  { %654 = vadd.xlane.f32.xlu1 %v651_v38 }
 0x1e7   :  { %v1184_v39 = vpop.xlane.xlu1 %1183 }
 0x1e8   :  { %v1248_v40 = vpop.xlane.xlu0 %1247  ;;  %v1347_v52 = vsel %vm418_vm1, %v1184_v39, %v1200_v37 }
 0x1eb   :  { %v1216_v42 = vpop.xlane.xlu1 %1215 }
 0x1ec   :  { %v1280_v44 = vpop.xlane.xlu0 %1279  ;;  %v1349_v1 = vsel %vm421_vm2, %v1347_v52, %v1216_v42 }
 0x1ef   :  { %v1232_v46 = vpop.xlane.xlu1 %1231 }
 0x1f0   :  { %v1312_v49 = vpop.xlane.xlu0 %1311  ;;  %v1351_v29 = vsel %vm424_vm3, %v1349_v1, %v1232_v46 }
 0x1f1   :  { %v1353_v25 = vsel %vm427_vm4, %v1351_v29, %v1248_v40 }
 0x1f3   :  { %v1264_v47 = vpop.xlane.xlu1 %1263 }
 0x1f4   :  { %v653_v55 = vpop.xlane.xlu0 %652  ;;  %v1355_v59 = vsel %vm430_vm5, %v1353_v25, %v1264_v47 }
 0x1f5   :  { %v674_v32 = vsel %vm445_vm10, %v672_v53, %v653_v55  ;;  %v1357_v61 = vsel %vm433_vm6, %v1355_v59, %v1280_v44 }
 0x1f6   :  { %v676_v62 = vmax.f32 %v674_v32, 1e-10 }
 0x1f7   :  { %v1296_v63 = vpop.xlane.xlu1 %1295  ;;  %1150 = vperm.xlu1 %1598, %v1493_v60  }
 0x1f8   :  { %1807 = vlog2.f32 %v676_v62  ;;  %v1359_v54 = vsel %vm436_vm7, %v1357_v61, %v1296_v63  ;;  %v257_v35 = vpop.xlane.xlu0 %256 }
 0x1f9   :  { %v1361_v0 = vsel %vm439_vm8, %v1359_v54, %v1312_v49  ;;  %1809 = vpow2.f32 %v1014_v23 }
 0x1fb   :  { %v1328_v2 = vpop.xlane.xlu1 %1327 }
 0x1fc   :  { %v1363_v4 = vsel %vm442_vm9, %v1361_v0, %v1328_v2  ;;  %v975_v44 = vpop.xlane.xlu0 %974 }
 0x1ff   :  { %v1344_v6 = vpop.xlane.xlu1 %1343 }
 0x200   :  { %v2280_v7 = vsel %vm445_vm10, %v1363_v4, %v1344_v6  ;;  %v991_v48 = vpop.xlane.xlu0 %990 }
 0x202   :  { %v1808_v9 = vpop.eup %1807 }
 0x203   :  { %v679_v10 = vmul.f32 0.6931472, %v1808_v9  ;;  %v273_v11 = vpop.xlane.xlu1 %272  ;;  %v1810_v30 = vpop.eup %1809 }
 0x204   :  { %v1018_v33 = vmul.f32 %v2199_v41, %v1810_v30  ;;  %v420_v36 = vsel %vm418_vm1, %v257_v35, %v273_v11  ;;  %v1007_v50 = vpop.xlane.xlu0 %1006 }
 0x205   :  { %v682_v14 = vmul.f32 0.01, %v679_v10 }
 0x207   :  { %v684_v15 = vmul.f32 %v682_v14, %v2208_v3  ;;  %v289_v12 = vpop.xlane.xlu1 %288 }
 0x208   :  { %v423_v38 = vsel %vm421_vm2, %v420_v36, %v289_v12  ;;  %v1039_v47 = vpop.xlane.xlu0 %1038 }
 0x209   :  { %v685_v16 = vsel %vm462_vm11, %v684_v15, 0.0 }
 0x20a   :  { %v686_v17 = vrot.slane %v685_v16, 4 }
 0x20b   :  { %v305_v18 = vpop.xlane.xlu1 %304 }
 0x20c   :  { %v687_v27 = vadd.f32 %v686_v17, %v685_v16  ;;  %v426_v39 = vsel %vm424_vm3, %v423_v38, %v305_v18  ;;  %v1071_v61 = vpop.xlane.xlu0 %1070 }
 0x20e   :  { %v688_v19 = vrot.slane %v687_v27, 2 }
 0x20f   :  { %v321_v20 = vpop.xlane.xlu1 %320 }
 0x210   :  { %v689_v22 = vadd.f32 %v688_v19, %v687_v27  ;;  %v429_v40 = vsel %vm427_vm4, %v426_v39, %v321_v20  ;;  %v575_v2 = vpop.xlane.xlu0 %574 }
 0x212   :  { %v690_v24 = vrot.slane %v689_v22, 1 }
 0x213   :  { %v337_v26 = vpop.xlane.xlu1 %336 }
 0x214   :  { %v691_v28 = vadd.f32 %v690_v24, %v689_v22  ;;  %v432_v52 = vsel %vm430_vm5, %v429_v40, %v337_v26  ;;  %v1202_v10 = vpop.xlane.xlu0 %1201 }
 0x216   :  { %701 = vrot.lane.b32.xlu0 %v691_v28, %s1828_s2 }
 0x217   :  { %v353_v31 = vpop.xlane.xlu1 %352 }
 0x218   :  { %v435_v43 = vsel %vm433_vm6, %v432_v52, %v353_v31  ;;  %v1234_v15 = vpop.xlane.xlu0 %1233 }
 0x21b   :  { %v369_v34 = vpop.xlane.xlu1 %368  ;;  %1020 = vadd.xlane.f32.xlu1 %v1018_v33 }
 0x21c   :  { %v438_v41 = vsel %vm436_vm7, %v435_v43, %v369_v34  ;;  %v1266_v18 = vpop.xlane.xlu0 %1265  ;;  %v1367_v34 = vmax.f32 %v2280_v7, 1e-10 }
 0x21f   :  { %v385_v37 = vpop.xlane.xlu1 %384 }
 0x220   :  { %v441_v1 = vsel %vm439_vm8, %v438_v41, %v385_v37  ;;  %v1298_v22 = vpop.xlane.xlu0 %1297 }
 0x223   :  { %v401_v42 = vpop.xlane.xlu1 %400 }
 0x224   :  { %v444_v58 = vsel %vm442_vm9, %v441_v1, %v401_v42  ;;  %v1314_v35 = vpop.xlane.xlu0 %1313 }
 0x227   :  { %v417_v45 = vpop.xlane.xlu1 %416 }
 0x228   :  { %v447_v21 = vsel %vm445_vm10, %v444_v58, %v417_v45  ;;  %v639_v38 = vpop.xlane.xlu0 %638 }
 0x229   :  { %v449_v46 = vmax.f32 %v447_v21, 1e-10 }
 0x22b   :  { %1811 = vlog2.f32 %v449_v46  ;;  %v959_v49 = vpop.xlane.xlu1 %958 }
 0x22c   :  { %v1121_v11 = vsel %vm418_vm1, %v959_v49, %v975_v44  ;;  %1813 = vlog2.f32 %v1367_v34  ;;  %v1330_v45 = vpop.xlane.xlu0 %1329 }
 0x22d   :  { %v1123_v14 = vsel %vm421_vm2, %v1121_v11, %v991_v48 }
 0x22e   :  { %v1125_v23 = vsel %vm424_vm3, %v1123_v14, %v1007_v50 }
 0x22f   :  { %v1023_v29 = vpop.xlane.xlu1 %1022 }
 0x230   :  { %v1127_v17 = vsel %vm427_vm4, %v1125_v23, %v1023_v29 }
 0x231   :  { %v1129_v27 = vsel %vm430_vm5, %v1127_v17, %v1039_v47 }
 0x233   :  { %v1055_v25 = vpop.xlane.xlu1 %1054 }
 0x234   :  { %v1131_v20 = vsel %vm433_vm6, %v1129_v27, %v1055_v25 }
 0x235   :  { %v1812_v56 = vpop.eup %1811  ;;  %v1133_v24 = vsel %vm436_vm7, %v1131_v20, %v1071_v61 }
 0x236   :  { %v453_v51 = vmul.f32 0.6931472, %v1812_v56  ;;  %v1814_v46 = vpop.eup %1813 }
 0x237   :  { %v1087_v53 = vpop.xlane.xlu1 %1086 }
 0x238   :  { %v455_v55 = vmul.f32 0.01, %v453_v51  ;;  %v1135_v28 = vsel %vm439_vm8, %v1133_v24, %v1087_v53  ;;  %v1370_v53 = vmul.f32 0.6931472, %v1814_v46 }
 0x23a   :  { %v470_v59 = vmul.f32 %v2208_v3, %v455_v55 }
 0x23b   :  { %v1103_v60 = vpop.xlane.xlu1 %1102 }
 0x23c   :  { %v471_v32 = vsel %vm462_vm11, %v470_v59, 0.0  ;;  %v1137_v30 = vsel %vm442_vm9, %v1135_v28, %v1103_v60  ;;  %v1346_v60 = vpop.xlane.xlu0 %1345 }
 0x23d   :  { %v472_v62 = vrot.slane %v471_v32, 4 }
 0x23f   :  { %v1119_v63 = vpop.xlane.xlu1 %1118  ;;  %v473_v54 = vadd.f32 %v472_v62, %v471_v32 }
 0x240   :  { %v1139_v31 = vsel %vm445_vm10, %v1137_v30, %v1119_v63 }
 0x241   :  { %v474_v0 = vrot.slane %v473_v54, 2  ;;  %v1141_v36 = vmax.f32 %v1139_v31, 1e-10 }
 0x243   :  { %v495_v4 = vpop.xlane.xlu1 %494  ;;  %v475_v5 = vadd.f32 %v474_v0, %v473_v54  ;;  %1815 = vlog2.f32 %v1141_v36 }
 0x245   :  { %v476_v6 = vrot.slane %v475_v5, 1 }
 0x247   :  { %v511_v8 = vpop.xlane.xlu1 %510  ;;  %v477_v9 = vadd.f32 %v476_v6, %v475_v5 }
 0x248   :  { %v657_v39 = vsel %vm418_vm1, %v495_v4, %v511_v8  ;;  %v1373_v4 = vmul.f32 0.01, %v1370_v53 }
 0x249   :  { %705 = vrot.lane.b32.xlu0 %v477_v9, %s1829_s13 }
 0x24b   :  { %v527_v13 = vpop.xlane.xlu1 %526 }
 0x24c   :  { %v659_v42 = vsel %vm421_vm2, %v657_v39, %v527_v13 }
 0x24d   :  { %v1816_v49 = vpop.eup %1815 }
 0x24e   :  { %v1145_v55 = vmul.f32 0.6931472, %v1816_v49 }
 0x24f   :  { %v543_v12 = vpop.xlane.xlu1 %542 }
 0x250   :  { %v661_v44 = vsel %vm424_vm3, %v659_v42, %v543_v12  ;;  %v1147_v5 = vmul.f32 0.01, %v1145_v55 }
 0x253   :  { %v559_v16 = vpop.xlane.xlu1 %558 }
 0x254   :  { %v663_v41 = vsel %vm427_vm4, %v661_v44, %v559_v16 }
 0x255   :  { %v665_v21 = vsel %vm430_vm5, %v663_v41, %v575_v2 }
 0x257   :  { %v591_v19 = vpop.xlane.xlu1 %590 }
 0x258   :  { %v667_v48 = vsel %vm433_vm6, %v665_v21, %v591_v19  ;;  %v957_v21 = vpop.xlane.xlu0 %956 }
 0x25b   :  { %v607_v26 = vpop.xlane.xlu1 %606 }
 0x25c   :  { %v669_v29 = vsel %vm436_vm7, %v667_v48, %v607_v26  ;;  %v973_v46 = vpop.xlane.xlu0 %972 }
 0x25f   :  { %v623_v33 = vpop.xlane.xlu1 %622 }
 0x260   :  { %v671_v56 = vsel %vm439_vm8, %v669_v29, %v623_v33  ;;  %v989_v48 = vpop.xlane.xlu0 %988 }
 0x261   :  { %v673_v61 = vsel %vm442_vm9, %v671_v56, %v639_v38 }
 0x263   :  { %v1186_v37 = vpop.xlane.xlu1 %1185 }
 0x264   :  { %v1348_v40 = vsel %vm418_vm1, %v1186_v37, %v1202_v10  ;;  %v1005_v49 = vpop.xlane.xlu0 %1004 }
 0x267   :  { %v1218_v52 = vpop.xlane.xlu1 %1217 }
 0x268   :  { %v1350_v43 = vsel %vm421_vm2, %v1348_v40, %v1218_v52  ;;  %v1037_v29 = vpop.xlane.xlu0 %1036 }
 0x269   :  { %v1352_v7 = vsel %vm424_vm3, %v1350_v43, %v1234_v15 }
 0x26b   :  { %v1250_v1 = vpop.xlane.xlu1 %1249 }
 0x26c   :  { %v1354_v58 = vsel %vm427_vm4, %v1352_v7, %v1250_v1 }
 0x26d   :  { %v1356_v50 = vsel %vm430_vm5, %v1354_v58, %v1266_v18 }
 0x26f   :  { %v1282_v25 = vpop.xlane.xlu1 %1281 }
 0x270   :  { %v1358_v51 = vsel %vm433_vm6, %v1356_v50, %v1282_v25  ;;  %v1053_v50 = vpop.xlane.xlu0 %1052  ;;  %v1120_v25 = vsel %vm418_vm1, %v957_v21, %v973_v46 }
 0x271   :  { %v1360_v47 = vsel %vm436_vm7, %v1358_v51, %v1298_v22  ;;  %v1122_v51 = vsel %vm421_vm2, %v1120_v25, %v989_v48 }
 0x272   :  { %v1362_v59 = vsel %vm439_vm8, %v1360_v47, %v1314_v35  ;;  %v1124_v47 = vsel %vm424_vm3, %v1122_v51, %v1005_v49 }
 0x273   :  { %v1364_v32 = vsel %vm442_vm9, %v1362_v59, %v1330_v45  ;;  %v655_v62 = vpop.xlane.xlu1 %654 }
 0x274   :  { %v1366_v63 = vsel %vm445_vm10, %v1364_v32, %v1346_v60  ;;  %v675_v54 = vsel %vm445_vm10, %v673_v61, %v655_v62  ;;  %v1069_v53 = vpop.xlane.xlu0 %1068 }
 0x275   :  { %v1368_v0 = vmax.f32 %v1366_v63, 1e-10  ;;  %v677_v2 = vmax.f32 %v675_v54, 1e-10 }
 0x277   :  { %1817 = vlog2.f32 %v677_v2  ;;  %v2330_v6 = vpop.permute.xlu1 %1150 }
 0x278   :  { %1819 = vlog2.f32 %v1368_v0  ;;  %v1161_v8 = vmul.f32 %v2330_v6, %v1147_v5  ;;  %v1375_v9 = vmul.f32 %v1373_v4, %v2330_v6  ;;  %v1085_v60 = vpop.xlane.xlu0 %1084  ;;  %v448_v5 = vmax.f32 %v2249_v57, 1e-10 }
 0x27a   :  { %v1162_v10 = vsel %vm462_vm11, %v1161_v8, 0.0  ;;  %v1376_v11 = vsel %vm462_vm11, %v1375_v9, 0.0 }
 0x27b   :  { %v1163_v13 = vrot.slane %v1162_v10, 4  ;;  %v1377_v14 = vrot.slane %v1376_v11, 4 }
 0x27c   :  { %v1101_v62 = vpop.xlane.xlu0 %1100 }
 0x27d   :  { %v1378_v15 = vadd.f32 %v1377_v14, %v1376_v11  ;;  %v1164_v12 = vadd.f32 %v1163_v13, %v1162_v10 }
 0x27f   :  { %v1379_v23 = vrot.slane %v1378_v15, 2  ;;  %v1165_v16 = vrot.slane %v1164_v12, 2 }
 0x280   :  { %v1117_v0 = vpop.xlane.xlu0 %1116 }
 0x281   :  { %v1818_v17 = vpop.eup %1817  ;;  %v1166_v18 = vadd.f32 %v1165_v16, %v1164_v12  ;;  %v1380_v27 = vadd.f32 %v1379_v23, %v1378_v15 }
 0x282   :  { %v1820_v19 = vpop.eup %1819  ;;  %v681_v20 = vmul.f32 0.6931472, %v1818_v17 }
 0x283   :  { %v1372_v22 = vmul.f32 0.6931472, %v1820_v19  ;;  %v1167_v24 = vrot.slane %v1166_v18, 1  ;;  %v1381_v26 = vrot.slane %v1380_v27, 1 }
 0x284   :  { %v683_v28 = vmul.f32 0.01, %v681_v20 }
 0x285   :  { %v1374_v30 = vmul.f32 0.01, %v1372_v22  ;;  %v1168_v31 = vadd.f32 %v1167_v24, %v1166_v18  ;;  %v1382_v33 = vadd.f32 %v1381_v26, %v1380_v27 }
 0x286   :  { %v692_v34 = vmul.f32 %v683_v28, %v2208_v3 }
 0x287   :  { %v1383_v35 = vmul.f32 %v1374_v30, %v2330_v6  ;;  %1396 = vrot.lane.b32.xlu0 %v1168_v31, %s1829_s13  ;;  %1392 = vrot.lane.b32.xlu1 %v1382_v33, %s1828_s2 }
 0x288   :  { %v693_v36 = vsel %vm462_vm11, %v692_v34, 0.0  ;;  %v702_v26 = vpop.permute.xlu0 %701 }
 0x289   :  { %v694_v37 = vrot.slane %v693_v36, 4  ;;  %v1384_v38 = vsel %vm462_vm11, %v1383_v35, 0.0 }
 0x28a   :  { %v1385_v39 = vrot.slane %v1384_v38, 4 }
 0x28b   :  { %v695_v40 = vadd.f32 %v694_v37, %v693_v36 }
 0x28c   :  { %v1386_v52 = vadd.f32 %v1385_v39, %v1384_v38 }
 0x28d   :  { %v696_v42 = vrot.slane %v695_v40, 2 }
 0x28e   :  { %v1387_v43 = vrot.slane %v1386_v52, 2 }
 0x28f   :  { %v697_v44 = vadd.f32 %v696_v42, %v695_v40 }
 0x290   :  { %v1388_v41 = vadd.f32 %v1387_v43, %v1386_v52 }
 0x291   :  { %v698_v7 = vrot.slane %v697_v44, 1 }
 0x292   :  { %v1389_v1 = vrot.slane %v1388_v41, 1 }
 0x293   :  { %v699_v58 = vadd.f32 %v698_v7, %v697_v44 }
 0x294   :  { %v1390_v45 = vadd.f32 %v1389_v1, %v1388_v41 }
 0x295   :  { %709 = vrot.lane.b32.xlu1 %v699_v58, %s1830_s14 }
 0x296   :  { %1400 = vrot.lane.b32.xlu0 %v1390_v45, %s1830_s14 }
 0x2a8   :  { %v1021_v56 = vpop.xlane.xlu1 %1020 }
 0x2a9   :  { %v1126_v55 = vsel %vm427_vm4, %v1124_v47, %v1021_v56 }
 0x2aa   :  { %v1128_v59 = vsel %vm430_vm5, %v1126_v55, %v1037_v29 }
 0x2ab   :  { %v1130_v32 = vsel %vm433_vm6, %v1128_v59, %v1053_v50 }
 0x2ac   :  { %v1132_v61 = vsel %vm436_vm7, %v1130_v32, %v1069_v53 }
 0x2ad   :  { %v1134_v63 = vsel %vm439_vm8, %v1132_v61, %v1085_v60 }
 0x2ae   :  { %v1136_v54 = vsel %vm442_vm9, %v1134_v63, %v1101_v62 }
 0x2af   :  { %v1138_v2 = vsel %vm445_vm10, %v1136_v54, %v1117_v0 }
 0x2b0   :  { %v1140_v4 = vmax.f32 %v1138_v2, 1e-10 }
 0x2b2   :  { %1821 = vlog2.f32 %v1140_v4 }
 0x2b3   :  { %1823 = vlog2.f32 %v448_v5 }
 0x2bb   :  { %v706_v31 = vpop.permute.xlu0 %705 }
 0x2bc   :  { %v1822_v8 = vpop.eup %1821 }
 0x2bd   :  { %v1824_v9 = vpop.eup %1823  ;;  %v1143_v10 = vmul.f32 0.6931472, %v1822_v8 }
 0x2be   :  { %v451_v11 = vmul.f32 0.6931472, %v1824_v9 }
 0x2bf   :  { %v1146_v13 = vmul.f32 0.01, %v1143_v10 }
 0x2c0   :  { %v454_v14 = vmul.f32 0.01, %v451_v11 }
 0x2c1   :  { %v1153_v15 = vmul.f32 %v2330_v6, %v1146_v13 }
 0x2c2   :  { %v461_v12 = vmul.f32 %v2208_v3, %v454_v14 }
 0x2c3   :  { %v1154_v23 = vsel %vm462_vm11, %v1153_v15, 0.0 }
 0x2c4   :  { %v463_v16 = vsel %vm462_vm11, %v461_v12, 0.0  ;;  %v1155_v17 = vrot.slane %v1154_v23, 4 }
 0x2c5   :  { %v464_v18 = vrot.slane %v463_v16, 4 }
 0x2c6   :  { %v1156_v27 = vadd.f32 %v1155_v17, %v1154_v23 }
 0x2c7   :  { %v465_v57 = vadd.f32 %v464_v18, %v463_v16 }
 0x2c8   :  { %v1157_v19 = vrot.slane %v1156_v27, 2 }
 0x2c9   :  { %v466_v20 = vrot.slane %v465_v57, 2 }
 0x2ca   :  { %v1158_v22 = vadd.f32 %v1157_v19, %v1156_v27 }
 0x2cb   :  { %v467_v24 = vadd.f32 %v466_v20, %v465_v57 }
 0x2cc   :  { %v1159_v28 = vrot.slane %v1158_v22, 1 }
 0x2cd   :  { %v468_v30 = vrot.slane %v467_v24, 1 }
 0x2ce   :  { %v1160_v6 = vadd.f32 %v1159_v28, %v1158_v22 }
 0x2cf   :  { %v469_v34 = vadd.f32 %v468_v30, %v467_v24 }
 0x2d1   :  { %v712_v36 = vsel %vm462_vm11, %v469_v34, %v702_v26 }
 0x2d2   :  { %v714_v37 = vsel %vm713_vm12, %v712_v36, %v706_v31 }
 0x2f9   :  { %v1393_v33 = vpop.permute.xlu1 %1392  ;;  %v1397_v3 = vpop.permute.xlu0 %1396 }
 0x2fa   :  { %v1403_v35 = vsel %vm462_vm11, %v1160_v6, %v1393_v33 }
 0x2fb   :  { %v1404_v40 = vsel %vm713_vm12, %v1403_v35, %v1397_v3 }
 0x307   :  { %v710_v38 = vpop.permute.xlu1 %709 }
 0x308   :  { %v1401_v39 = vpop.permute.xlu0 %1400  ;;  %v716_v52 = vsel %vm715_vm13, %v714_v37, %v710_v38 }
 0x309   :  { %v1405_v42 = vsel %vm715_vm13, %v1404_v40, %v1401_v39  ;;  %718 = vst.msk [vmem:[%s2369_s4] sm:$0x1] %vm717_vm14, %v716_v52 }
 0x30a   :  { %1540 = vst.msk [vmem:[%s2369_s4 + $0x1] sm:$0x1] %vm717_vm14, %v1405_v42 }

</bundles_post_ra>
